<compile_context>
chip_gen: v7x
topology: tpu7x:2x2x1
jax: 0.10.0
libtpu: 0.0.40
codegen_flags: <defaults>
</compile_context>

<pallas_src>
import numpy as np
import jax
import jax.numpy as jnp
from jax.experimental import pallas as pl
from jax.experimental.pallas import tpu as pltpu

PAD_ID = 0


# ----------------------------------------------------------------------------
# Fused kernel: encoder (2 layers) -> decoder (2 layers) -> head + loss.
# Specialized to num_layers=2 (the module instance used here).
# ----------------------------------------------------------------------------
def _seqae_kernel(embs_ref, lens_ref, tgt_ref,
                  e_wih0_ref, e_whh0_ref, e_b0_ref,
                  e_wih1_ref, e_whh1_ref, e_b1_ref,
                  d_wih0_ref, d_whh0_ref, d_b0_ref,
                  d_wih1_ref, d_whh1_ref, d_b1_ref,
                  wh_ref, bh_ref,
                  logits_ref, loss_ref, ncorr_ref, ench_ref, encc_ref):
    TB = embs_ref.shape[0]
    B = lens_ref.shape[0]
    T = TB // B
    H = e_whh0_ref.shape[0]
    VPAD = wh_ref.shape[1]

    embs = embs_ref[...]                                   # (T*B, E) f32
    lens = lens_ref[...]                                   # (B, 1) int32

    def run_layer(x2d, n_steps, wih_t, whh_t, bias, h0, c0, masks):
        # Hoisted input projection: one batched MXU matmul over all timesteps;
        # only h @ W_hh^T remains on the serial recurrence path.
        gx = jnp.dot(x2d, wih_t, preferred_element_type=jnp.float32) + bias
        h, c = h0, c0
        hs = []
        for t in range(n_steps):                           # fully unrolled (static)
            g = gx[t * B:(t + 1) * B, :] + jnp.dot(
                h, whh_t, preferred_element_type=jnp.float32)
            # PyTorch gate order: i, f, g, o
            i_g = jax.nn.sigmoid(g[:, 0 * H:1 * H])
            f_g = jax.nn.sigmoid(g[:, 1 * H:2 * H])
            g_g = jnp.tanh(g[:, 2 * H:3 * H])
            o_g = jax.nn.sigmoid(g[:, 3 * H:4 * H])
            c_new = f_g * c + i_g * g_g
            h_new = o_g * jnp.tanh(c_new)
            m = masks[t]                                   # (B, 1) f32 validity
            h = m * h_new + (1.0 - m) * h                  # freeze finished seqs
            c = m * c_new + (1.0 - m) * c
            hs.append(h)
        return hs, h, c

    zeros = jnp.zeros((B, H), jnp.float32)

    # ----------------- encoder: input embs[1:], packed lengths-2 -------------
    T_enc = T - 1
    enc_masks = [(t < (lens - 2)).astype(jnp.float32) for t in range(T_enc)]
    x_enc = embs[B:TB, :]                                  # rows for embs[1:]
    hs_e0, eh0, ec0 = run_layer(x_enc, T_enc, e_wih0_ref[...], e_whh0_ref[...],
                                e_b0_ref[...], zeros, zeros, enc_masks)
    x_e1 = jnp.concatenate(hs_e0, axis=0)                  # (T_enc*B, H)
    hs_e1, eh1, ec1 = run_layer(x_e1, T_enc, e_wih1_ref[...], e_whh1_ref[...],
                                e_b1_ref[...], zeros, zeros, enc_masks)

    # final encoder state written once (h_n, c_n per layer)
    ench_ref[0] = eh0
    ench_ref[1] = eh1
    encc_ref[0] = ec0
    encc_ref[1] = ec1

    # --------------- decoder: input embs, packed lengths-1, init=enc ---------
    dec_masks = [(t < (lens - 1)).astype(jnp.float32) for t in range(T)]
    hs_d0, _, _ = run_layer(embs, T, d_wih0_ref[...], d_whh0_ref[...],
                            d_b0_ref[...], eh0, ec0, dec_masks)
    x_d1 = jnp.concatenate(hs_d0, axis=0)                  # (T*B, H)
    hs_d1, _, _ = run_layer(x_d1, T, d_wih1_ref[...], d_whh1_ref[...],
                            d_b1_ref[...], eh1, ec1, dec_masks)
    dec_h = jnp.concatenate(hs_d1, axis=0)                 # (T*B, H)

    # ----------------------------- head + loss -------------------------------
    # Vocab is lane-padded to VPAD=128; padded columns carry bias=-1e9 so they
    # never win max/argmax and contribute ~0 to the softmax denominator.
    logits = jnp.dot(dec_h, wh_ref[...],
                     preferred_element_type=jnp.float32) + bh_ref[...]
    logits_ref[...] = logits                               # lane-dense (T*B, 128)

    tgt = tgt_ref[...]                                     # (T*B, 1) int32
    col = jax.lax.broadcasted_iota(jnp.int32, (TB, VPAD), 1)
    onehot = (col == tgt).astype(jnp.float32)

    row_max = jnp.max(logits, axis=1, keepdims=True)       # (T*B, 1)
    lse = row_max + jnp.log(
        jnp.sum(jnp.exp(logits - row_max), axis=1, keepdims=True))
    logp_t = jnp.sum(logits * onehot, axis=1, keepdims=True) - lse

    # position validity (packed membership) and ignore_index handling
    valid_pos = jnp.concatenate(dec_masks, axis=0)         # (T*B, 1) f32
    valid_loss = valid_pos * (tgt != PAD_ID).astype(jnp.float32)
    loss_sum = jnp.sum(-logp_t * valid_loss, axis=0, keepdims=True)    # (1, 1)
    count = jnp.maximum(jnp.sum(valid_loss, axis=0, keepdims=True), 1.0)
    loss_ref[...] = loss_sum / count

    # argmax with first-index tie-break (matches torch.argmax); column indices
    # are small ints, exactly representable in f32.
    colf = col.astype(jnp.float32)
    pred = jnp.min(jnp.where(logits == row_max, colf, float(VPAD)),
                   axis=1, keepdims=True)                  # (T*B, 1)
    hit = (pred == tgt.astype(jnp.float32)).astype(jnp.float32) * valid_pos
    ncorr_ref[...] = jnp.sum(hit, axis=0, keepdims=True)


def _seqae_pallas(embs2d, lens, tgt, enc_flat, dec_flat, w_head, b_head,
                  *, B, H, num_layers):
    TB = embs2d.shape[0]
    VPAD = w_head.shape[1]
    vmem = pltpu.MemorySpace.VMEM
    n_in = 3 + len(enc_flat) + len(dec_flat) + 2
    out_shape = (
        jax.ShapeDtypeStruct((TB, VPAD), jnp.float32),         # logits (padded V)
        jax.ShapeDtypeStruct((1, 1), jnp.float32),             # loss
        jax.ShapeDtypeStruct((1, 1), jnp.float32),             # num_correct
        jax.ShapeDtypeStruct((num_layers, B, H), jnp.float32), # enc h_n
        jax.ShapeDtypeStruct((num_layers, B, H), jnp.float32), # enc c_n
    )
    return pl.pallas_call(
        _seqae_kernel,
        out_shape=out_shape,
        in_specs=[pl.BlockSpec(memory_space=vmem)] * n_in,
        out_specs=tuple(pl.BlockSpec(memory_space=vmem) for _ in out_shape),
    )(embs2d, lens, tgt, *enc_flat, *dec_flat, w_head, b_head)


# ----------------------------------------------------------------------------
# Glue: parameter init, packing indices, full forward.
# ----------------------------------------------------------------------------
def init_lstm_params(key, input_size, hidden, num_layers):
    params = []
    bound = 1.0 / float(np.sqrt(hidden))
    for l in range(num_layers):
        in_sz = input_size if l == 0 else hidden
        key, k1, k2, k3, k4 = jax.random.split(key, 5)
        w_ih = jax.random.uniform(k1, (4 * hidden, in_sz), jnp.float32,
                                  -bound, bound)
        w_hh = jax.random.uniform(k2, (4 * hidden, hidden), jnp.float32,
                                  -bound, bound)
        b_ih = jax.random.uniform(k3, (4 * hidden,), jnp.float32, -bound, bound)
        b_hh = jax.random.uniform(k4, (4 * hidden,), jnp.float32, -bound, bound)
        params.append((w_ih.T, w_hh.T, (b_ih + b_hh).reshape(1, 4 * hidden)))
    return params, key


def packed_indices(lengths, max_t):
    """pack_padded_sequence data order: timestep-major over active batches."""
    t_idx, b_idx = [], []
    for t in range(max_t):
        for b, L in enumerate(lengths):
            if t < L:
                t_idx.append(t)
                b_idx.append(b)
    return np.array(t_idx, np.int32), np.array(b_idx, np.int32)


def seq_ae_forward(params, ids, lengths_list, vocab_size):
    emb_table, enc_params, dec_params, w_head, b_head = params
    T, B = ids.shape
    H = enc_params[0][1].shape[0]
    num_layers = len(enc_params)
    assert num_layers == 2, "fused kernel specialized for num_layers=2"

    # Embedding lookup is JAX glue (data-dependent row gather has no efficient
    # in-kernel TPU form). nn.Dropout(p=0.0) is identity.
    # TODO(synk): dropout>0 would need in-kernel PRNG masks; p=0.0 here.
    embs2d = jnp.take(emb_table, ids.reshape(-1), axis=0)       # (T*B, E)

    lens = jnp.asarray(np.asarray(lengths_list, np.int32).reshape(B, 1))

    # targets: ids[1:] laid out (t, b) row-major; dummy last step = PAD (masked)
    tgt = jnp.concatenate(
        [ids[1:], jnp.full((1, B), PAD_ID, ids.dtype)], axis=0
    ).reshape(T * B, 1).astype(jnp.int32)

    enc_flat = [w for layer in enc_params for w in layer]
    dec_flat = [w for layer in dec_params for w in layer]

    logits_full, loss, ncorr, enc_h, enc_c = _seqae_pallas(
        embs2d, lens, tgt, enc_flat, dec_flat, w_head, b_head,
        B=B, H=H, num_layers=num_layers)

    # packed-order gather of logits rows (static host-side indices) + unpad V
    dec_lens = [L - 1 for L in lengths_list]
    t_idx, b_idx = packed_indices(dec_lens, max(dec_lens))
    flat_idx = jnp.asarray(t_idx * B + b_idx)
    logits = logits_full[flat_idx, :vocab_size]                 # (N, V)

    return ((enc_h, enc_c), logits, loss[0, 0],
            ncorr[0, 0].astype(jnp.int32))


if __name__ == "__main__":
    # small shapes consistent with the module
    VOCAB, EMB, HID, LAYERS = 50, 16, 32, 2
    VPAD = 128                         # lane-padded vocab for dense stores
    T, B = 8, 4
    lengths_list = [8, 7, 6, 5]        # sorted descending (enforce_sorted)

    key = jax.random.PRNGKey(0)

    # deterministic parameter init (shapes per the module's __init__)
    key, k_emb = jax.random.split(key)
    emb_table = jax.random.normal(k_emb, (VOCAB, EMB), jnp.float32)
    enc_params, key = init_lstm_params(key, EMB, HID, LAYERS)
    dec_params, key = init_lstm_params(key, EMB, HID, LAYERS)
    bound = 1.0 / float(np.sqrt(HID))
    key, k_w, k_b = jax.random.split(key, 3)
    w_logits = jax.random.uniform(k_w, (VOCAB, HID), jnp.float32, -bound, bound)
    b_logits = jax.random.uniform(k_b, (VOCAB,), jnp.float32, -bound, bound)

    # lane-pad the head to 128 columns; padded columns get bias -1e9 so they
    # never affect softmax/argmax; wrapper slices logits back to VOCAB.
    w_head = jnp.zeros((HID, VPAD), jnp.float32).at[:, :VOCAB].set(w_logits.T)
    b_head = jnp.full((1, VPAD), -1e9, jnp.float32).at[0, :VOCAB].set(b_logits)

    params = (emb_table, enc_params, dec_params, w_head, b_head)

    # deterministic example inputs (writable host copy before padding)
    key, k_ids = jax.random.split(key)
    ids_np = np.asarray(
        jax.random.randint(k_ids, (T, B), 1, VOCAB, dtype=jnp.int32)).copy()
    for b, L in enumerate(lengths_list):
        ids_np[L:, b] = PAD_ID           # pad beyond each sequence length
    ids = jnp.asarray(ids_np, jnp.int32)

    (enc_state, logits, loss, num_correct) = seq_ae_forward(
        params, ids, lengths_list, VOCAB)
    jax.block_until_ready((enc_state, logits, loss, num_correct))

    N_expected = sum(L - 1 for L in lengths_list)
    assert logits.shape == (N_expected, VOCAB)
    assert enc_state[0].shape == (LAYERS, B, HID)
    assert enc_state[1].shape == (LAYERS, B, HID)
    assert bool(jnp.isfinite(loss))
    assert 0 <= int(num_correct) <= N_expected
    print("KERNEL_OK")
</pallas_src>

<mosaic_0001>
module attributes {stable_mosaic.version = 11 : i64} {
  func.func @_seqae_kernel(%arg0: memref<32x16xf32, #tpu.memory_space<vmem>>, %arg1: memref<4x1xi32, #tpu.memory_space<vmem>>, %arg2: memref<32x1xi32, #tpu.memory_space<vmem>>, %arg3: memref<16x128xf32, #tpu.memory_space<vmem>>, %arg4: memref<32x128xf32, #tpu.memory_space<vmem>>, %arg5: memref<1x128xf32, #tpu.memory_space<vmem>>, %arg6: memref<32x128xf32, #tpu.memory_space<vmem>>, %arg7: memref<32x128xf32, #tpu.memory_space<vmem>>, %arg8: memref<1x128xf32, #tpu.memory_space<vmem>>, %arg9: memref<16x128xf32, #tpu.memory_space<vmem>>, %arg10: memref<32x128xf32, #tpu.memory_space<vmem>>, %arg11: memref<1x128xf32, #tpu.memory_space<vmem>>, %arg12: memref<32x128xf32, #tpu.memory_space<vmem>>, %arg13: memref<32x128xf32, #tpu.memory_space<vmem>>, %arg14: memref<1x128xf32, #tpu.memory_space<vmem>>, %arg15: memref<32x128xf32, #tpu.memory_space<vmem>>, %arg16: memref<1x128xf32, #tpu.memory_space<vmem>>, %arg17: memref<32x128xf32, #tpu.memory_space<vmem>>, %arg18: memref<1x1xf32, #tpu.memory_space<vmem>>, %arg19: memref<1x1xf32, #tpu.memory_space<vmem>>, %arg20: memref<2x4x32xf32, #tpu.memory_space<vmem>>, %arg21: memref<2x4x32xf32, #tpu.memory_space<vmem>>) attributes {dimension_semantics = [], scalar_prefetch = 0 : i64, scratch_operands = 0 : i64, tpu.core_type = #tpu.core_type<tc>} {
    %c0 = arith.constant 0 : index
    %c0_0 = arith.constant 0 : index
    %0 = vector.load %arg0[%c0, %c0_0] : memref<32x16xf32, #tpu.memory_space<vmem>>, vector<32x16xf32>
    %c0_1 = arith.constant 0 : index
    %c0_2 = arith.constant 0 : index
    %1 = vector.load %arg1[%c0_1, %c0_2] : memref<4x1xi32, #tpu.memory_space<vmem>>, vector<4x1xi32>
    %cst = arith.constant 0.000000e+00 : f32
    %2 = vector.broadcast %cst : f32 to vector<4x32xf32>
    %c2_i32 = arith.constant 2 : i32
    %3 = vector.broadcast %c2_i32 : i32 to vector<4x1xi32>
    %4 = arith.subi %1, %3 : vector<4x1xi32>
    %c0_i32 = arith.constant 0 : i32
    %5 = vector.broadcast %c0_i32 : i32 to vector<4x1xi32>
    %6 = arith.cmpi sgt, %4, %5 : vector<4x1xi32>
    %7 = arith.extui %6 : vector<4x1xi1> to vector<4x1xi32>
    %8 = arith.sitofp %7 : vector<4x1xi32> to vector<4x1xf32>
    %c2_i32_3 = arith.constant 2 : i32
    %9 = vector.broadcast %c2_i32_3 : i32 to vector<4x1xi32>
    %10 = arith.subi %1, %9 : vector<4x1xi32>
    %c1_i32 = arith.constant 1 : i32
    %11 = vector.broadcast %c1_i32 : i32 to vector<4x1xi32>
    %12 = arith.cmpi sgt, %10, %11 : vector<4x1xi32>
    %13 = arith.extui %12 : vector<4x1xi1> to vector<4x1xi32>
    %14 = arith.sitofp %13 : vector<4x1xi32> to vector<4x1xf32>
    %c2_i32_4 = arith.constant 2 : i32
    %15 = vector.broadcast %c2_i32_4 : i32 to vector<4x1xi32>
    %16 = arith.subi %1, %15 : vector<4x1xi32>
    %c2_i32_5 = arith.constant 2 : i32
    %17 = vector.broadcast %c2_i32_5 : i32 to vector<4x1xi32>
    %18 = arith.cmpi sgt, %16, %17 : vector<4x1xi32>
    %19 = arith.extui %18 : vector<4x1xi1> to vector<4x1xi32>
    %20 = arith.sitofp %19 : vector<4x1xi32> to vector<4x1xf32>
    %c2_i32_6 = arith.constant 2 : i32
    %21 = vector.broadcast %c2_i32_6 : i32 to vector<4x1xi32>
    %22 = arith.subi %1, %21 : vector<4x1xi32>
    %c3_i32 = arith.constant 3 : i32
    %23 = vector.broadcast %c3_i32 : i32 to vector<4x1xi32>
    %24 = arith.cmpi sgt, %22, %23 : vector<4x1xi32>
    %25 = arith.extui %24 : vector<4x1xi1> to vector<4x1xi32>
    %26 = arith.sitofp %25 : vector<4x1xi32> to vector<4x1xf32>
    %c2_i32_7 = arith.constant 2 : i32
    %27 = vector.broadcast %c2_i32_7 : i32 to vector<4x1xi32>
    %28 = arith.subi %1, %27 : vector<4x1xi32>
    %c4_i32 = arith.constant 4 : i32
    %29 = vector.broadcast %c4_i32 : i32 to vector<4x1xi32>
    %30 = arith.cmpi sgt, %28, %29 : vector<4x1xi32>
    %31 = arith.extui %30 : vector<4x1xi1> to vector<4x1xi32>
    %32 = arith.sitofp %31 : vector<4x1xi32> to vector<4x1xf32>
    %c2_i32_8 = arith.constant 2 : i32
    %33 = vector.broadcast %c2_i32_8 : i32 to vector<4x1xi32>
    %34 = arith.subi %1, %33 : vector<4x1xi32>
    %c5_i32 = arith.constant 5 : i32
    %35 = vector.broadcast %c5_i32 : i32 to vector<4x1xi32>
    %36 = arith.cmpi sgt, %34, %35 : vector<4x1xi32>
    %37 = arith.extui %36 : vector<4x1xi1> to vector<4x1xi32>
    %38 = arith.sitofp %37 : vector<4x1xi32> to vector<4x1xf32>
    %c2_i32_9 = arith.constant 2 : i32
    %39 = vector.broadcast %c2_i32_9 : i32 to vector<4x1xi32>
    %40 = arith.subi %1, %39 : vector<4x1xi32>
    %c6_i32 = arith.constant 6 : i32
    %41 = vector.broadcast %c6_i32 : i32 to vector<4x1xi32>
    %42 = arith.cmpi sgt, %40, %41 : vector<4x1xi32>
    %43 = arith.extui %42 : vector<4x1xi1> to vector<4x1xi32>
    %44 = arith.sitofp %43 : vector<4x1xi32> to vector<4x1xf32>
    %45 = vector.extract_strided_slice %0 {offsets = [4, 0], sizes = [28, 16], strides = [1, 1]} : vector<32x16xf32> to vector<28x16xf32>
    %c0_10 = arith.constant 0 : index
    %c0_11 = arith.constant 0 : index
    %46 = vector.load %arg3[%c0_10, %c0_11] : memref<16x128xf32, #tpu.memory_space<vmem>>, vector<16x128xf32>
    %c0_12 = arith.constant 0 : index
    %c0_13 = arith.constant 0 : index
    %47 = vector.load %arg4[%c0_12, %c0_13] : memref<32x128xf32, #tpu.memory_space<vmem>>, vector<32x128xf32>
    %c0_14 = arith.constant 0 : index
    %c0_15 = arith.constant 0 : index
    %48 = vector.load %arg5[%c0_14, %c0_15] : memref<1x128xf32, #tpu.memory_space<vmem>>, vector<1x128xf32>
    %cst_16 = arith.constant dense<0.000000e+00> : vector<28x128xf32>
    %49 = tpu.matmul %45, %46, %cst_16 {dimension_numbers = #tpu.dot_dimension_numbers<[1], [0], [0], [1], [0, 0, 1, 1], [], []>} : vector<28x16xf32>, vector<16x128xf32>, vector<28x128xf32> -> vector<28x128xf32>
    %50 = vector.broadcast %48 : vector<1x128xf32> to vector<28x128xf32>
    %51 = arith.addf %49, %50 : vector<28x128xf32>
    %52 = vector.extract_strided_slice %51 {offsets = [0, 0], sizes = [4, 128], strides = [1, 1]} : vector<28x128xf32> to vector<4x128xf32>
    %cst_17 = arith.constant dense<0.000000e+00> : vector<4x128xf32>
    %53 = tpu.matmul %2, %47, %cst_17 {dimension_numbers = #tpu.dot_dimension_numbers<[1], [0], [0], [1], [0, 0, 1, 1], [], []>} : vector<4x32xf32>, vector<32x128xf32>, vector<4x128xf32> -> vector<4x128xf32>
    %54 = arith.addf %52, %53 : vector<4x128xf32>
    %55 = vector.extract_strided_slice %54 {offsets = [0, 0], sizes = [4, 32], strides = [1, 1]} : vector<4x128xf32> to vector<4x32xf32>
    %56 = arith.negf %55 : vector<4x32xf32>
    %57 = math.exp %56 : vector<4x32xf32>
    %cst_18 = arith.constant 1.000000e+00 : f32
    %58 = vector.broadcast %cst_18 : f32 to vector<4x32xf32>
    %59 = arith.addf %58, %57 : vector<4x32xf32>
    %60 = arith.divf %58, %59 : vector<4x32xf32>
    %61 = vector.extract_strided_slice %54 {offsets = [0, 32], sizes = [4, 32], strides = [1, 1]} : vector<4x128xf32> to vector<4x32xf32>
    %62 = arith.negf %61 : vector<4x32xf32>
    %63 = math.exp %62 : vector<4x32xf32>
    %cst_19 = arith.constant 1.000000e+00 : f32
    %64 = vector.broadcast %cst_19 : f32 to vector<4x32xf32>
    %65 = arith.addf %64, %63 : vector<4x32xf32>
    %66 = arith.divf %64, %65 : vector<4x32xf32>
    %67 = vector.extract_strided_slice %54 {offsets = [0, 64], sizes = [4, 32], strides = [1, 1]} : vector<4x128xf32> to vector<4x32xf32>
    %68 = math.tanh %67 : vector<4x32xf32>
    %69 = vector.extract_strided_slice %54 {offsets = [0, 96], sizes = [4, 32], strides = [1, 1]} : vector<4x128xf32> to vector<4x32xf32>
    %70 = arith.negf %69 : vector<4x32xf32>
    %71 = math.exp %70 : vector<4x32xf32>
    %cst_20 = arith.constant 1.000000e+00 : f32
    %72 = vector.broadcast %cst_20 : f32 to vector<4x32xf32>
    %73 = arith.addf %72, %71 : vector<4x32xf32>
    %74 = arith.divf %72, %73 : vector<4x32xf32>
    %75 = arith.mulf %66, %2 : vector<4x32xf32>
    %76 = arith.mulf %60, %68 : vector<4x32xf32>
    %77 = arith.addf %75, %76 : vector<4x32xf32>
    %78 = math.tanh %77 : vector<4x32xf32>
    %79 = arith.mulf %74, %78 : vector<4x32xf32>
    %80 = vector.broadcast %8 : vector<4x1xf32> to vector<4x32xf32>
    %81 = arith.mulf %80, %79 : vector<4x32xf32>
    %cst_21 = arith.constant 1.000000e+00 : f32
    %82 = vector.broadcast %cst_21 : f32 to vector<4x1xf32>
    %83 = arith.subf %82, %8 : vector<4x1xf32>
    %84 = vector.broadcast %83 : vector<4x1xf32> to vector<4x32xf32>
    %85 = arith.mulf %84, %2 : vector<4x32xf32>
    %86 = arith.addf %81, %85 : vector<4x32xf32>
    %87 = vector.broadcast %8 : vector<4x1xf32> to vector<4x32xf32>
    %88 = arith.mulf %87, %77 : vector<4x32xf32>
    %cst_22 = arith.constant 1.000000e+00 : f32
    %89 = vector.broadcast %cst_22 : f32 to vector<4x1xf32>
    %90 = arith.subf %89, %8 : vector<4x1xf32>
    %91 = vector.broadcast %90 : vector<4x1xf32> to vector<4x32xf32>
    %92 = arith.mulf %91, %2 : vector<4x32xf32>
    %93 = arith.addf %88, %92 : vector<4x32xf32>
    %94 = vector.extract_strided_slice %51 {offsets = [4, 0], sizes = [4, 128], strides = [1, 1]} : vector<28x128xf32> to vector<4x128xf32>
    %cst_23 = arith.constant dense<0.000000e+00> : vector<4x128xf32>
    %95 = tpu.matmul %86, %47, %cst_23 {dimension_numbers = #tpu.dot_dimension_numbers<[1], [0], [0], [1], [0, 0, 1, 1], [], []>} : vector<4x32xf32>, vector<32x128xf32>, vector<4x128xf32> -> vector<4x128xf32>
    %96 = arith.addf %94, %95 : vector<4x128xf32>
    %97 = vector.extract_strided_slice %96 {offsets = [0, 0], sizes = [4, 32], strides = [1, 1]} : vector<4x128xf32> to vector<4x32xf32>
    %98 = arith.negf %97 : vector<4x32xf32>
    %99 = math.exp %98 : vector<4x32xf32>
    %cst_24 = arith.constant 1.000000e+00 : f32
    %100 = vector.broadcast %cst_24 : f32 to vector<4x32xf32>
    %101 = arith.addf %100, %99 : vector<4x32xf32>
    %102 = arith.divf %100, %101 : vector<4x32xf32>
    %103 = vector.extract_strided_slice %96 {offsets = [0, 32], sizes = [4, 32], strides = [1, 1]} : vector<4x128xf32> to vector<4x32xf32>
    %104 = arith.negf %103 : vector<4x32xf32>
    %105 = math.exp %104 : vector<4x32xf32>
    %cst_25 = arith.constant 1.000000e+00 : f32
    %106 = vector.broadcast %cst_25 : f32 to vector<4x32xf32>
    %107 = arith.addf %106, %105 : vector<4x32xf32>
    %108 = arith.divf %106, %107 : vector<4x32xf32>
    %109 = vector.extract_strided_slice %96 {offsets = [0, 64], sizes = [4, 32], strides = [1, 1]} : vector<4x128xf32> to vector<4x32xf32>
    %110 = math.tanh %109 : vector<4x32xf32>
    %111 = vector.extract_strided_slice %96 {offsets = [0, 96], sizes = [4, 32], strides = [1, 1]} : vector<4x128xf32> to vector<4x32xf32>
    %112 = arith.negf %111 : vector<4x32xf32>
    %113 = math.exp %112 : vector<4x32xf32>
    %cst_26 = arith.constant 1.000000e+00 : f32
    %114 = vector.broadcast %cst_26 : f32 to vector<4x32xf32>
    %115 = arith.addf %114, %113 : vector<4x32xf32>
    %116 = arith.divf %114, %115 : vector<4x32xf32>
    %117 = arith.mulf %108, %93 : vector<4x32xf32>
    %118 = arith.mulf %102, %110 : vector<4x32xf32>
    %119 = arith.addf %117, %118 : vector<4x32xf32>
    %120 = math.tanh %119 : vector<4x32xf32>
    %121 = arith.mulf %116, %120 : vector<4x32xf32>
    %122 = vector.broadcast %14 : vector<4x1xf32> to vector<4x32xf32>
    %123 = arith.mulf %122, %121 : vector<4x32xf32>
    %cst_27 = arith.constant 1.000000e+00 : f32
    %124 = vector.broadcast %cst_27 : f32 to vector<4x1xf32>
    %125 = arith.subf %124, %14 : vector<4x1xf32>
    %126 = vector.broadcast %125 : vector<4x1xf32> to vector<4x32xf32>
    %127 = arith.mulf %126, %86 : vector<4x32xf32>
    %128 = arith.addf %123, %127 : vector<4x32xf32>
    %129 = vector.broadcast %14 : vector<4x1xf32> to vector<4x32xf32>
    %130 = arith.mulf %129, %119 : vector<4x32xf32>
    %cst_28 = arith.constant 1.000000e+00 : f32
    %131 = vector.broadcast %cst_28 : f32 to vector<4x1xf32>
    %132 = arith.subf %131, %14 : vector<4x1xf32>
    %133 = vector.broadcast %132 : vector<4x1xf32> to vector<4x32xf32>
    %134 = arith.mulf %133, %93 : vector<4x32xf32>
    %135 = arith.addf %130, %134 : vector<4x32xf32>
    %136 = vector.extract_strided_slice %51 {offsets = [8, 0], sizes = [4, 128], strides = [1, 1]} : vector<28x128xf32> to vector<4x128xf32>
    %cst_29 = arith.constant dense<0.000000e+00> : vector<4x128xf32>
    %137 = tpu.matmul %128, %47, %cst_29 {dimension_numbers = #tpu.dot_dimension_numbers<[1], [0], [0], [1], [0, 0, 1, 1], [], []>} : vector<4x32xf32>, vector<32x128xf32>, vector<4x128xf32> -> vector<4x128xf32>
    %138 = arith.addf %136, %137 : vector<4x128xf32>
    %139 = vector.extract_strided_slice %138 {offsets = [0, 0], sizes = [4, 32], strides = [1, 1]} : vector<4x128xf32> to vector<4x32xf32>
    %140 = arith.negf %139 : vector<4x32xf32>
    %141 = math.exp %140 : vector<4x32xf32>
    %cst_30 = arith.constant 1.000000e+00 : f32
    %142 = vector.broadcast %cst_30 : f32 to vector<4x32xf32>
    %143 = arith.addf %142, %141 : vector<4x32xf32>
    %144 = arith.divf %142, %143 : vector<4x32xf32>
    %145 = vector.extract_strided_slice %138 {offsets = [0, 32], sizes = [4, 32], strides = [1, 1]} : vector<4x128xf32> to vector<4x32xf32>
    %146 = arith.negf %145 : vector<4x32xf32>
    %147 = math.exp %146 : vector<4x32xf32>
    %cst_31 = arith.constant 1.000000e+00 : f32
    %148 = vector.broadcast %cst_31 : f32 to vector<4x32xf32>
    %149 = arith.addf %148, %147 : vector<4x32xf32>
    %150 = arith.divf %148, %149 : vector<4x32xf32>
    %151 = vector.extract_strided_slice %138 {offsets = [0, 64], sizes = [4, 32], strides = [1, 1]} : vector<4x128xf32> to vector<4x32xf32>
    %152 = math.tanh %151 : vector<4x32xf32>
    %153 = vector.extract_strided_slice %138 {offsets = [0, 96], sizes = [4, 32], strides = [1, 1]} : vector<4x128xf32> to vector<4x32xf32>
    %154 = arith.negf %153 : vector<4x32xf32>
    %155 = math.exp %154 : vector<4x32xf32>
    %cst_32 = arith.constant 1.000000e+00 : f32
    %156 = vector.broadcast %cst_32 : f32 to vector<4x32xf32>
    %157 = arith.addf %156, %155 : vector<4x32xf32>
    %158 = arith.divf %156, %157 : vector<4x32xf32>
    %159 = arith.mulf %150, %135 : vector<4x32xf32>
    %160 = arith.mulf %144, %152 : vector<4x32xf32>
    %161 = arith.addf %159, %160 : vector<4x32xf32>
    %162 = math.tanh %161 : vector<4x32xf32>
    %163 = arith.mulf %158, %162 : vector<4x32xf32>
    %164 = vector.broadcast %20 : vector<4x1xf32> to vector<4x32xf32>
    %165 = arith.mulf %164, %163 : vector<4x32xf32>
    %cst_33 = arith.constant 1.000000e+00 : f32
    %166 = vector.broadcast %cst_33 : f32 to vector<4x1xf32>
    %167 = arith.subf %166, %20 : vector<4x1xf32>
    %168 = vector.broadcast %167 : vector<4x1xf32> to vector<4x32xf32>
    %169 = arith.mulf %168, %128 : vector<4x32xf32>
    %170 = arith.addf %165, %169 : vector<4x32xf32>
    %171 = vector.broadcast %20 : vector<4x1xf32> to vector<4x32xf32>
    %172 = arith.mulf %171, %161 : vector<4x32xf32>
    %cst_34 = arith.constant 1.000000e+00 : f32
    %173 = vector.broadcast %cst_34 : f32 to vector<4x1xf32>
    %174 = arith.subf %173, %20 : vector<4x1xf32>
    %175 = vector.broadcast %174 : vector<4x1xf32> to vector<4x32xf32>
    %176 = arith.mulf %175, %135 : vector<4x32xf32>
    %177 = arith.addf %172, %176 : vector<4x32xf32>
    %178 = vector.extract_strided_slice %51 {offsets = [12, 0], sizes = [4, 128], strides = [1, 1]} : vector<28x128xf32> to vector<4x128xf32>
    %cst_35 = arith.constant dense<0.000000e+00> : vector<4x128xf32>
    %179 = tpu.matmul %170, %47, %cst_35 {dimension_numbers = #tpu.dot_dimension_numbers<[1], [0], [0], [1], [0, 0, 1, 1], [], []>} : vector<4x32xf32>, vector<32x128xf32>, vector<4x128xf32> -> vector<4x128xf32>
    %180 = arith.addf %178, %179 : vector<4x128xf32>
    %181 = vector.extract_strided_slice %180 {offsets = [0, 0], sizes = [4, 32], strides = [1, 1]} : vector<4x128xf32> to vector<4x32xf32>
    %182 = arith.negf %181 : vector<4x32xf32>
    %183 = math.exp %182 : vector<4x32xf32>
    %cst_36 = arith.constant 1.000000e+00 : f32
    %184 = vector.broadcast %cst_36 : f32 to vector<4x32xf32>
    %185 = arith.addf %184, %183 : vector<4x32xf32>
    %186 = arith.divf %184, %185 : vector<4x32xf32>
    %187 = vector.extract_strided_slice %180 {offsets = [0, 32], sizes = [4, 32], strides = [1, 1]} : vector<4x128xf32> to vector<4x32xf32>
    %188 = arith.negf %187 : vector<4x32xf32>
    %189 = math.exp %188 : vector<4x32xf32>
    %cst_37 = arith.constant 1.000000e+00 : f32
    %190 = vector.broadcast %cst_37 : f32 to vector<4x32xf32>
    %191 = arith.addf %190, %189 : vector<4x32xf32>
    %192 = arith.divf %190, %191 : vector<4x32xf32>
    %193 = vector.extract_strided_slice %180 {offsets = [0, 64], sizes = [4, 32], strides = [1, 1]} : vector<4x128xf32> to vector<4x32xf32>
    %194 = math.tanh %193 : vector<4x32xf32>
    %195 = vector.extract_strided_slice %180 {offsets = [0, 96], sizes = [4, 32], strides = [1, 1]} : vector<4x128xf32> to vector<4x32xf32>
    %196 = arith.negf %195 : vector<4x32xf32>
    %197 = math.exp %196 : vector<4x32xf32>
    %cst_38 = arith.constant 1.000000e+00 : f32
    %198 = vector.broadcast %cst_38 : f32 to vector<4x32xf32>
    %199 = arith.addf %198, %197 : vector<4x32xf32>
    %200 = arith.divf %198, %199 : vector<4x32xf32>
    %201 = arith.mulf %192, %177 : vector<4x32xf32>
    %202 = arith.mulf %186, %194 : vector<4x32xf32>
    %203 = arith.addf %201, %202 : vector<4x32xf32>
    %204 = math.tanh %203 : vector<4x32xf32>
    %205 = arith.mulf %200, %204 : vector<4x32xf32>
    %206 = vector.broadcast %26 : vector<4x1xf32> to vector<4x32xf32>
    %207 = arith.mulf %206, %205 : vector<4x32xf32>
    %cst_39 = arith.constant 1.000000e+00 : f32
    %208 = vector.broadcast %cst_39 : f32 to vector<4x1xf32>
    %209 = arith.subf %208, %26 : vector<4x1xf32>
    %210 = vector.broadcast %209 : vector<4x1xf32> to vector<4x32xf32>
    %211 = arith.mulf %210, %170 : vector<4x32xf32>
    %212 = arith.addf %207, %211 : vector<4x32xf32>
    %213 = vector.broadcast %26 : vector<4x1xf32> to vector<4x32xf32>
    %214 = arith.mulf %213, %203 : vector<4x32xf32>
    %cst_40 = arith.constant 1.000000e+00 : f32
    %215 = vector.broadcast %cst_40 : f32 to vector<4x1xf32>
    %216 = arith.subf %215, %26 : vector<4x1xf32>
    %217 = vector.broadcast %216 : vector<4x1xf32> to vector<4x32xf32>
    %218 = arith.mulf %217, %177 : vector<4x32xf32>
    %219 = arith.addf %214, %218 : vector<4x32xf32>
    %220 = vector.extract_strided_slice %51 {offsets = [16, 0], sizes = [4, 128], strides = [1, 1]} : vector<28x128xf32> to vector<4x128xf32>
    %cst_41 = arith.constant dense<0.000000e+00> : vector<4x128xf32>
    %221 = tpu.matmul %212, %47, %cst_41 {dimension_numbers = #tpu.dot_dimension_numbers<[1], [0], [0], [1], [0, 0, 1, 1], [], []>} : vector<4x32xf32>, vector<32x128xf32>, vector<4x128xf32> -> vector<4x128xf32>
    %222 = arith.addf %220, %221 : vector<4x128xf32>
    %223 = vector.extract_strided_slice %222 {offsets = [0, 0], sizes = [4, 32], strides = [1, 1]} : vector<4x128xf32> to vector<4x32xf32>
    %224 = arith.negf %223 : vector<4x32xf32>
    %225 = math.exp %224 : vector<4x32xf32>
    %cst_42 = arith.constant 1.000000e+00 : f32
    %226 = vector.broadcast %cst_42 : f32 to vector<4x32xf32>
    %227 = arith.addf %226, %225 : vector<4x32xf32>
    %228 = arith.divf %226, %227 : vector<4x32xf32>
    %229 = vector.extract_strided_slice %222 {offsets = [0, 32], sizes = [4, 32], strides = [1, 1]} : vector<4x128xf32> to vector<4x32xf32>
    %230 = arith.negf %229 : vector<4x32xf32>
    %231 = math.exp %230 : vector<4x32xf32>
    %cst_43 = arith.constant 1.000000e+00 : f32
    %232 = vector.broadcast %cst_43 : f32 to vector<4x32xf32>
    %233 = arith.addf %232, %231 : vector<4x32xf32>
    %234 = arith.divf %232, %233 : vector<4x32xf32>
    %235 = vector.extract_strided_slice %222 {offsets = [0, 64], sizes = [4, 32], strides = [1, 1]} : vector<4x128xf32> to vector<4x32xf32>
    %236 = math.tanh %235 : vector<4x32xf32>
    %237 = vector.extract_strided_slice %222 {offsets = [0, 96], sizes = [4, 32], strides = [1, 1]} : vector<4x128xf32> to vector<4x32xf32>
    %238 = arith.negf %237 : vector<4x32xf32>
    %239 = math.exp %238 : vector<4x32xf32>
    %cst_44 = arith.constant 1.000000e+00 : f32
    %240 = vector.broadcast %cst_44 : f32 to vector<4x32xf32>
    %241 = arith.addf %240, %239 : vector<4x32xf32>
    %242 = arith.divf %240, %241 : vector<4x32xf32>
    %243 = arith.mulf %234, %219 : vector<4x32xf32>
    %244 = arith.mulf %228, %236 : vector<4x32xf32>
    %245 = arith.addf %243, %244 : vector<4x32xf32>
    %246 = math.tanh %245 : vector<4x32xf32>
    %247 = arith.mulf %242, %246 : vector<4x32xf32>
    %248 = vector.broadcast %32 : vector<4x1xf32> to vector<4x32xf32>
    %249 = arith.mulf %248, %247 : vector<4x32xf32>
    %cst_45 = arith.constant 1.000000e+00 : f32
    %250 = vector.broadcast %cst_45 : f32 to vector<4x1xf32>
    %251 = arith.subf %250, %32 : vector<4x1xf32>
    %252 = vector.broadcast %251 : vector<4x1xf32> to vector<4x32xf32>
    %253 = arith.mulf %252, %212 : vector<4x32xf32>
    %254 = arith.addf %249, %253 : vector<4x32xf32>
    %255 = vector.broadcast %32 : vector<4x1xf32> to vector<4x32xf32>
    %256 = arith.mulf %255, %245 : vector<4x32xf32>
    %cst_46 = arith.constant 1.000000e+00 : f32
    %257 = vector.broadcast %cst_46 : f32 to vector<4x1xf32>
    %258 = arith.subf %257, %32 : vector<4x1xf32>
    %259 = vector.broadcast %258 : vector<4x1xf32> to vector<4x32xf32>
    %260 = arith.mulf %259, %219 : vector<4x32xf32>
    %261 = arith.addf %256, %260 : vector<4x32xf32>
    %262 = vector.extract_strided_slice %51 {offsets = [20, 0], sizes = [4, 128], strides = [1, 1]} : vector<28x128xf32> to vector<4x128xf32>
    %cst_47 = arith.constant dense<0.000000e+00> : vector<4x128xf32>
    %263 = tpu.matmul %254, %47, %cst_47 {dimension_numbers = #tpu.dot_dimension_numbers<[1], [0], [0], [1], [0, 0, 1, 1], [], []>} : vector<4x32xf32>, vector<32x128xf32>, vector<4x128xf32> -> vector<4x128xf32>
    %264 = arith.addf %262, %263 : vector<4x128xf32>
    %265 = vector.extract_strided_slice %264 {offsets = [0, 0], sizes = [4, 32], strides = [1, 1]} : vector<4x128xf32> to vector<4x32xf32>
    %266 = arith.negf %265 : vector<4x32xf32>
    %267 = math.exp %266 : vector<4x32xf32>
    %cst_48 = arith.constant 1.000000e+00 : f32
    %268 = vector.broadcast %cst_48 : f32 to vector<4x32xf32>
    %269 = arith.addf %268, %267 : vector<4x32xf32>
    %270 = arith.divf %268, %269 : vector<4x32xf32>
    %271 = vector.extract_strided_slice %264 {offsets = [0, 32], sizes = [4, 32], strides = [1, 1]} : vector<4x128xf32> to vector<4x32xf32>
    %272 = arith.negf %271 : vector<4x32xf32>
    %273 = math.exp %272 : vector<4x32xf32>
    %cst_49 = arith.constant 1.000000e+00 : f32
    %274 = vector.broadcast %cst_49 : f32 to vector<4x32xf32>
    %275 = arith.addf %274, %273 : vector<4x32xf32>
    %276 = arith.divf %274, %275 : vector<4x32xf32>
    %277 = vector.extract_strided_slice %264 {offsets = [0, 64], sizes = [4, 32], strides = [1, 1]} : vector<4x128xf32> to vector<4x32xf32>
    %278 = math.tanh %277 : vector<4x32xf32>
    %279 = vector.extract_strided_slice %264 {offsets = [0, 96], sizes = [4, 32], strides = [1, 1]} : vector<4x128xf32> to vector<4x32xf32>
    %280 = arith.negf %279 : vector<4x32xf32>
    %281 = math.exp %280 : vector<4x32xf32>
    %cst_50 = arith.constant 1.000000e+00 : f32
    %282 = vector.broadcast %cst_50 : f32 to vector<4x32xf32>
    %283 = arith.addf %282, %281 : vector<4x32xf32>
    %284 = arith.divf %282, %283 : vector<4x32xf32>
    %285 = arith.mulf %276, %261 : vector<4x32xf32>
    %286 = arith.mulf %270, %278 : vector<4x32xf32>
    %287 = arith.addf %285, %286 : vector<4x32xf32>
    %288 = math.tanh %287 : vector<4x32xf32>
    %289 = arith.mulf %284, %288 : vector<4x32xf32>
    %290 = vector.broadcast %38 : vector<4x1xf32> to vector<4x32xf32>
    %291 = arith.mulf %290, %289 : vector<4x32xf32>
    %cst_51 = arith.constant 1.000000e+00 : f32
    %292 = vector.broadcast %cst_51 : f32 to vector<4x1xf32>
    %293 = arith.subf %292, %38 : vector<4x1xf32>
    %294 = vector.broadcast %293 : vector<4x1xf32> to vector<4x32xf32>
    %295 = arith.mulf %294, %254 : vector<4x32xf32>
    %296 = arith.addf %291, %295 : vector<4x32xf32>
    %297 = vector.broadcast %38 : vector<4x1xf32> to vector<4x32xf32>
    %298 = arith.mulf %297, %287 : vector<4x32xf32>
    %cst_52 = arith.constant 1.000000e+00 : f32
    %299 = vector.broadcast %cst_52 : f32 to vector<4x1xf32>
    %300 = arith.subf %299, %38 : vector<4x1xf32>
    %301 = vector.broadcast %300 : vector<4x1xf32> to vector<4x32xf32>
    %302 = arith.mulf %301, %261 : vector<4x32xf32>
    %303 = arith.addf %298, %302 : vector<4x32xf32>
    %304 = vector.extract_strided_slice %51 {offsets = [24, 0], sizes = [4, 128], strides = [1, 1]} : vector<28x128xf32> to vector<4x128xf32>
    %cst_53 = arith.constant dense<0.000000e+00> : vector<4x128xf32>
    %305 = tpu.matmul %296, %47, %cst_53 {dimension_numbers = #tpu.dot_dimension_numbers<[1], [0], [0], [1], [0, 0, 1, 1], [], []>} : vector<4x32xf32>, vector<32x128xf32>, vector<4x128xf32> -> vector<4x128xf32>
    %306 = arith.addf %304, %305 : vector<4x128xf32>
    %307 = vector.extract_strided_slice %306 {offsets = [0, 0], sizes = [4, 32], strides = [1, 1]} : vector<4x128xf32> to vector<4x32xf32>
    %308 = arith.negf %307 : vector<4x32xf32>
    %309 = math.exp %308 : vector<4x32xf32>
    %cst_54 = arith.constant 1.000000e+00 : f32
    %310 = vector.broadcast %cst_54 : f32 to vector<4x32xf32>
    %311 = arith.addf %310, %309 : vector<4x32xf32>
    %312 = arith.divf %310, %311 : vector<4x32xf32>
    %313 = vector.extract_strided_slice %306 {offsets = [0, 32], sizes = [4, 32], strides = [1, 1]} : vector<4x128xf32> to vector<4x32xf32>
    %314 = arith.negf %313 : vector<4x32xf32>
    %315 = math.exp %314 : vector<4x32xf32>
    %cst_55 = arith.constant 1.000000e+00 : f32
    %316 = vector.broadcast %cst_55 : f32 to vector<4x32xf32>
    %317 = arith.addf %316, %315 : vector<4x32xf32>
    %318 = arith.divf %316, %317 : vector<4x32xf32>
    %319 = vector.extract_strided_slice %306 {offsets = [0, 64], sizes = [4, 32], strides = [1, 1]} : vector<4x128xf32> to vector<4x32xf32>
    %320 = math.tanh %319 : vector<4x32xf32>
    %321 = vector.extract_strided_slice %306 {offsets = [0, 96], sizes = [4, 32], strides = [1, 1]} : vector<4x128xf32> to vector<4x32xf32>
    %322 = arith.negf %321 : vector<4x32xf32>
    %323 = math.exp %322 : vector<4x32xf32>
    %cst_56 = arith.constant 1.000000e+00 : f32
    %324 = vector.broadcast %cst_56 : f32 to vector<4x32xf32>
    %325 = arith.addf %324, %323 : vector<4x32xf32>
    %326 = arith.divf %324, %325 : vector<4x32xf32>
    %327 = arith.mulf %318, %303 : vector<4x32xf32>
    %328 = arith.mulf %312, %320 : vector<4x32xf32>
    %329 = arith.addf %327, %328 : vector<4x32xf32>
    %330 = math.tanh %329 : vector<4x32xf32>
    %331 = arith.mulf %326, %330 : vector<4x32xf32>
    %332 = vector.broadcast %44 : vector<4x1xf32> to vector<4x32xf32>
    %333 = arith.mulf %332, %331 : vector<4x32xf32>
    %cst_57 = arith.constant 1.000000e+00 : f32
    %334 = vector.broadcast %cst_57 : f32 to vector<4x1xf32>
    %335 = arith.subf %334, %44 : vector<4x1xf32>
    %336 = vector.broadcast %335 : vector<4x1xf32> to vector<4x32xf32>
    %337 = arith.mulf %336, %296 : vector<4x32xf32>
    %338 = arith.addf %333, %337 : vector<4x32xf32>
    %339 = vector.broadcast %44 : vector<4x1xf32> to vector<4x32xf32>
    %340 = arith.mulf %339, %329 : vector<4x32xf32>
    %cst_58 = arith.constant 1.000000e+00 : f32
    %341 = vector.broadcast %cst_58 : f32 to vector<4x1xf32>
    %342 = arith.subf %341, %44 : vector<4x1xf32>
    %343 = vector.broadcast %342 : vector<4x1xf32> to vector<4x32xf32>
    %344 = arith.mulf %343, %303 : vector<4x32xf32>
    %345 = arith.addf %340, %344 : vector<4x32xf32>
    %346 = tpu.concatenate %86, %128, %170, %212, %254, %296, %338 in 0 : vector<4x32xf32>, vector<4x32xf32>, vector<4x32xf32>, vector<4x32xf32>, vector<4x32xf32>, vector<4x32xf32>, vector<4x32xf32> -> vector<28x32xf32>
    %c0_59 = arith.constant 0 : index
    %c0_60 = arith.constant 0 : index
    %347 = vector.load %arg6[%c0_59, %c0_60] : memref<32x128xf32, #tpu.memory_space<vmem>>, vector<32x128xf32>
    %c0_61 = arith.constant 0 : index
    %c0_62 = arith.constant 0 : index
    %348 = vector.load %arg7[%c0_61, %c0_62] : memref<32x128xf32, #tpu.memory_space<vmem>>, vector<32x128xf32>
    %c0_63 = arith.constant 0 : index
    %c0_64 = arith.constant 0 : index
    %349 = vector.load %arg8[%c0_63, %c0_64] : memref<1x128xf32, #tpu.memory_space<vmem>>, vector<1x128xf32>
    %cst_65 = arith.constant dense<0.000000e+00> : vector<28x128xf32>
    %350 = tpu.matmul %346, %347, %cst_65 {dimension_numbers = #tpu.dot_dimension_numbers<[1], [0], [0], [1], [0, 0, 1, 1], [], []>} : vector<28x32xf32>, vector<32x128xf32>, vector<28x128xf32> -> vector<28x128xf32>
    %351 = vector.broadcast %349 : vector<1x128xf32> to vector<28x128xf32>
    %352 = arith.addf %350, %351 : vector<28x128xf32>
    %353 = vector.extract_strided_slice %352 {offsets = [0, 0], sizes = [4, 128], strides = [1, 1]} : vector<28x128xf32> to vector<4x128xf32>
    %cst_66 = arith.constant dense<0.000000e+00> : vector<4x128xf32>
    %354 = tpu.matmul %2, %348, %cst_66 {dimension_numbers = #tpu.dot_dimension_numbers<[1], [0], [0], [1], [0, 0, 1, 1], [], []>} : vector<4x32xf32>, vector<32x128xf32>, vector<4x128xf32> -> vector<4x128xf32>
    %355 = arith.addf %353, %354 : vector<4x128xf32>
    %356 = vector.extract_strided_slice %355 {offsets = [0, 0], sizes = [4, 32], strides = [1, 1]} : vector<4x128xf32> to vector<4x32xf32>
    %357 = arith.negf %356 : vector<4x32xf32>
    %358 = math.exp %357 : vector<4x32xf32>
    %cst_67 = arith.constant 1.000000e+00 : f32
    %359 = vector.broadcast %cst_67 : f32 to vector<4x32xf32>
    %360 = arith.addf %359, %358 : vector<4x32xf32>
    %361 = arith.divf %359, %360 : vector<4x32xf32>
    %362 = vector.extract_strided_slice %355 {offsets = [0, 32], sizes = [4, 32], strides = [1, 1]} : vector<4x128xf32> to vector<4x32xf32>
    %363 = arith.negf %362 : vector<4x32xf32>
    %364 = math.exp %363 : vector<4x32xf32>
    %cst_68 = arith.constant 1.000000e+00 : f32
    %365 = vector.broadcast %cst_68 : f32 to vector<4x32xf32>
    %366 = arith.addf %365, %364 : vector<4x32xf32>
    %367 = arith.divf %365, %366 : vector<4x32xf32>
    %368 = vector.extract_strided_slice %355 {offsets = [0, 64], sizes = [4, 32], strides = [1, 1]} : vector<4x128xf32> to vector<4x32xf32>
    %369 = math.tanh %368 : vector<4x32xf32>
    %370 = vector.extract_strided_slice %355 {offsets = [0, 96], sizes = [4, 32], strides = [1, 1]} : vector<4x128xf32> to vector<4x32xf32>
    %371 = arith.negf %370 : vector<4x32xf32>
    %372 = math.exp %371 : vector<4x32xf32>
    %cst_69 = arith.constant 1.000000e+00 : f32
    %373 = vector.broadcast %cst_69 : f32 to vector<4x32xf32>
    %374 = arith.addf %373, %372 : vector<4x32xf32>
    %375 = arith.divf %373, %374 : vector<4x32xf32>
    %376 = arith.mulf %367, %2 : vector<4x32xf32>
    %377 = arith.mulf %361, %369 : vector<4x32xf32>
    %378 = arith.addf %376, %377 : vector<4x32xf32>
    %379 = math.tanh %378 : vector<4x32xf32>
    %380 = arith.mulf %375, %379 : vector<4x32xf32>
    %381 = vector.broadcast %8 : vector<4x1xf32> to vector<4x32xf32>
    %382 = arith.mulf %381, %380 : vector<4x32xf32>
    %cst_70 = arith.constant 1.000000e+00 : f32
    %383 = vector.broadcast %cst_70 : f32 to vector<4x1xf32>
    %384 = arith.subf %383, %8 : vector<4x1xf32>
    %385 = vector.broadcast %384 : vector<4x1xf32> to vector<4x32xf32>
    %386 = arith.mulf %385, %2 : vector<4x32xf32>
    %387 = arith.addf %382, %386 : vector<4x32xf32>
    %388 = vector.broadcast %8 : vector<4x1xf32> to vector<4x32xf32>
    %389 = arith.mulf %388, %378 : vector<4x32xf32>
    %cst_71 = arith.constant 1.000000e+00 : f32
    %390 = vector.broadcast %cst_71 : f32 to vector<4x1xf32>
    %391 = arith.subf %390, %8 : vector<4x1xf32>
    %392 = vector.broadcast %391 : vector<4x1xf32> to vector<4x32xf32>
    %393 = arith.mulf %392, %2 : vector<4x32xf32>
    %394 = arith.addf %389, %393 : vector<4x32xf32>
    %395 = vector.extract_strided_slice %352 {offsets = [4, 0], sizes = [4, 128], strides = [1, 1]} : vector<28x128xf32> to vector<4x128xf32>
    %cst_72 = arith.constant dense<0.000000e+00> : vector<4x128xf32>
    %396 = tpu.matmul %387, %348, %cst_72 {dimension_numbers = #tpu.dot_dimension_numbers<[1], [0], [0], [1], [0, 0, 1, 1], [], []>} : vector<4x32xf32>, vector<32x128xf32>, vector<4x128xf32> -> vector<4x128xf32>
    %397 = arith.addf %395, %396 : vector<4x128xf32>
    %398 = vector.extract_strided_slice %397 {offsets = [0, 0], sizes = [4, 32], strides = [1, 1]} : vector<4x128xf32> to vector<4x32xf32>
    %399 = arith.negf %398 : vector<4x32xf32>
    %400 = math.exp %399 : vector<4x32xf32>
    %cst_73 = arith.constant 1.000000e+00 : f32
    %401 = vector.broadcast %cst_73 : f32 to vector<4x32xf32>
    %402 = arith.addf %401, %400 : vector<4x32xf32>
    %403 = arith.divf %401, %402 : vector<4x32xf32>
    %404 = vector.extract_strided_slice %397 {offsets = [0, 32], sizes = [4, 32], strides = [1, 1]} : vector<4x128xf32> to vector<4x32xf32>
    %405 = arith.negf %404 : vector<4x32xf32>
    %406 = math.exp %405 : vector<4x32xf32>
    %cst_74 = arith.constant 1.000000e+00 : f32
    %407 = vector.broadcast %cst_74 : f32 to vector<4x32xf32>
    %408 = arith.addf %407, %406 : vector<4x32xf32>
    %409 = arith.divf %407, %408 : vector<4x32xf32>
    %410 = vector.extract_strided_slice %397 {offsets = [0, 64], sizes = [4, 32], strides = [1, 1]} : vector<4x128xf32> to vector<4x32xf32>
    %411 = math.tanh %410 : vector<4x32xf32>
    %412 = vector.extract_strided_slice %397 {offsets = [0, 96], sizes = [4, 32], strides = [1, 1]} : vector<4x128xf32> to vector<4x32xf32>
    %413 = arith.negf %412 : vector<4x32xf32>
    %414 = math.exp %413 : vector<4x32xf32>
    %cst_75 = arith.constant 1.000000e+00 : f32
    %415 = vector.broadcast %cst_75 : f32 to vector<4x32xf32>
    %416 = arith.addf %415, %414 : vector<4x32xf32>
    %417 = arith.divf %415, %416 : vector<4x32xf32>
    %418 = arith.mulf %409, %394 : vector<4x32xf32>
    %419 = arith.mulf %403, %411 : vector<4x32xf32>
    %420 = arith.addf %418, %419 : vector<4x32xf32>
    %421 = math.tanh %420 : vector<4x32xf32>
    %422 = arith.mulf %417, %421 : vector<4x32xf32>
    %423 = vector.broadcast %14 : vector<4x1xf32> to vector<4x32xf32>
    %424 = arith.mulf %423, %422 : vector<4x32xf32>
    %cst_76 = arith.constant 1.000000e+00 : f32
    %425 = vector.broadcast %cst_76 : f32 to vector<4x1xf32>
    %426 = arith.subf %425, %14 : vector<4x1xf32>
    %427 = vector.broadcast %426 : vector<4x1xf32> to vector<4x32xf32>
    %428 = arith.mulf %427, %387 : vector<4x32xf32>
    %429 = arith.addf %424, %428 : vector<4x32xf32>
    %430 = vector.broadcast %14 : vector<4x1xf32> to vector<4x32xf32>
    %431 = arith.mulf %430, %420 : vector<4x32xf32>
    %cst_77 = arith.constant 1.000000e+00 : f32
    %432 = vector.broadcast %cst_77 : f32 to vector<4x1xf32>
    %433 = arith.subf %432, %14 : vector<4x1xf32>
    %434 = vector.broadcast %433 : vector<4x1xf32> to vector<4x32xf32>
    %435 = arith.mulf %434, %394 : vector<4x32xf32>
    %436 = arith.addf %431, %435 : vector<4x32xf32>
    %437 = vector.extract_strided_slice %352 {offsets = [8, 0], sizes = [4, 128], strides = [1, 1]} : vector<28x128xf32> to vector<4x128xf32>
    %cst_78 = arith.constant dense<0.000000e+00> : vector<4x128xf32>
    %438 = tpu.matmul %429, %348, %cst_78 {dimension_numbers = #tpu.dot_dimension_numbers<[1], [0], [0], [1], [0, 0, 1, 1], [], []>} : vector<4x32xf32>, vector<32x128xf32>, vector<4x128xf32> -> vector<4x128xf32>
    %439 = arith.addf %437, %438 : vector<4x128xf32>
    %440 = vector.extract_strided_slice %439 {offsets = [0, 0], sizes = [4, 32], strides = [1, 1]} : vector<4x128xf32> to vector<4x32xf32>
    %441 = arith.negf %440 : vector<4x32xf32>
    %442 = math.exp %441 : vector<4x32xf32>
    %cst_79 = arith.constant 1.000000e+00 : f32
    %443 = vector.broadcast %cst_79 : f32 to vector<4x32xf32>
    %444 = arith.addf %443, %442 : vector<4x32xf32>
    %445 = arith.divf %443, %444 : vector<4x32xf32>
    %446 = vector.extract_strided_slice %439 {offsets = [0, 32], sizes = [4, 32], strides = [1, 1]} : vector<4x128xf32> to vector<4x32xf32>
    %447 = arith.negf %446 : vector<4x32xf32>
    %448 = math.exp %447 : vector<4x32xf32>
    %cst_80 = arith.constant 1.000000e+00 : f32
    %449 = vector.broadcast %cst_80 : f32 to vector<4x32xf32>
    %450 = arith.addf %449, %448 : vector<4x32xf32>
    %451 = arith.divf %449, %450 : vector<4x32xf32>
    %452 = vector.extract_strided_slice %439 {offsets = [0, 64], sizes = [4, 32], strides = [1, 1]} : vector<4x128xf32> to vector<4x32xf32>
    %453 = math.tanh %452 : vector<4x32xf32>
    %454 = vector.extract_strided_slice %439 {offsets = [0, 96], sizes = [4, 32], strides = [1, 1]} : vector<4x128xf32> to vector<4x32xf32>
    %455 = arith.negf %454 : vector<4x32xf32>
    %456 = math.exp %455 : vector<4x32xf32>
    %cst_81 = arith.constant 1.000000e+00 : f32
    %457 = vector.broadcast %cst_81 : f32 to vector<4x32xf32>
    %458 = arith.addf %457, %456 : vector<4x32xf32>
    %459 = arith.divf %457, %458 : vector<4x32xf32>
    %460 = arith.mulf %451, %436 : vector<4x32xf32>
    %461 = arith.mulf %445, %453 : vector<4x32xf32>
    %462 = arith.addf %460, %461 : vector<4x32xf32>
    %463 = math.tanh %462 : vector<4x32xf32>
    %464 = arith.mulf %459, %463 : vector<4x32xf32>
    %465 = vector.broadcast %20 : vector<4x1xf32> to vector<4x32xf32>
    %466 = arith.mulf %465, %464 : vector<4x32xf32>
    %cst_82 = arith.constant 1.000000e+00 : f32
    %467 = vector.broadcast %cst_82 : f32 to vector<4x1xf32>
    %468 = arith.subf %467, %20 : vector<4x1xf32>
    %469 = vector.broadcast %468 : vector<4x1xf32> to vector<4x32xf32>
    %470 = arith.mulf %469, %429 : vector<4x32xf32>
    %471 = arith.addf %466, %470 : vector<4x32xf32>
    %472 = vector.broadcast %20 : vector<4x1xf32> to vector<4x32xf32>
    %473 = arith.mulf %472, %462 : vector<4x32xf32>
    %cst_83 = arith.constant 1.000000e+00 : f32
    %474 = vector.broadcast %cst_83 : f32 to vector<4x1xf32>
    %475 = arith.subf %474, %20 : vector<4x1xf32>
    %476 = vector.broadcast %475 : vector<4x1xf32> to vector<4x32xf32>
    %477 = arith.mulf %476, %436 : vector<4x32xf32>
    %478 = arith.addf %473, %477 : vector<4x32xf32>
    %479 = vector.extract_strided_slice %352 {offsets = [12, 0], sizes = [4, 128], strides = [1, 1]} : vector<28x128xf32> to vector<4x128xf32>
    %cst_84 = arith.constant dense<0.000000e+00> : vector<4x128xf32>
    %480 = tpu.matmul %471, %348, %cst_84 {dimension_numbers = #tpu.dot_dimension_numbers<[1], [0], [0], [1], [0, 0, 1, 1], [], []>} : vector<4x32xf32>, vector<32x128xf32>, vector<4x128xf32> -> vector<4x128xf32>
    %481 = arith.addf %479, %480 : vector<4x128xf32>
    %482 = vector.extract_strided_slice %481 {offsets = [0, 0], sizes = [4, 32], strides = [1, 1]} : vector<4x128xf32> to vector<4x32xf32>
    %483 = arith.negf %482 : vector<4x32xf32>
    %484 = math.exp %483 : vector<4x32xf32>
    %cst_85 = arith.constant 1.000000e+00 : f32
    %485 = vector.broadcast %cst_85 : f32 to vector<4x32xf32>
    %486 = arith.addf %485, %484 : vector<4x32xf32>
    %487 = arith.divf %485, %486 : vector<4x32xf32>
    %488 = vector.extract_strided_slice %481 {offsets = [0, 32], sizes = [4, 32], strides = [1, 1]} : vector<4x128xf32> to vector<4x32xf32>
    %489 = arith.negf %488 : vector<4x32xf32>
    %490 = math.exp %489 : vector<4x32xf32>
    %cst_86 = arith.constant 1.000000e+00 : f32
    %491 = vector.broadcast %cst_86 : f32 to vector<4x32xf32>
    %492 = arith.addf %491, %490 : vector<4x32xf32>
    %493 = arith.divf %491, %492 : vector<4x32xf32>
    %494 = vector.extract_strided_slice %481 {offsets = [0, 64], sizes = [4, 32], strides = [1, 1]} : vector<4x128xf32> to vector<4x32xf32>
    %495 = math.tanh %494 : vector<4x32xf32>
    %496 = vector.extract_strided_slice %481 {offsets = [0, 96], sizes = [4, 32], strides = [1, 1]} : vector<4x128xf32> to vector<4x32xf32>
    %497 = arith.negf %496 : vector<4x32xf32>
    %498 = math.exp %497 : vector<4x32xf32>
    %cst_87 = arith.constant 1.000000e+00 : f32
    %499 = vector.broadcast %cst_87 : f32 to vector<4x32xf32>
    %500 = arith.addf %499, %498 : vector<4x32xf32>
    %501 = arith.divf %499, %500 : vector<4x32xf32>
    %502 = arith.mulf %493, %478 : vector<4x32xf32>
    %503 = arith.mulf %487, %495 : vector<4x32xf32>
    %504 = arith.addf %502, %503 : vector<4x32xf32>
    %505 = math.tanh %504 : vector<4x32xf32>
    %506 = arith.mulf %501, %505 : vector<4x32xf32>
    %507 = vector.broadcast %26 : vector<4x1xf32> to vector<4x32xf32>
    %508 = arith.mulf %507, %506 : vector<4x32xf32>
    %cst_88 = arith.constant 1.000000e+00 : f32
    %509 = vector.broadcast %cst_88 : f32 to vector<4x1xf32>
    %510 = arith.subf %509, %26 : vector<4x1xf32>
    %511 = vector.broadcast %510 : vector<4x1xf32> to vector<4x32xf32>
    %512 = arith.mulf %511, %471 : vector<4x32xf32>
    %513 = arith.addf %508, %512 : vector<4x32xf32>
    %514 = vector.broadcast %26 : vector<4x1xf32> to vector<4x32xf32>
    %515 = arith.mulf %514, %504 : vector<4x32xf32>
    %cst_89 = arith.constant 1.000000e+00 : f32
    %516 = vector.broadcast %cst_89 : f32 to vector<4x1xf32>
    %517 = arith.subf %516, %26 : vector<4x1xf32>
    %518 = vector.broadcast %517 : vector<4x1xf32> to vector<4x32xf32>
    %519 = arith.mulf %518, %478 : vector<4x32xf32>
    %520 = arith.addf %515, %519 : vector<4x32xf32>
    %521 = vector.extract_strided_slice %352 {offsets = [16, 0], sizes = [4, 128], strides = [1, 1]} : vector<28x128xf32> to vector<4x128xf32>
    %cst_90 = arith.constant dense<0.000000e+00> : vector<4x128xf32>
    %522 = tpu.matmul %513, %348, %cst_90 {dimension_numbers = #tpu.dot_dimension_numbers<[1], [0], [0], [1], [0, 0, 1, 1], [], []>} : vector<4x32xf32>, vector<32x128xf32>, vector<4x128xf32> -> vector<4x128xf32>
    %523 = arith.addf %521, %522 : vector<4x128xf32>
    %524 = vector.extract_strided_slice %523 {offsets = [0, 0], sizes = [4, 32], strides = [1, 1]} : vector<4x128xf32> to vector<4x32xf32>
    %525 = arith.negf %524 : vector<4x32xf32>
    %526 = math.exp %525 : vector<4x32xf32>
    %cst_91 = arith.constant 1.000000e+00 : f32
    %527 = vector.broadcast %cst_91 : f32 to vector<4x32xf32>
    %528 = arith.addf %527, %526 : vector<4x32xf32>
    %529 = arith.divf %527, %528 : vector<4x32xf32>
    %530 = vector.extract_strided_slice %523 {offsets = [0, 32], sizes = [4, 32], strides = [1, 1]} : vector<4x128xf32> to vector<4x32xf32>
    %531 = arith.negf %530 : vector<4x32xf32>
    %532 = math.exp %531 : vector<4x32xf32>
    %cst_92 = arith.constant 1.000000e+00 : f32
    %533 = vector.broadcast %cst_92 : f32 to vector<4x32xf32>
    %534 = arith.addf %533, %532 : vector<4x32xf32>
    %535 = arith.divf %533, %534 : vector<4x32xf32>
    %536 = vector.extract_strided_slice %523 {offsets = [0, 64], sizes = [4, 32], strides = [1, 1]} : vector<4x128xf32> to vector<4x32xf32>
    %537 = math.tanh %536 : vector<4x32xf32>
    %538 = vector.extract_strided_slice %523 {offsets = [0, 96], sizes = [4, 32], strides = [1, 1]} : vector<4x128xf32> to vector<4x32xf32>
    %539 = arith.negf %538 : vector<4x32xf32>
    %540 = math.exp %539 : vector<4x32xf32>
    %cst_93 = arith.constant 1.000000e+00 : f32
    %541 = vector.broadcast %cst_93 : f32 to vector<4x32xf32>
    %542 = arith.addf %541, %540 : vector<4x32xf32>
    %543 = arith.divf %541, %542 : vector<4x32xf32>
    %544 = arith.mulf %535, %520 : vector<4x32xf32>
    %545 = arith.mulf %529, %537 : vector<4x32xf32>
    %546 = arith.addf %544, %545 : vector<4x32xf32>
    %547 = math.tanh %546 : vector<4x32xf32>
    %548 = arith.mulf %543, %547 : vector<4x32xf32>
    %549 = vector.broadcast %32 : vector<4x1xf32> to vector<4x32xf32>
    %550 = arith.mulf %549, %548 : vector<4x32xf32>
    %cst_94 = arith.constant 1.000000e+00 : f32
    %551 = vector.broadcast %cst_94 : f32 to vector<4x1xf32>
    %552 = arith.subf %551, %32 : vector<4x1xf32>
    %553 = vector.broadcast %552 : vector<4x1xf32> to vector<4x32xf32>
    %554 = arith.mulf %553, %513 : vector<4x32xf32>
    %555 = arith.addf %550, %554 : vector<4x32xf32>
    %556 = vector.broadcast %32 : vector<4x1xf32> to vector<4x32xf32>
    %557 = arith.mulf %556, %546 : vector<4x32xf32>
    %cst_95 = arith.constant 1.000000e+00 : f32
    %558 = vector.broadcast %cst_95 : f32 to vector<4x1xf32>
    %559 = arith.subf %558, %32 : vector<4x1xf32>
    %560 = vector.broadcast %559 : vector<4x1xf32> to vector<4x32xf32>
    %561 = arith.mulf %560, %520 : vector<4x32xf32>
    %562 = arith.addf %557, %561 : vector<4x32xf32>
    %563 = vector.extract_strided_slice %352 {offsets = [20, 0], sizes = [4, 128], strides = [1, 1]} : vector<28x128xf32> to vector<4x128xf32>
    %cst_96 = arith.constant dense<0.000000e+00> : vector<4x128xf32>
    %564 = tpu.matmul %555, %348, %cst_96 {dimension_numbers = #tpu.dot_dimension_numbers<[1], [0], [0], [1], [0, 0, 1, 1], [], []>} : vector<4x32xf32>, vector<32x128xf32>, vector<4x128xf32> -> vector<4x128xf32>
    %565 = arith.addf %563, %564 : vector<4x128xf32>
    %566 = vector.extract_strided_slice %565 {offsets = [0, 0], sizes = [4, 32], strides = [1, 1]} : vector<4x128xf32> to vector<4x32xf32>
    %567 = arith.negf %566 : vector<4x32xf32>
    %568 = math.exp %567 : vector<4x32xf32>
    %cst_97 = arith.constant 1.000000e+00 : f32
    %569 = vector.broadcast %cst_97 : f32 to vector<4x32xf32>
    %570 = arith.addf %569, %568 : vector<4x32xf32>
    %571 = arith.divf %569, %570 : vector<4x32xf32>
    %572 = vector.extract_strided_slice %565 {offsets = [0, 32], sizes = [4, 32], strides = [1, 1]} : vector<4x128xf32> to vector<4x32xf32>
    %573 = arith.negf %572 : vector<4x32xf32>
    %574 = math.exp %573 : vector<4x32xf32>
    %cst_98 = arith.constant 1.000000e+00 : f32
    %575 = vector.broadcast %cst_98 : f32 to vector<4x32xf32>
    %576 = arith.addf %575, %574 : vector<4x32xf32>
    %577 = arith.divf %575, %576 : vector<4x32xf32>
    %578 = vector.extract_strided_slice %565 {offsets = [0, 64], sizes = [4, 32], strides = [1, 1]} : vector<4x128xf32> to vector<4x32xf32>
    %579 = math.tanh %578 : vector<4x32xf32>
    %580 = vector.extract_strided_slice %565 {offsets = [0, 96], sizes = [4, 32], strides = [1, 1]} : vector<4x128xf32> to vector<4x32xf32>
    %581 = arith.negf %580 : vector<4x32xf32>
    %582 = math.exp %581 : vector<4x32xf32>
    %cst_99 = arith.constant 1.000000e+00 : f32
    %583 = vector.broadcast %cst_99 : f32 to vector<4x32xf32>
    %584 = arith.addf %583, %582 : vector<4x32xf32>
    %585 = arith.divf %583, %584 : vector<4x32xf32>
    %586 = arith.mulf %577, %562 : vector<4x32xf32>
    %587 = arith.mulf %571, %579 : vector<4x32xf32>
    %588 = arith.addf %586, %587 : vector<4x32xf32>
    %589 = math.tanh %588 : vector<4x32xf32>
    %590 = arith.mulf %585, %589 : vector<4x32xf32>
    %591 = vector.broadcast %38 : vector<4x1xf32> to vector<4x32xf32>
    %592 = arith.mulf %591, %590 : vector<4x32xf32>
    %cst_100 = arith.constant 1.000000e+00 : f32
    %593 = vector.broadcast %cst_100 : f32 to vector<4x1xf32>
    %594 = arith.subf %593, %38 : vector<4x1xf32>
    %595 = vector.broadcast %594 : vector<4x1xf32> to vector<4x32xf32>
    %596 = arith.mulf %595, %555 : vector<4x32xf32>
    %597 = arith.addf %592, %596 : vector<4x32xf32>
    %598 = vector.broadcast %38 : vector<4x1xf32> to vector<4x32xf32>
    %599 = arith.mulf %598, %588 : vector<4x32xf32>
    %cst_101 = arith.constant 1.000000e+00 : f32
    %600 = vector.broadcast %cst_101 : f32 to vector<4x1xf32>
    %601 = arith.subf %600, %38 : vector<4x1xf32>
    %602 = vector.broadcast %601 : vector<4x1xf32> to vector<4x32xf32>
    %603 = arith.mulf %602, %562 : vector<4x32xf32>
    %604 = arith.addf %599, %603 : vector<4x32xf32>
    %605 = vector.extract_strided_slice %352 {offsets = [24, 0], sizes = [4, 128], strides = [1, 1]} : vector<28x128xf32> to vector<4x128xf32>
    %cst_102 = arith.constant dense<0.000000e+00> : vector<4x128xf32>
    %606 = tpu.matmul %597, %348, %cst_102 {dimension_numbers = #tpu.dot_dimension_numbers<[1], [0], [0], [1], [0, 0, 1, 1], [], []>} : vector<4x32xf32>, vector<32x128xf32>, vector<4x128xf32> -> vector<4x128xf32>
    %607 = arith.addf %605, %606 : vector<4x128xf32>
    %608 = vector.extract_strided_slice %607 {offsets = [0, 0], sizes = [4, 32], strides = [1, 1]} : vector<4x128xf32> to vector<4x32xf32>
    %609 = arith.negf %608 : vector<4x32xf32>
    %610 = math.exp %609 : vector<4x32xf32>
    %cst_103 = arith.constant 1.000000e+00 : f32
    %611 = vector.broadcast %cst_103 : f32 to vector<4x32xf32>
    %612 = arith.addf %611, %610 : vector<4x32xf32>
    %613 = arith.divf %611, %612 : vector<4x32xf32>
    %614 = vector.extract_strided_slice %607 {offsets = [0, 32], sizes = [4, 32], strides = [1, 1]} : vector<4x128xf32> to vector<4x32xf32>
    %615 = arith.negf %614 : vector<4x32xf32>
    %616 = math.exp %615 : vector<4x32xf32>
    %cst_104 = arith.constant 1.000000e+00 : f32
    %617 = vector.broadcast %cst_104 : f32 to vector<4x32xf32>
    %618 = arith.addf %617, %616 : vector<4x32xf32>
    %619 = arith.divf %617, %618 : vector<4x32xf32>
    %620 = vector.extract_strided_slice %607 {offsets = [0, 64], sizes = [4, 32], strides = [1, 1]} : vector<4x128xf32> to vector<4x32xf32>
    %621 = math.tanh %620 : vector<4x32xf32>
    %622 = vector.extract_strided_slice %607 {offsets = [0, 96], sizes = [4, 32], strides = [1, 1]} : vector<4x128xf32> to vector<4x32xf32>
    %623 = arith.negf %622 : vector<4x32xf32>
    %624 = math.exp %623 : vector<4x32xf32>
    %cst_105 = arith.constant 1.000000e+00 : f32
    %625 = vector.broadcast %cst_105 : f32 to vector<4x32xf32>
    %626 = arith.addf %625, %624 : vector<4x32xf32>
    %627 = arith.divf %625, %626 : vector<4x32xf32>
    %628 = arith.mulf %619, %604 : vector<4x32xf32>
    %629 = arith.mulf %613, %621 : vector<4x32xf32>
    %630 = arith.addf %628, %629 : vector<4x32xf32>
    %631 = math.tanh %630 : vector<4x32xf32>
    %632 = arith.mulf %627, %631 : vector<4x32xf32>
    %633 = vector.broadcast %44 : vector<4x1xf32> to vector<4x32xf32>
    %634 = arith.mulf %633, %632 : vector<4x32xf32>
    %cst_106 = arith.constant 1.000000e+00 : f32
    %635 = vector.broadcast %cst_106 : f32 to vector<4x1xf32>
    %636 = arith.subf %635, %44 : vector<4x1xf32>
    %637 = vector.broadcast %636 : vector<4x1xf32> to vector<4x32xf32>
    %638 = arith.mulf %637, %597 : vector<4x32xf32>
    %639 = arith.addf %634, %638 : vector<4x32xf32>
    %640 = vector.broadcast %44 : vector<4x1xf32> to vector<4x32xf32>
    %641 = arith.mulf %640, %630 : vector<4x32xf32>
    %cst_107 = arith.constant 1.000000e+00 : f32
    %642 = vector.broadcast %cst_107 : f32 to vector<4x1xf32>
    %643 = arith.subf %642, %44 : vector<4x1xf32>
    %644 = vector.broadcast %643 : vector<4x1xf32> to vector<4x32xf32>
    %645 = arith.mulf %644, %604 : vector<4x32xf32>
    %646 = arith.addf %641, %645 : vector<4x32xf32>
    %c0_108 = arith.constant 0 : index
    %c0_109 = arith.constant 0 : index
    %c0_110 = arith.constant 0 : index
    %647 = vector.load %arg20[%c0_108, %c0_109, %c0_110] : memref<2x4x32xf32, #tpu.memory_space<vmem>>, vector<1x4x32xf32>
    %648 = vector.shape_cast %647 : vector<1x4x32xf32> to vector<4x32xf32>
    %649 = vector.shape_cast %338 : vector<4x32xf32> to vector<1x4x32xf32>
    tpu.vector_store %arg20[%c0_108, %c0_109, %c0_110], %649 {strides = array<i32>} : memref<2x4x32xf32, #tpu.memory_space<vmem>>, vector<1x4x32xf32>,
    %c1 = arith.constant 1 : index
    %c0_111 = arith.constant 0 : index
    %c0_112 = arith.constant 0 : index
    %650 = vector.load %arg20[%c1, %c0_111, %c0_112] : memref<2x4x32xf32, #tpu.memory_space<vmem>>, vector<1x4x32xf32>
    %651 = vector.shape_cast %650 : vector<1x4x32xf32> to vector<4x32xf32>
    %652 = vector.shape_cast %639 : vector<4x32xf32> to vector<1x4x32xf32>
    tpu.vector_store %arg20[%c1, %c0_111, %c0_112], %652 {strides = array<i32>} : memref<2x4x32xf32, #tpu.memory_space<vmem>>, vector<1x4x32xf32>,
    %c0_113 = arith.constant 0 : index
    %c0_114 = arith.constant 0 : index
    %c0_115 = arith.constant 0 : index
    %653 = vector.load %arg21[%c0_113, %c0_114, %c0_115] : memref<2x4x32xf32, #tpu.memory_space<vmem>>, vector<1x4x32xf32>
    %654 = vector.shape_cast %653 : vector<1x4x32xf32> to vector<4x32xf32>
    %655 = vector.shape_cast %345 : vector<4x32xf32> to vector<1x4x32xf32>
    tpu.vector_store %arg21[%c0_113, %c0_114, %c0_115], %655 {strides = array<i32>} : memref<2x4x32xf32, #tpu.memory_space<vmem>>, vector<1x4x32xf32>,
    %c1_116 = arith.constant 1 : index
    %c0_117 = arith.constant 0 : index
    %c0_118 = arith.constant 0 : index
    %656 = vector.load %arg21[%c1_116, %c0_117, %c0_118] : memref<2x4x32xf32, #tpu.memory_space<vmem>>, vector<1x4x32xf32>
    %657 = vector.shape_cast %656 : vector<1x4x32xf32> to vector<4x32xf32>
    %658 = vector.shape_cast %646 : vector<4x32xf32> to vector<1x4x32xf32>
    tpu.vector_store %arg21[%c1_116, %c0_117, %c0_118], %658 {strides = array<i32>} : memref<2x4x32xf32, #tpu.memory_space<vmem>>, vector<1x4x32xf32>,
    %c1_i32_119 = arith.constant 1 : i32
    %659 = vector.broadcast %c1_i32_119 : i32 to vector<4x1xi32>
    %660 = arith.subi %1, %659 : vector<4x1xi32>
    %c0_i32_120 = arith.constant 0 : i32
    %661 = vector.broadcast %c0_i32_120 : i32 to vector<4x1xi32>
    %662 = arith.cmpi sgt, %660, %661 : vector<4x1xi32>
    %663 = arith.extui %662 : vector<4x1xi1> to vector<4x1xi32>
    %664 = arith.sitofp %663 : vector<4x1xi32> to vector<4x1xf32>
    %c1_i32_121 = arith.constant 1 : i32
    %665 = vector.broadcast %c1_i32_121 : i32 to vector<4x1xi32>
    %666 = arith.subi %1, %665 : vector<4x1xi32>
    %c1_i32_122 = arith.constant 1 : i32
    %667 = vector.broadcast %c1_i32_122 : i32 to vector<4x1xi32>
    %668 = arith.cmpi sgt, %666, %667 : vector<4x1xi32>
    %669 = arith.extui %668 : vector<4x1xi1> to vector<4x1xi32>
    %670 = arith.sitofp %669 : vector<4x1xi32> to vector<4x1xf32>
    %c1_i32_123 = arith.constant 1 : i32
    %671 = vector.broadcast %c1_i32_123 : i32 to vector<4x1xi32>
    %672 = arith.subi %1, %671 : vector<4x1xi32>
    %c2_i32_124 = arith.constant 2 : i32
    %673 = vector.broadcast %c2_i32_124 : i32 to vector<4x1xi32>
    %674 = arith.cmpi sgt, %672, %673 : vector<4x1xi32>
    %675 = arith.extui %674 : vector<4x1xi1> to vector<4x1xi32>
    %676 = arith.sitofp %675 : vector<4x1xi32> to vector<4x1xf32>
    %c1_i32_125 = arith.constant 1 : i32
    %677 = vector.broadcast %c1_i32_125 : i32 to vector<4x1xi32>
    %678 = arith.subi %1, %677 : vector<4x1xi32>
    %c3_i32_126 = arith.constant 3 : i32
    %679 = vector.broadcast %c3_i32_126 : i32 to vector<4x1xi32>
    %680 = arith.cmpi sgt, %678, %679 : vector<4x1xi32>
    %681 = arith.extui %680 : vector<4x1xi1> to vector<4x1xi32>
    %682 = arith.sitofp %681 : vector<4x1xi32> to vector<4x1xf32>
    %c1_i32_127 = arith.constant 1 : i32
    %683 = vector.broadcast %c1_i32_127 : i32 to vector<4x1xi32>
    %684 = arith.subi %1, %683 : vector<4x1xi32>
    %c4_i32_128 = arith.constant 4 : i32
    %685 = vector.broadcast %c4_i32_128 : i32 to vector<4x1xi32>
    %686 = arith.cmpi sgt, %684, %685 : vector<4x1xi32>
    %687 = arith.extui %686 : vector<4x1xi1> to vector<4x1xi32>
    %688 = arith.sitofp %687 : vector<4x1xi32> to vector<4x1xf32>
    %c1_i32_129 = arith.constant 1 : i32
    %689 = vector.broadcast %c1_i32_129 : i32 to vector<4x1xi32>
    %690 = arith.subi %1, %689 : vector<4x1xi32>
    %c5_i32_130 = arith.constant 5 : i32
    %691 = vector.broadcast %c5_i32_130 : i32 to vector<4x1xi32>
    %692 = arith.cmpi sgt, %690, %691 : vector<4x1xi32>
    %693 = arith.extui %692 : vector<4x1xi1> to vector<4x1xi32>
    %694 = arith.sitofp %693 : vector<4x1xi32> to vector<4x1xf32>
    %c1_i32_131 = arith.constant 1 : i32
    %695 = vector.broadcast %c1_i32_131 : i32 to vector<4x1xi32>
    %696 = arith.subi %1, %695 : vector<4x1xi32>
    %c6_i32_132 = arith.constant 6 : i32
    %697 = vector.broadcast %c6_i32_132 : i32 to vector<4x1xi32>
    %698 = arith.cmpi sgt, %696, %697 : vector<4x1xi32>
    %699 = arith.extui %698 : vector<4x1xi1> to vector<4x1xi32>
    %700 = arith.sitofp %699 : vector<4x1xi32> to vector<4x1xf32>
    %c1_i32_133 = arith.constant 1 : i32
    %701 = vector.broadcast %c1_i32_133 : i32 to vector<4x1xi32>
    %702 = arith.subi %1, %701 : vector<4x1xi32>
    %c7_i32 = arith.constant 7 : i32
    %703 = vector.broadcast %c7_i32 : i32 to vector<4x1xi32>
    %704 = arith.cmpi sgt, %702, %703 : vector<4x1xi32>
    %705 = arith.extui %704 : vector<4x1xi1> to vector<4x1xi32>
    %706 = arith.sitofp %705 : vector<4x1xi32> to vector<4x1xf32>
    %c0_134 = arith.constant 0 : index
    %c0_135 = arith.constant 0 : index
    %707 = vector.load %arg9[%c0_134, %c0_135] : memref<16x128xf32, #tpu.memory_space<vmem>>, vector<16x128xf32>
    %c0_136 = arith.constant 0 : index
    %c0_137 = arith.constant 0 : index
    %708 = vector.load %arg10[%c0_136, %c0_137] : memref<32x128xf32, #tpu.memory_space<vmem>>, vector<32x128xf32>
    %c0_138 = arith.constant 0 : index
    %c0_139 = arith.constant 0 : index
    %709 = vector.load %arg11[%c0_138, %c0_139] : memref<1x128xf32, #tpu.memory_space<vmem>>, vector<1x128xf32>
    %cst_140 = arith.constant dense<0.000000e+00> : vector<32x128xf32>
    %710 = tpu.matmul %0, %707, %cst_140 {dimension_numbers = #tpu.dot_dimension_numbers<[1], [0], [0], [1], [0, 0, 1, 1], [], []>} : vector<32x16xf32>, vector<16x128xf32>, vector<32x128xf32> -> vector<32x128xf32>
    %711 = vector.broadcast %709 : vector<1x128xf32> to vector<32x128xf32>
    %712 = arith.addf %710, %711 : vector<32x128xf32>
    %713 = vector.extract_strided_slice %712 {offsets = [0, 0], sizes = [4, 128], strides = [1, 1]} : vector<32x128xf32> to vector<4x128xf32>
    %cst_141 = arith.constant dense<0.000000e+00> : vector<4x128xf32>
    %714 = tpu.matmul %338, %708, %cst_141 {dimension_numbers = #tpu.dot_dimension_numbers<[1], [0], [0], [1], [0, 0, 1, 1], [], []>} : vector<4x32xf32>, vector<32x128xf32>, vector<4x128xf32> -> vector<4x128xf32>
    %715 = arith.addf %713, %714 : vector<4x128xf32>
    %716 = vector.extract_strided_slice %715 {offsets = [0, 0], sizes = [4, 32], strides = [1, 1]} : vector<4x128xf32> to vector<4x32xf32>
    %717 = arith.negf %716 : vector<4x32xf32>
    %718 = math.exp %717 : vector<4x32xf32>
    %cst_142 = arith.constant 1.000000e+00 : f32
    %719 = vector.broadcast %cst_142 : f32 to vector<4x32xf32>
    %720 = arith.addf %719, %718 : vector<4x32xf32>
    %721 = arith.divf %719, %720 : vector<4x32xf32>
    %722 = vector.extract_strided_slice %715 {offsets = [0, 32], sizes = [4, 32], strides = [1, 1]} : vector<4x128xf32> to vector<4x32xf32>
    %723 = arith.negf %722 : vector<4x32xf32>
    %724 = math.exp %723 : vector<4x32xf32>
    %cst_143 = arith.constant 1.000000e+00 : f32
    %725 = vector.broadcast %cst_143 : f32 to vector<4x32xf32>
    %726 = arith.addf %725, %724 : vector<4x32xf32>
    %727 = arith.divf %725, %726 : vector<4x32xf32>
    %728 = vector.extract_strided_slice %715 {offsets = [0, 64], sizes = [4, 32], strides = [1, 1]} : vector<4x128xf32> to vector<4x32xf32>
    %729 = math.tanh %728 : vector<4x32xf32>
    %730 = vector.extract_strided_slice %715 {offsets = [0, 96], sizes = [4, 32], strides = [1, 1]} : vector<4x128xf32> to vector<4x32xf32>
    %731 = arith.negf %730 : vector<4x32xf32>
    %732 = math.exp %731 : vector<4x32xf32>
    %cst_144 = arith.constant 1.000000e+00 : f32
    %733 = vector.broadcast %cst_144 : f32 to vector<4x32xf32>
    %734 = arith.addf %733, %732 : vector<4x32xf32>
    %735 = arith.divf %733, %734 : vector<4x32xf32>
    %736 = arith.mulf %727, %345 : vector<4x32xf32>
    %737 = arith.mulf %721, %729 : vector<4x32xf32>
    %738 = arith.addf %736, %737 : vector<4x32xf32>
    %739 = math.tanh %738 : vector<4x32xf32>
    %740 = arith.mulf %735, %739 : vector<4x32xf32>
    %741 = vector.broadcast %664 : vector<4x1xf32> to vector<4x32xf32>
    %742 = arith.mulf %741, %740 : vector<4x32xf32>
    %cst_145 = arith.constant 1.000000e+00 : f32
    %743 = vector.broadcast %cst_145 : f32 to vector<4x1xf32>
    %744 = arith.subf %743, %664 : vector<4x1xf32>
    %745 = vector.broadcast %744 : vector<4x1xf32> to vector<4x32xf32>
    %746 = arith.mulf %745, %338 : vector<4x32xf32>
    %747 = arith.addf %742, %746 : vector<4x32xf32>
    %748 = vector.broadcast %664 : vector<4x1xf32> to vector<4x32xf32>
    %749 = arith.mulf %748, %738 : vector<4x32xf32>
    %cst_146 = arith.constant 1.000000e+00 : f32
    %750 = vector.broadcast %cst_146 : f32 to vector<4x1xf32>
    %751 = arith.subf %750, %664 : vector<4x1xf32>
    %752 = vector.broadcast %751 : vector<4x1xf32> to vector<4x32xf32>
    %753 = arith.mulf %752, %345 : vector<4x32xf32>
    %754 = arith.addf %749, %753 : vector<4x32xf32>
    %755 = vector.extract_strided_slice %712 {offsets = [4, 0], sizes = [4, 128], strides = [1, 1]} : vector<32x128xf32> to vector<4x128xf32>
    %cst_147 = arith.constant dense<0.000000e+00> : vector<4x128xf32>
    %756 = tpu.matmul %747, %708, %cst_147 {dimension_numbers = #tpu.dot_dimension_numbers<[1], [0], [0], [1], [0, 0, 1, 1], [], []>} : vector<4x32xf32>, vector<32x128xf32>, vector<4x128xf32> -> vector<4x128xf32>
    %757 = arith.addf %755, %756 : vector<4x128xf32>
    %758 = vector.extract_strided_slice %757 {offsets = [0, 0], sizes = [4, 32], strides = [1, 1]} : vector<4x128xf32> to vector<4x32xf32>
    %759 = arith.negf %758 : vector<4x32xf32>
    %760 = math.exp %759 : vector<4x32xf32>
    %cst_148 = arith.constant 1.000000e+00 : f32
    %761 = vector.broadcast %cst_148 : f32 to vector<4x32xf32>
    %762 = arith.addf %761, %760 : vector<4x32xf32>
    %763 = arith.divf %761, %762 : vector<4x32xf32>
    %764 = vector.extract_strided_slice %757 {offsets = [0, 32], sizes = [4, 32], strides = [1, 1]} : vector<4x128xf32> to vector<4x32xf32>
    %765 = arith.negf %764 : vector<4x32xf32>
    %766 = math.exp %765 : vector<4x32xf32>
    %cst_149 = arith.constant 1.000000e+00 : f32
    %767 = vector.broadcast %cst_149 : f32 to vector<4x32xf32>
    %768 = arith.addf %767, %766 : vector<4x32xf32>
    %769 = arith.divf %767, %768 : vector<4x32xf32>
    %770 = vector.extract_strided_slice %757 {offsets = [0, 64], sizes = [4, 32], strides = [1, 1]} : vector<4x128xf32> to vector<4x32xf32>
    %771 = math.tanh %770 : vector<4x32xf32>
    %772 = vector.extract_strided_slice %757 {offsets = [0, 96], sizes = [4, 32], strides = [1, 1]} : vector<4x128xf32> to vector<4x32xf32>
    %773 = arith.negf %772 : vector<4x32xf32>
    %774 = math.exp %773 : vector<4x32xf32>
    %cst_150 = arith.constant 1.000000e+00 : f32
    %775 = vector.broadcast %cst_150 : f32 to vector<4x32xf32>
    %776 = arith.addf %775, %774 : vector<4x32xf32>
    %777 = arith.divf %775, %776 : vector<4x32xf32>
    %778 = arith.mulf %769, %754 : vector<4x32xf32>
    %779 = arith.mulf %763, %771 : vector<4x32xf32>
    %780 = arith.addf %778, %779 : vector<4x32xf32>
    %781 = math.tanh %780 : vector<4x32xf32>
    %782 = arith.mulf %777, %781 : vector<4x32xf32>
    %783 = vector.broadcast %670 : vector<4x1xf32> to vector<4x32xf32>
    %784 = arith.mulf %783, %782 : vector<4x32xf32>
    %cst_151 = arith.constant 1.000000e+00 : f32
    %785 = vector.broadcast %cst_151 : f32 to vector<4x1xf32>
    %786 = arith.subf %785, %670 : vector<4x1xf32>
    %787 = vector.broadcast %786 : vector<4x1xf32> to vector<4x32xf32>
    %788 = arith.mulf %787, %747 : vector<4x32xf32>
    %789 = arith.addf %784, %788 : vector<4x32xf32>
    %790 = vector.broadcast %670 : vector<4x1xf32> to vector<4x32xf32>
    %791 = arith.mulf %790, %780 : vector<4x32xf32>
    %cst_152 = arith.constant 1.000000e+00 : f32
    %792 = vector.broadcast %cst_152 : f32 to vector<4x1xf32>
    %793 = arith.subf %792, %670 : vector<4x1xf32>
    %794 = vector.broadcast %793 : vector<4x1xf32> to vector<4x32xf32>
    %795 = arith.mulf %794, %754 : vector<4x32xf32>
    %796 = arith.addf %791, %795 : vector<4x32xf32>
    %797 = vector.extract_strided_slice %712 {offsets = [8, 0], sizes = [4, 128], strides = [1, 1]} : vector<32x128xf32> to vector<4x128xf32>
    %cst_153 = arith.constant dense<0.000000e+00> : vector<4x128xf32>
    %798 = tpu.matmul %789, %708, %cst_153 {dimension_numbers = #tpu.dot_dimension_numbers<[1], [0], [0], [1], [0, 0, 1, 1], [], []>} : vector<4x32xf32>, vector<32x128xf32>, vector<4x128xf32> -> vector<4x128xf32>
    %799 = arith.addf %797, %798 : vector<4x128xf32>
    %800 = vector.extract_strided_slice %799 {offsets = [0, 0], sizes = [4, 32], strides = [1, 1]} : vector<4x128xf32> to vector<4x32xf32>
    %801 = arith.negf %800 : vector<4x32xf32>
    %802 = math.exp %801 : vector<4x32xf32>
    %cst_154 = arith.constant 1.000000e+00 : f32
    %803 = vector.broadcast %cst_154 : f32 to vector<4x32xf32>
    %804 = arith.addf %803, %802 : vector<4x32xf32>
    %805 = arith.divf %803, %804 : vector<4x32xf32>
    %806 = vector.extract_strided_slice %799 {offsets = [0, 32], sizes = [4, 32], strides = [1, 1]} : vector<4x128xf32> to vector<4x32xf32>
    %807 = arith.negf %806 : vector<4x32xf32>
    %808 = math.exp %807 : vector<4x32xf32>
    %cst_155 = arith.constant 1.000000e+00 : f32
    %809 = vector.broadcast %cst_155 : f32 to vector<4x32xf32>
    %810 = arith.addf %809, %808 : vector<4x32xf32>
    %811 = arith.divf %809, %810 : vector<4x32xf32>
    %812 = vector.extract_strided_slice %799 {offsets = [0, 64], sizes = [4, 32], strides = [1, 1]} : vector<4x128xf32> to vector<4x32xf32>
    %813 = math.tanh %812 : vector<4x32xf32>
    %814 = vector.extract_strided_slice %799 {offsets = [0, 96], sizes = [4, 32], strides = [1, 1]} : vector<4x128xf32> to vector<4x32xf32>
    %815 = arith.negf %814 : vector<4x32xf32>
    %816 = math.exp %815 : vector<4x32xf32>
    %cst_156 = arith.constant 1.000000e+00 : f32
    %817 = vector.broadcast %cst_156 : f32 to vector<4x32xf32>
    %818 = arith.addf %817, %816 : vector<4x32xf32>
    %819 = arith.divf %817, %818 : vector<4x32xf32>
    %820 = arith.mulf %811, %796 : vector<4x32xf32>
    %821 = arith.mulf %805, %813 : vector<4x32xf32>
    %822 = arith.addf %820, %821 : vector<4x32xf32>
    %823 = math.tanh %822 : vector<4x32xf32>
    %824 = arith.mulf %819, %823 : vector<4x32xf32>
    %825 = vector.broadcast %676 : vector<4x1xf32> to vector<4x32xf32>
    %826 = arith.mulf %825, %824 : vector<4x32xf32>
    %cst_157 = arith.constant 1.000000e+00 : f32
    %827 = vector.broadcast %cst_157 : f32 to vector<4x1xf32>
    %828 = arith.subf %827, %676 : vector<4x1xf32>
    %829 = vector.broadcast %828 : vector<4x1xf32> to vector<4x32xf32>
    %830 = arith.mulf %829, %789 : vector<4x32xf32>
    %831 = arith.addf %826, %830 : vector<4x32xf32>
    %832 = vector.broadcast %676 : vector<4x1xf32> to vector<4x32xf32>
    %833 = arith.mulf %832, %822 : vector<4x32xf32>
    %cst_158 = arith.constant 1.000000e+00 : f32
    %834 = vector.broadcast %cst_158 : f32 to vector<4x1xf32>
    %835 = arith.subf %834, %676 : vector<4x1xf32>
    %836 = vector.broadcast %835 : vector<4x1xf32> to vector<4x32xf32>
    %837 = arith.mulf %836, %796 : vector<4x32xf32>
    %838 = arith.addf %833, %837 : vector<4x32xf32>
    %839 = vector.extract_strided_slice %712 {offsets = [12, 0], sizes = [4, 128], strides = [1, 1]} : vector<32x128xf32> to vector<4x128xf32>
    %cst_159 = arith.constant dense<0.000000e+00> : vector<4x128xf32>
    %840 = tpu.matmul %831, %708, %cst_159 {dimension_numbers = #tpu.dot_dimension_numbers<[1], [0], [0], [1], [0, 0, 1, 1], [], []>} : vector<4x32xf32>, vector<32x128xf32>, vector<4x128xf32> -> vector<4x128xf32>
    %841 = arith.addf %839, %840 : vector<4x128xf32>
    %842 = vector.extract_strided_slice %841 {offsets = [0, 0], sizes = [4, 32], strides = [1, 1]} : vector<4x128xf32> to vector<4x32xf32>
    %843 = arith.negf %842 : vector<4x32xf32>
    %844 = math.exp %843 : vector<4x32xf32>
    %cst_160 = arith.constant 1.000000e+00 : f32
    %845 = vector.broadcast %cst_160 : f32 to vector<4x32xf32>
    %846 = arith.addf %845, %844 : vector<4x32xf32>
    %847 = arith.divf %845, %846 : vector<4x32xf32>
    %848 = vector.extract_strided_slice %841 {offsets = [0, 32], sizes = [4, 32], strides = [1, 1]} : vector<4x128xf32> to vector<4x32xf32>
    %849 = arith.negf %848 : vector<4x32xf32>
    %850 = math.exp %849 : vector<4x32xf32>
    %cst_161 = arith.constant 1.000000e+00 : f32
    %851 = vector.broadcast %cst_161 : f32 to vector<4x32xf32>
    %852 = arith.addf %851, %850 : vector<4x32xf32>
    %853 = arith.divf %851, %852 : vector<4x32xf32>
    %854 = vector.extract_strided_slice %841 {offsets = [0, 64], sizes = [4, 32], strides = [1, 1]} : vector<4x128xf32> to vector<4x32xf32>
    %855 = math.tanh %854 : vector<4x32xf32>
    %856 = vector.extract_strided_slice %841 {offsets = [0, 96], sizes = [4, 32], strides = [1, 1]} : vector<4x128xf32> to vector<4x32xf32>
    %857 = arith.negf %856 : vector<4x32xf32>
    %858 = math.exp %857 : vector<4x32xf32>
    %cst_162 = arith.constant 1.000000e+00 : f32
    %859 = vector.broadcast %cst_162 : f32 to vector<4x32xf32>
    %860 = arith.addf %859, %858 : vector<4x32xf32>
    %861 = arith.divf %859, %860 : vector<4x32xf32>
    %862 = arith.mulf %853, %838 : vector<4x32xf32>
    %863 = arith.mulf %847, %855 : vector<4x32xf32>
    %864 = arith.addf %862, %863 : vector<4x32xf32>
    %865 = math.tanh %864 : vector<4x32xf32>
    %866 = arith.mulf %861, %865 : vector<4x32xf32>
    %867 = vector.broadcast %682 : vector<4x1xf32> to vector<4x32xf32>
    %868 = arith.mulf %867, %866 : vector<4x32xf32>
    %cst_163 = arith.constant 1.000000e+00 : f32
    %869 = vector.broadcast %cst_163 : f32 to vector<4x1xf32>
    %870 = arith.subf %869, %682 : vector<4x1xf32>
    %871 = vector.broadcast %870 : vector<4x1xf32> to vector<4x32xf32>
    %872 = arith.mulf %871, %831 : vector<4x32xf32>
    %873 = arith.addf %868, %872 : vector<4x32xf32>
    %874 = vector.broadcast %682 : vector<4x1xf32> to vector<4x32xf32>
    %875 = arith.mulf %874, %864 : vector<4x32xf32>
    %cst_164 = arith.constant 1.000000e+00 : f32
    %876 = vector.broadcast %cst_164 : f32 to vector<4x1xf32>
    %877 = arith.subf %876, %682 : vector<4x1xf32>
    %878 = vector.broadcast %877 : vector<4x1xf32> to vector<4x32xf32>
    %879 = arith.mulf %878, %838 : vector<4x32xf32>
    %880 = arith.addf %875, %879 : vector<4x32xf32>
    %881 = vector.extract_strided_slice %712 {offsets = [16, 0], sizes = [4, 128], strides = [1, 1]} : vector<32x128xf32> to vector<4x128xf32>
    %cst_165 = arith.constant dense<0.000000e+00> : vector<4x128xf32>
    %882 = tpu.matmul %873, %708, %cst_165 {dimension_numbers = #tpu.dot_dimension_numbers<[1], [0], [0], [1], [0, 0, 1, 1], [], []>} : vector<4x32xf32>, vector<32x128xf32>, vector<4x128xf32> -> vector<4x128xf32>
    %883 = arith.addf %881, %882 : vector<4x128xf32>
    %884 = vector.extract_strided_slice %883 {offsets = [0, 0], sizes = [4, 32], strides = [1, 1]} : vector<4x128xf32> to vector<4x32xf32>
    %885 = arith.negf %884 : vector<4x32xf32>
    %886 = math.exp %885 : vector<4x32xf32>
    %cst_166 = arith.constant 1.000000e+00 : f32
    %887 = vector.broadcast %cst_166 : f32 to vector<4x32xf32>
    %888 = arith.addf %887, %886 : vector<4x32xf32>
    %889 = arith.divf %887, %888 : vector<4x32xf32>
    %890 = vector.extract_strided_slice %883 {offsets = [0, 32], sizes = [4, 32], strides = [1, 1]} : vector<4x128xf32> to vector<4x32xf32>
    %891 = arith.negf %890 : vector<4x32xf32>
    %892 = math.exp %891 : vector<4x32xf32>
    %cst_167 = arith.constant 1.000000e+00 : f32
    %893 = vector.broadcast %cst_167 : f32 to vector<4x32xf32>
    %894 = arith.addf %893, %892 : vector<4x32xf32>
    %895 = arith.divf %893, %894 : vector<4x32xf32>
    %896 = vector.extract_strided_slice %883 {offsets = [0, 64], sizes = [4, 32], strides = [1, 1]} : vector<4x128xf32> to vector<4x32xf32>
    %897 = math.tanh %896 : vector<4x32xf32>
    %898 = vector.extract_strided_slice %883 {offsets = [0, 96], sizes = [4, 32], strides = [1, 1]} : vector<4x128xf32> to vector<4x32xf32>
    %899 = arith.negf %898 : vector<4x32xf32>
    %900 = math.exp %899 : vector<4x32xf32>
    %cst_168 = arith.constant 1.000000e+00 : f32
    %901 = vector.broadcast %cst_168 : f32 to vector<4x32xf32>
    %902 = arith.addf %901, %900 : vector<4x32xf32>
    %903 = arith.divf %901, %902 : vector<4x32xf32>
    %904 = arith.mulf %895, %880 : vector<4x32xf32>
    %905 = arith.mulf %889, %897 : vector<4x32xf32>
    %906 = arith.addf %904, %905 : vector<4x32xf32>
    %907 = math.tanh %906 : vector<4x32xf32>
    %908 = arith.mulf %903, %907 : vector<4x32xf32>
    %909 = vector.broadcast %688 : vector<4x1xf32> to vector<4x32xf32>
    %910 = arith.mulf %909, %908 : vector<4x32xf32>
    %cst_169 = arith.constant 1.000000e+00 : f32
    %911 = vector.broadcast %cst_169 : f32 to vector<4x1xf32>
    %912 = arith.subf %911, %688 : vector<4x1xf32>
    %913 = vector.broadcast %912 : vector<4x1xf32> to vector<4x32xf32>
    %914 = arith.mulf %913, %873 : vector<4x32xf32>
    %915 = arith.addf %910, %914 : vector<4x32xf32>
    %916 = vector.broadcast %688 : vector<4x1xf32> to vector<4x32xf32>
    %917 = arith.mulf %916, %906 : vector<4x32xf32>
    %cst_170 = arith.constant 1.000000e+00 : f32
    %918 = vector.broadcast %cst_170 : f32 to vector<4x1xf32>
    %919 = arith.subf %918, %688 : vector<4x1xf32>
    %920 = vector.broadcast %919 : vector<4x1xf32> to vector<4x32xf32>
    %921 = arith.mulf %920, %880 : vector<4x32xf32>
    %922 = arith.addf %917, %921 : vector<4x32xf32>
    %923 = vector.extract_strided_slice %712 {offsets = [20, 0], sizes = [4, 128], strides = [1, 1]} : vector<32x128xf32> to vector<4x128xf32>
    %cst_171 = arith.constant dense<0.000000e+00> : vector<4x128xf32>
    %924 = tpu.matmul %915, %708, %cst_171 {dimension_numbers = #tpu.dot_dimension_numbers<[1], [0], [0], [1], [0, 0, 1, 1], [], []>} : vector<4x32xf32>, vector<32x128xf32>, vector<4x128xf32> -> vector<4x128xf32>
    %925 = arith.addf %923, %924 : vector<4x128xf32>
    %926 = vector.extract_strided_slice %925 {offsets = [0, 0], sizes = [4, 32], strides = [1, 1]} : vector<4x128xf32> to vector<4x32xf32>
    %927 = arith.negf %926 : vector<4x32xf32>
    %928 = math.exp %927 : vector<4x32xf32>
    %cst_172 = arith.constant 1.000000e+00 : f32
    %929 = vector.broadcast %cst_172 : f32 to vector<4x32xf32>
    %930 = arith.addf %929, %928 : vector<4x32xf32>
    %931 = arith.divf %929, %930 : vector<4x32xf32>
    %932 = vector.extract_strided_slice %925 {offsets = [0, 32], sizes = [4, 32], strides = [1, 1]} : vector<4x128xf32> to vector<4x32xf32>
    %933 = arith.negf %932 : vector<4x32xf32>
    %934 = math.exp %933 : vector<4x32xf32>
    %cst_173 = arith.constant 1.000000e+00 : f32
    %935 = vector.broadcast %cst_173 : f32 to vector<4x32xf32>
    %936 = arith.addf %935, %934 : vector<4x32xf32>
    %937 = arith.divf %935, %936 : vector<4x32xf32>
    %938 = vector.extract_strided_slice %925 {offsets = [0, 64], sizes = [4, 32], strides = [1, 1]} : vector<4x128xf32> to vector<4x32xf32>
    %939 = math.tanh %938 : vector<4x32xf32>
    %940 = vector.extract_strided_slice %925 {offsets = [0, 96], sizes = [4, 32], strides = [1, 1]} : vector<4x128xf32> to vector<4x32xf32>
    %941 = arith.negf %940 : vector<4x32xf32>
    %942 = math.exp %941 : vector<4x32xf32>
    %cst_174 = arith.constant 1.000000e+00 : f32
    %943 = vector.broadcast %cst_174 : f32 to vector<4x32xf32>
    %944 = arith.addf %943, %942 : vector<4x32xf32>
    %945 = arith.divf %943, %944 : vector<4x32xf32>
    %946 = arith.mulf %937, %922 : vector<4x32xf32>
    %947 = arith.mulf %931, %939 : vector<4x32xf32>
    %948 = arith.addf %946, %947 : vector<4x32xf32>
    %949 = math.tanh %948 : vector<4x32xf32>
    %950 = arith.mulf %945, %949 : vector<4x32xf32>
    %951 = vector.broadcast %694 : vector<4x1xf32> to vector<4x32xf32>
    %952 = arith.mulf %951, %950 : vector<4x32xf32>
    %cst_175 = arith.constant 1.000000e+00 : f32
    %953 = vector.broadcast %cst_175 : f32 to vector<4x1xf32>
    %954 = arith.subf %953, %694 : vector<4x1xf32>
    %955 = vector.broadcast %954 : vector<4x1xf32> to vector<4x32xf32>
    %956 = arith.mulf %955, %915 : vector<4x32xf32>
    %957 = arith.addf %952, %956 : vector<4x32xf32>
    %958 = vector.broadcast %694 : vector<4x1xf32> to vector<4x32xf32>
    %959 = arith.mulf %958, %948 : vector<4x32xf32>
    %cst_176 = arith.constant 1.000000e+00 : f32
    %960 = vector.broadcast %cst_176 : f32 to vector<4x1xf32>
    %961 = arith.subf %960, %694 : vector<4x1xf32>
    %962 = vector.broadcast %961 : vector<4x1xf32> to vector<4x32xf32>
    %963 = arith.mulf %962, %922 : vector<4x32xf32>
    %964 = arith.addf %959, %963 : vector<4x32xf32>
    %965 = vector.extract_strided_slice %712 {offsets = [24, 0], sizes = [4, 128], strides = [1, 1]} : vector<32x128xf32> to vector<4x128xf32>
    %cst_177 = arith.constant dense<0.000000e+00> : vector<4x128xf32>
    %966 = tpu.matmul %957, %708, %cst_177 {dimension_numbers = #tpu.dot_dimension_numbers<[1], [0], [0], [1], [0, 0, 1, 1], [], []>} : vector<4x32xf32>, vector<32x128xf32>, vector<4x128xf32> -> vector<4x128xf32>
    %967 = arith.addf %965, %966 : vector<4x128xf32>
    %968 = vector.extract_strided_slice %967 {offsets = [0, 0], sizes = [4, 32], strides = [1, 1]} : vector<4x128xf32> to vector<4x32xf32>
    %969 = arith.negf %968 : vector<4x32xf32>
    %970 = math.exp %969 : vector<4x32xf32>
    %cst_178 = arith.constant 1.000000e+00 : f32
    %971 = vector.broadcast %cst_178 : f32 to vector<4x32xf32>
    %972 = arith.addf %971, %970 : vector<4x32xf32>
    %973 = arith.divf %971, %972 : vector<4x32xf32>
    %974 = vector.extract_strided_slice %967 {offsets = [0, 32], sizes = [4, 32], strides = [1, 1]} : vector<4x128xf32> to vector<4x32xf32>
    %975 = arith.negf %974 : vector<4x32xf32>
    %976 = math.exp %975 : vector<4x32xf32>
    %cst_179 = arith.constant 1.000000e+00 : f32
    %977 = vector.broadcast %cst_179 : f32 to vector<4x32xf32>
    %978 = arith.addf %977, %976 : vector<4x32xf32>
    %979 = arith.divf %977, %978 : vector<4x32xf32>
    %980 = vector.extract_strided_slice %967 {offsets = [0, 64], sizes = [4, 32], strides = [1, 1]} : vector<4x128xf32> to vector<4x32xf32>
    %981 = math.tanh %980 : vector<4x32xf32>
    %982 = vector.extract_strided_slice %967 {offsets = [0, 96], sizes = [4, 32], strides = [1, 1]} : vector<4x128xf32> to vector<4x32xf32>
    %983 = arith.negf %982 : vector<4x32xf32>
    %984 = math.exp %983 : vector<4x32xf32>
    %cst_180 = arith.constant 1.000000e+00 : f32
    %985 = vector.broadcast %cst_180 : f32 to vector<4x32xf32>
    %986 = arith.addf %985, %984 : vector<4x32xf32>
    %987 = arith.divf %985, %986 : vector<4x32xf32>
    %988 = arith.mulf %979, %964 : vector<4x32xf32>
    %989 = arith.mulf %973, %981 : vector<4x32xf32>
    %990 = arith.addf %988, %989 : vector<4x32xf32>
    %991 = math.tanh %990 : vector<4x32xf32>
    %992 = arith.mulf %987, %991 : vector<4x32xf32>
    %993 = vector.broadcast %700 : vector<4x1xf32> to vector<4x32xf32>
    %994 = arith.mulf %993, %992 : vector<4x32xf32>
    %cst_181 = arith.constant 1.000000e+00 : f32
    %995 = vector.broadcast %cst_181 : f32 to vector<4x1xf32>
    %996 = arith.subf %995, %700 : vector<4x1xf32>
    %997 = vector.broadcast %996 : vector<4x1xf32> to vector<4x32xf32>
    %998 = arith.mulf %997, %957 : vector<4x32xf32>
    %999 = arith.addf %994, %998 : vector<4x32xf32>
    %1000 = vector.broadcast %700 : vector<4x1xf32> to vector<4x32xf32>
    %1001 = arith.mulf %1000, %990 : vector<4x32xf32>
    %cst_182 = arith.constant 1.000000e+00 : f32
    %1002 = vector.broadcast %cst_182 : f32 to vector<4x1xf32>
    %1003 = arith.subf %1002, %700 : vector<4x1xf32>
    %1004 = vector.broadcast %1003 : vector<4x1xf32> to vector<4x32xf32>
    %1005 = arith.mulf %1004, %964 : vector<4x32xf32>
    %1006 = arith.addf %1001, %1005 : vector<4x32xf32>
    %1007 = vector.extract_strided_slice %712 {offsets = [28, 0], sizes = [4, 128], strides = [1, 1]} : vector<32x128xf32> to vector<4x128xf32>
    %cst_183 = arith.constant dense<0.000000e+00> : vector<4x128xf32>
    %1008 = tpu.matmul %999, %708, %cst_183 {dimension_numbers = #tpu.dot_dimension_numbers<[1], [0], [0], [1], [0, 0, 1, 1], [], []>} : vector<4x32xf32>, vector<32x128xf32>, vector<4x128xf32> -> vector<4x128xf32>
    %1009 = arith.addf %1007, %1008 : vector<4x128xf32>
    %1010 = vector.extract_strided_slice %1009 {offsets = [0, 0], sizes = [4, 32], strides = [1, 1]} : vector<4x128xf32> to vector<4x32xf32>
    %1011 = arith.negf %1010 : vector<4x32xf32>
    %1012 = math.exp %1011 : vector<4x32xf32>
    %cst_184 = arith.constant 1.000000e+00 : f32
    %1013 = vector.broadcast %cst_184 : f32 to vector<4x32xf32>
    %1014 = arith.addf %1013, %1012 : vector<4x32xf32>
    %1015 = arith.divf %1013, %1014 : vector<4x32xf32>
    %1016 = vector.extract_strided_slice %1009 {offsets = [0, 32], sizes = [4, 32], strides = [1, 1]} : vector<4x128xf32> to vector<4x32xf32>
    %1017 = arith.negf %1016 : vector<4x32xf32>
    %1018 = math.exp %1017 : vector<4x32xf32>
    %cst_185 = arith.constant 1.000000e+00 : f32
    %1019 = vector.broadcast %cst_185 : f32 to vector<4x32xf32>
    %1020 = arith.addf %1019, %1018 : vector<4x32xf32>
    %1021 = arith.divf %1019, %1020 : vector<4x32xf32>
    %1022 = vector.extract_strided_slice %1009 {offsets = [0, 64], sizes = [4, 32], strides = [1, 1]} : vector<4x128xf32> to vector<4x32xf32>
    %1023 = math.tanh %1022 : vector<4x32xf32>
    %1024 = vector.extract_strided_slice %1009 {offsets = [0, 96], sizes = [4, 32], strides = [1, 1]} : vector<4x128xf32> to vector<4x32xf32>
    %1025 = arith.negf %1024 : vector<4x32xf32>
    %1026 = math.exp %1025 : vector<4x32xf32>
    %cst_186 = arith.constant 1.000000e+00 : f32
    %1027 = vector.broadcast %cst_186 : f32 to vector<4x32xf32>
    %1028 = arith.addf %1027, %1026 : vector<4x32xf32>
    %1029 = arith.divf %1027, %1028 : vector<4x32xf32>
    %1030 = arith.mulf %1021, %1006 : vector<4x32xf32>
    %1031 = arith.mulf %1015, %1023 : vector<4x32xf32>
    %1032 = arith.addf %1030, %1031 : vector<4x32xf32>
    %1033 = math.tanh %1032 : vector<4x32xf32>
    %1034 = arith.mulf %1029, %1033 : vector<4x32xf32>
    %1035 = vector.broadcast %706 : vector<4x1xf32> to vector<4x32xf32>
    %1036 = arith.mulf %1035, %1034 : vector<4x32xf32>
    %cst_187 = arith.constant 1.000000e+00 : f32
    %1037 = vector.broadcast %cst_187 : f32 to vector<4x1xf32>
    %1038 = arith.subf %1037, %706 : vector<4x1xf32>
    %1039 = vector.broadcast %1038 : vector<4x1xf32> to vector<4x32xf32>
    %1040 = arith.mulf %1039, %999 : vector<4x32xf32>
    %1041 = arith.addf %1036, %1040 : vector<4x32xf32>
    %1042 = tpu.concatenate %747, %789, %831, %873, %915, %957, %999, %1041 in 0 : vector<4x32xf32>, vector<4x32xf32>, vector<4x32xf32>, vector<4x32xf32>, vector<4x32xf32>, vector<4x32xf32>, vector<4x32xf32>, vector<4x32xf32> -> vector<32x32xf32>
    %c0_188 = arith.constant 0 : index
    %c0_189 = arith.constant 0 : index
    %1043 = vector.load %arg12[%c0_188, %c0_189] : memref<32x128xf32, #tpu.memory_space<vmem>>, vector<32x128xf32>
    %c0_190 = arith.constant 0 : index
    %c0_191 = arith.constant 0 : index
    %1044 = vector.load %arg13[%c0_190, %c0_191] : memref<32x128xf32, #tpu.memory_space<vmem>>, vector<32x128xf32>
    %c0_192 = arith.constant 0 : index
    %c0_193 = arith.constant 0 : index
    %1045 = vector.load %arg14[%c0_192, %c0_193] : memref<1x128xf32, #tpu.memory_space<vmem>>, vector<1x128xf32>
    %cst_194 = arith.constant dense<0.000000e+00> : vector<32x128xf32>
    %1046 = tpu.matmul %1042, %1043, %cst_194 {dimension_numbers = #tpu.dot_dimension_numbers<[1], [0], [0], [1], [0, 0, 1, 1], [], []>} : vector<32x32xf32>, vector<32x128xf32>, vector<32x128xf32> -> vector<32x128xf32>
    %1047 = vector.broadcast %1045 : vector<1x128xf32> to vector<32x128xf32>
    %1048 = arith.addf %1046, %1047 : vector<32x128xf32>
    %1049 = vector.extract_strided_slice %1048 {offsets = [0, 0], sizes = [4, 128], strides = [1, 1]} : vector<32x128xf32> to vector<4x128xf32>
    %cst_195 = arith.constant dense<0.000000e+00> : vector<4x128xf32>
    %1050 = tpu.matmul %639, %1044, %cst_195 {dimension_numbers = #tpu.dot_dimension_numbers<[1], [0], [0], [1], [0, 0, 1, 1], [], []>} : vector<4x32xf32>, vector<32x128xf32>, vector<4x128xf32> -> vector<4x128xf32>
    %1051 = arith.addf %1049, %1050 : vector<4x128xf32>
    %1052 = vector.extract_strided_slice %1051 {offsets = [0, 0], sizes = [4, 32], strides = [1, 1]} : vector<4x128xf32> to vector<4x32xf32>
    %1053 = arith.negf %1052 : vector<4x32xf32>
    %1054 = math.exp %1053 : vector<4x32xf32>
    %cst_196 = arith.constant 1.000000e+00 : f32
    %1055 = vector.broadcast %cst_196 : f32 to vector<4x32xf32>
    %1056 = arith.addf %1055, %1054 : vector<4x32xf32>
    %1057 = arith.divf %1055, %1056 : vector<4x32xf32>
    %1058 = vector.extract_strided_slice %1051 {offsets = [0, 32], sizes = [4, 32], strides = [1, 1]} : vector<4x128xf32> to vector<4x32xf32>
    %1059 = arith.negf %1058 : vector<4x32xf32>
    %1060 = math.exp %1059 : vector<4x32xf32>
    %cst_197 = arith.constant 1.000000e+00 : f32
    %1061 = vector.broadcast %cst_197 : f32 to vector<4x32xf32>
    %1062 = arith.addf %1061, %1060 : vector<4x32xf32>
    %1063 = arith.divf %1061, %1062 : vector<4x32xf32>
    %1064 = vector.extract_strided_slice %1051 {offsets = [0, 64], sizes = [4, 32], strides = [1, 1]} : vector<4x128xf32> to vector<4x32xf32>
    %1065 = math.tanh %1064 : vector<4x32xf32>
    %1066 = vector.extract_strided_slice %1051 {offsets = [0, 96], sizes = [4, 32], strides = [1, 1]} : vector<4x128xf32> to vector<4x32xf32>
    %1067 = arith.negf %1066 : vector<4x32xf32>
    %1068 = math.exp %1067 : vector<4x32xf32>
    %cst_198 = arith.constant 1.000000e+00 : f32
    %1069 = vector.broadcast %cst_198 : f32 to vector<4x32xf32>
    %1070 = arith.addf %1069, %1068 : vector<4x32xf32>
    %1071 = arith.divf %1069, %1070 : vector<4x32xf32>
    %1072 = arith.mulf %1063, %646 : vector<4x32xf32>
    %1073 = arith.mulf %1057, %1065 : vector<4x32xf32>
    %1074 = arith.addf %1072, %1073 : vector<4x32xf32>
    %1075 = math.tanh %1074 : vector<4x32xf32>
    %1076 = arith.mulf %1071, %1075 : vector<4x32xf32>
    %1077 = vector.broadcast %664 : vector<4x1xf32> to vector<4x32xf32>
    %1078 = arith.mulf %1077, %1076 : vector<4x32xf32>
    %cst_199 = arith.constant 1.000000e+00 : f32
    %1079 = vector.broadcast %cst_199 : f32 to vector<4x1xf32>
    %1080 = arith.subf %1079, %664 : vector<4x1xf32>
    %1081 = vector.broadcast %1080 : vector<4x1xf32> to vector<4x32xf32>
    %1082 = arith.mulf %1081, %639 : vector<4x32xf32>
    %1083 = arith.addf %1078, %1082 : vector<4x32xf32>
    %1084 = vector.broadcast %664 : vector<4x1xf32> to vector<4x32xf32>
    %1085 = arith.mulf %1084, %1074 : vector<4x32xf32>
    %cst_200 = arith.constant 1.000000e+00 : f32
    %1086 = vector.broadcast %cst_200 : f32 to vector<4x1xf32>
    %1087 = arith.subf %1086, %664 : vector<4x1xf32>
    %1088 = vector.broadcast %1087 : vector<4x1xf32> to vector<4x32xf32>
    %1089 = arith.mulf %1088, %646 : vector<4x32xf32>
    %1090 = arith.addf %1085, %1089 : vector<4x32xf32>
    %1091 = vector.extract_strided_slice %1048 {offsets = [4, 0], sizes = [4, 128], strides = [1, 1]} : vector<32x128xf32> to vector<4x128xf32>
    %cst_201 = arith.constant dense<0.000000e+00> : vector<4x128xf32>
    %1092 = tpu.matmul %1083, %1044, %cst_201 {dimension_numbers = #tpu.dot_dimension_numbers<[1], [0], [0], [1], [0, 0, 1, 1], [], []>} : vector<4x32xf32>, vector<32x128xf32>, vector<4x128xf32> -> vector<4x128xf32>
    %1093 = arith.addf %1091, %1092 : vector<4x128xf32>
    %1094 = vector.extract_strided_slice %1093 {offsets = [0, 0], sizes = [4, 32], strides = [1, 1]} : vector<4x128xf32> to vector<4x32xf32>
    %1095 = arith.negf %1094 : vector<4x32xf32>
    %1096 = math.exp %1095 : vector<4x32xf32>
    %cst_202 = arith.constant 1.000000e+00 : f32
    %1097 = vector.broadcast %cst_202 : f32 to vector<4x32xf32>
    %1098 = arith.addf %1097, %1096 : vector<4x32xf32>
    %1099 = arith.divf %1097, %1098 : vector<4x32xf32>
    %1100 = vector.extract_strided_slice %1093 {offsets = [0, 32], sizes = [4, 32], strides = [1, 1]} : vector<4x128xf32> to vector<4x32xf32>
    %1101 = arith.negf %1100 : vector<4x32xf32>
    %1102 = math.exp %1101 : vector<4x32xf32>
    %cst_203 = arith.constant 1.000000e+00 : f32
    %1103 = vector.broadcast %cst_203 : f32 to vector<4x32xf32>
    %1104 = arith.addf %1103, %1102 : vector<4x32xf32>
    %1105 = arith.divf %1103, %1104 : vector<4x32xf32>
    %1106 = vector.extract_strided_slice %1093 {offsets = [0, 64], sizes = [4, 32], strides = [1, 1]} : vector<4x128xf32> to vector<4x32xf32>
    %1107 = math.tanh %1106 : vector<4x32xf32>
    %1108 = vector.extract_strided_slice %1093 {offsets = [0, 96], sizes = [4, 32], strides = [1, 1]} : vector<4x128xf32> to vector<4x32xf32>
    %1109 = arith.negf %1108 : vector<4x32xf32>
    %1110 = math.exp %1109 : vector<4x32xf32>
    %cst_204 = arith.constant 1.000000e+00 : f32
    %1111 = vector.broadcast %cst_204 : f32 to vector<4x32xf32>
    %1112 = arith.addf %1111, %1110 : vector<4x32xf32>
    %1113 = arith.divf %1111, %1112 : vector<4x32xf32>
    %1114 = arith.mulf %1105, %1090 : vector<4x32xf32>
    %1115 = arith.mulf %1099, %1107 : vector<4x32xf32>
    %1116 = arith.addf %1114, %1115 : vector<4x32xf32>
    %1117 = math.tanh %1116 : vector<4x32xf32>
    %1118 = arith.mulf %1113, %1117 : vector<4x32xf32>
    %1119 = vector.broadcast %670 : vector<4x1xf32> to vector<4x32xf32>
    %1120 = arith.mulf %1119, %1118 : vector<4x32xf32>
    %cst_205 = arith.constant 1.000000e+00 : f32
    %1121 = vector.broadcast %cst_205 : f32 to vector<4x1xf32>
    %1122 = arith.subf %1121, %670 : vector<4x1xf32>
    %1123 = vector.broadcast %1122 : vector<4x1xf32> to vector<4x32xf32>
    %1124 = arith.mulf %1123, %1083 : vector<4x32xf32>
    %1125 = arith.addf %1120, %1124 : vector<4x32xf32>
    %1126 = vector.broadcast %670 : vector<4x1xf32> to vector<4x32xf32>
    %1127 = arith.mulf %1126, %1116 : vector<4x32xf32>
    %cst_206 = arith.constant 1.000000e+00 : f32
    %1128 = vector.broadcast %cst_206 : f32 to vector<4x1xf32>
    %1129 = arith.subf %1128, %670 : vector<4x1xf32>
    %1130 = vector.broadcast %1129 : vector<4x1xf32> to vector<4x32xf32>
    %1131 = arith.mulf %1130, %1090 : vector<4x32xf32>
    %1132 = arith.addf %1127, %1131 : vector<4x32xf32>
    %1133 = vector.extract_strided_slice %1048 {offsets = [8, 0], sizes = [4, 128], strides = [1, 1]} : vector<32x128xf32> to vector<4x128xf32>
    %cst_207 = arith.constant dense<0.000000e+00> : vector<4x128xf32>
    %1134 = tpu.matmul %1125, %1044, %cst_207 {dimension_numbers = #tpu.dot_dimension_numbers<[1], [0], [0], [1], [0, 0, 1, 1], [], []>} : vector<4x32xf32>, vector<32x128xf32>, vector<4x128xf32> -> vector<4x128xf32>
    %1135 = arith.addf %1133, %1134 : vector<4x128xf32>
    %1136 = vector.extract_strided_slice %1135 {offsets = [0, 0], sizes = [4, 32], strides = [1, 1]} : vector<4x128xf32> to vector<4x32xf32>
    %1137 = arith.negf %1136 : vector<4x32xf32>
    %1138 = math.exp %1137 : vector<4x32xf32>
    %cst_208 = arith.constant 1.000000e+00 : f32
    %1139 = vector.broadcast %cst_208 : f32 to vector<4x32xf32>
    %1140 = arith.addf %1139, %1138 : vector<4x32xf32>
    %1141 = arith.divf %1139, %1140 : vector<4x32xf32>
    %1142 = vector.extract_strided_slice %1135 {offsets = [0, 32], sizes = [4, 32], strides = [1, 1]} : vector<4x128xf32> to vector<4x32xf32>
    %1143 = arith.negf %1142 : vector<4x32xf32>
    %1144 = math.exp %1143 : vector<4x32xf32>
    %cst_209 = arith.constant 1.000000e+00 : f32
    %1145 = vector.broadcast %cst_209 : f32 to vector<4x32xf32>
    %1146 = arith.addf %1145, %1144 : vector<4x32xf32>
    %1147 = arith.divf %1145, %1146 : vector<4x32xf32>
    %1148 = vector.extract_strided_slice %1135 {offsets = [0, 64], sizes = [4, 32], strides = [1, 1]} : vector<4x128xf32> to vector<4x32xf32>
    %1149 = math.tanh %1148 : vector<4x32xf32>
    %1150 = vector.extract_strided_slice %1135 {offsets = [0, 96], sizes = [4, 32], strides = [1, 1]} : vector<4x128xf32> to vector<4x32xf32>
    %1151 = arith.negf %1150 : vector<4x32xf32>
    %1152 = math.exp %1151 : vector<4x32xf32>
    %cst_210 = arith.constant 1.000000e+00 : f32
    %1153 = vector.broadcast %cst_210 : f32 to vector<4x32xf32>
    %1154 = arith.addf %1153, %1152 : vector<4x32xf32>
    %1155 = arith.divf %1153, %1154 : vector<4x32xf32>
    %1156 = arith.mulf %1147, %1132 : vector<4x32xf32>
    %1157 = arith.mulf %1141, %1149 : vector<4x32xf32>
    %1158 = arith.addf %1156, %1157 : vector<4x32xf32>
    %1159 = math.tanh %1158 : vector<4x32xf32>
    %1160 = arith.mulf %1155, %1159 : vector<4x32xf32>
    %1161 = vector.broadcast %676 : vector<4x1xf32> to vector<4x32xf32>
    %1162 = arith.mulf %1161, %1160 : vector<4x32xf32>
    %cst_211 = arith.constant 1.000000e+00 : f32
    %1163 = vector.broadcast %cst_211 : f32 to vector<4x1xf32>
    %1164 = arith.subf %1163, %676 : vector<4x1xf32>
    %1165 = vector.broadcast %1164 : vector<4x1xf32> to vector<4x32xf32>
    %1166 = arith.mulf %1165, %1125 : vector<4x32xf32>
    %1167 = arith.addf %1162, %1166 : vector<4x32xf32>
    %1168 = vector.broadcast %676 : vector<4x1xf32> to vector<4x32xf32>
    %1169 = arith.mulf %1168, %1158 : vector<4x32xf32>
    %cst_212 = arith.constant 1.000000e+00 : f32
    %1170 = vector.broadcast %cst_212 : f32 to vector<4x1xf32>
    %1171 = arith.subf %1170, %676 : vector<4x1xf32>
    %1172 = vector.broadcast %1171 : vector<4x1xf32> to vector<4x32xf32>
    %1173 = arith.mulf %1172, %1132 : vector<4x32xf32>
    %1174 = arith.addf %1169, %1173 : vector<4x32xf32>
    %1175 = vector.extract_strided_slice %1048 {offsets = [12, 0], sizes = [4, 128], strides = [1, 1]} : vector<32x128xf32> to vector<4x128xf32>
    %cst_213 = arith.constant dense<0.000000e+00> : vector<4x128xf32>
    %1176 = tpu.matmul %1167, %1044, %cst_213 {dimension_numbers = #tpu.dot_dimension_numbers<[1], [0], [0], [1], [0, 0, 1, 1], [], []>} : vector<4x32xf32>, vector<32x128xf32>, vector<4x128xf32> -> vector<4x128xf32>
    %1177 = arith.addf %1175, %1176 : vector<4x128xf32>
    %1178 = vector.extract_strided_slice %1177 {offsets = [0, 0], sizes = [4, 32], strides = [1, 1]} : vector<4x128xf32> to vector<4x32xf32>
    %1179 = arith.negf %1178 : vector<4x32xf32>
    %1180 = math.exp %1179 : vector<4x32xf32>
    %cst_214 = arith.constant 1.000000e+00 : f32
    %1181 = vector.broadcast %cst_214 : f32 to vector<4x32xf32>
    %1182 = arith.addf %1181, %1180 : vector<4x32xf32>
    %1183 = arith.divf %1181, %1182 : vector<4x32xf32>
    %1184 = vector.extract_strided_slice %1177 {offsets = [0, 32], sizes = [4, 32], strides = [1, 1]} : vector<4x128xf32> to vector<4x32xf32>
    %1185 = arith.negf %1184 : vector<4x32xf32>
    %1186 = math.exp %1185 : vector<4x32xf32>
    %cst_215 = arith.constant 1.000000e+00 : f32
    %1187 = vector.broadcast %cst_215 : f32 to vector<4x32xf32>
    %1188 = arith.addf %1187, %1186 : vector<4x32xf32>
    %1189 = arith.divf %1187, %1188 : vector<4x32xf32>
    %1190 = vector.extract_strided_slice %1177 {offsets = [0, 64], sizes = [4, 32], strides = [1, 1]} : vector<4x128xf32> to vector<4x32xf32>
    %1191 = math.tanh %1190 : vector<4x32xf32>
    %1192 = vector.extract_strided_slice %1177 {offsets = [0, 96], sizes = [4, 32], strides = [1, 1]} : vector<4x128xf32> to vector<4x32xf32>
    %1193 = arith.negf %1192 : vector<4x32xf32>
    %1194 = math.exp %1193 : vector<4x32xf32>
    %cst_216 = arith.constant 1.000000e+00 : f32
    %1195 = vector.broadcast %cst_216 : f32 to vector<4x32xf32>
    %1196 = arith.addf %1195, %1194 : vector<4x32xf32>
    %1197 = arith.divf %1195, %1196 : vector<4x32xf32>
    %1198 = arith.mulf %1189, %1174 : vector<4x32xf32>
    %1199 = arith.mulf %1183, %1191 : vector<4x32xf32>
    %1200 = arith.addf %1198, %1199 : vector<4x32xf32>
    %1201 = math.tanh %1200 : vector<4x32xf32>
    %1202 = arith.mulf %1197, %1201 : vector<4x32xf32>
    %1203 = vector.broadcast %682 : vector<4x1xf32> to vector<4x32xf32>
    %1204 = arith.mulf %1203, %1202 : vector<4x32xf32>
    %cst_217 = arith.constant 1.000000e+00 : f32
    %1205 = vector.broadcast %cst_217 : f32 to vector<4x1xf32>
    %1206 = arith.subf %1205, %682 : vector<4x1xf32>
    %1207 = vector.broadcast %1206 : vector<4x1xf32> to vector<4x32xf32>
    %1208 = arith.mulf %1207, %1167 : vector<4x32xf32>
    %1209 = arith.addf %1204, %1208 : vector<4x32xf32>
    %1210 = vector.broadcast %682 : vector<4x1xf32> to vector<4x32xf32>
    %1211 = arith.mulf %1210, %1200 : vector<4x32xf32>
    %cst_218 = arith.constant 1.000000e+00 : f32
    %1212 = vector.broadcast %cst_218 : f32 to vector<4x1xf32>
    %1213 = arith.subf %1212, %682 : vector<4x1xf32>
    %1214 = vector.broadcast %1213 : vector<4x1xf32> to vector<4x32xf32>
    %1215 = arith.mulf %1214, %1174 : vector<4x32xf32>
    %1216 = arith.addf %1211, %1215 : vector<4x32xf32>
    %1217 = vector.extract_strided_slice %1048 {offsets = [16, 0], sizes = [4, 128], strides = [1, 1]} : vector<32x128xf32> to vector<4x128xf32>
    %cst_219 = arith.constant dense<0.000000e+00> : vector<4x128xf32>
    %1218 = tpu.matmul %1209, %1044, %cst_219 {dimension_numbers = #tpu.dot_dimension_numbers<[1], [0], [0], [1], [0, 0, 1, 1], [], []>} : vector<4x32xf32>, vector<32x128xf32>, vector<4x128xf32> -> vector<4x128xf32>
    %1219 = arith.addf %1217, %1218 : vector<4x128xf32>
    %1220 = vector.extract_strided_slice %1219 {offsets = [0, 0], sizes = [4, 32], strides = [1, 1]} : vector<4x128xf32> to vector<4x32xf32>
    %1221 = arith.negf %1220 : vector<4x32xf32>
    %1222 = math.exp %1221 : vector<4x32xf32>
    %cst_220 = arith.constant 1.000000e+00 : f32
    %1223 = vector.broadcast %cst_220 : f32 to vector<4x32xf32>
    %1224 = arith.addf %1223, %1222 : vector<4x32xf32>
    %1225 = arith.divf %1223, %1224 : vector<4x32xf32>
    %1226 = vector.extract_strided_slice %1219 {offsets = [0, 32], sizes = [4, 32], strides = [1, 1]} : vector<4x128xf32> to vector<4x32xf32>
    %1227 = arith.negf %1226 : vector<4x32xf32>
    %1228 = math.exp %1227 : vector<4x32xf32>
    %cst_221 = arith.constant 1.000000e+00 : f32
    %1229 = vector.broadcast %cst_221 : f32 to vector<4x32xf32>
    %1230 = arith.addf %1229, %1228 : vector<4x32xf32>
    %1231 = arith.divf %1229, %1230 : vector<4x32xf32>
    %1232 = vector.extract_strided_slice %1219 {offsets = [0, 64], sizes = [4, 32], strides = [1, 1]} : vector<4x128xf32> to vector<4x32xf32>
    %1233 = math.tanh %1232 : vector<4x32xf32>
    %1234 = vector.extract_strided_slice %1219 {offsets = [0, 96], sizes = [4, 32], strides = [1, 1]} : vector<4x128xf32> to vector<4x32xf32>
    %1235 = arith.negf %1234 : vector<4x32xf32>
    %1236 = math.exp %1235 : vector<4x32xf32>
    %cst_222 = arith.constant 1.000000e+00 : f32
    %1237 = vector.broadcast %cst_222 : f32 to vector<4x32xf32>
    %1238 = arith.addf %1237, %1236 : vector<4x32xf32>
    %1239 = arith.divf %1237, %1238 : vector<4x32xf32>
    %1240 = arith.mulf %1231, %1216 : vector<4x32xf32>
    %1241 = arith.mulf %1225, %1233 : vector<4x32xf32>
    %1242 = arith.addf %1240, %1241 : vector<4x32xf32>
    %1243 = math.tanh %1242 : vector<4x32xf32>
    %1244 = arith.mulf %1239, %1243 : vector<4x32xf32>
    %1245 = vector.broadcast %688 : vector<4x1xf32> to vector<4x32xf32>
    %1246 = arith.mulf %1245, %1244 : vector<4x32xf32>
    %cst_223 = arith.constant 1.000000e+00 : f32
    %1247 = vector.broadcast %cst_223 : f32 to vector<4x1xf32>
    %1248 = arith.subf %1247, %688 : vector<4x1xf32>
    %1249 = vector.broadcast %1248 : vector<4x1xf32> to vector<4x32xf32>
    %1250 = arith.mulf %1249, %1209 : vector<4x32xf32>
    %1251 = arith.addf %1246, %1250 : vector<4x32xf32>
    %1252 = vector.broadcast %688 : vector<4x1xf32> to vector<4x32xf32>
    %1253 = arith.mulf %1252, %1242 : vector<4x32xf32>
    %cst_224 = arith.constant 1.000000e+00 : f32
    %1254 = vector.broadcast %cst_224 : f32 to vector<4x1xf32>
    %1255 = arith.subf %1254, %688 : vector<4x1xf32>
    %1256 = vector.broadcast %1255 : vector<4x1xf32> to vector<4x32xf32>
    %1257 = arith.mulf %1256, %1216 : vector<4x32xf32>
    %1258 = arith.addf %1253, %1257 : vector<4x32xf32>
    %1259 = vector.extract_strided_slice %1048 {offsets = [20, 0], sizes = [4, 128], strides = [1, 1]} : vector<32x128xf32> to vector<4x128xf32>
    %cst_225 = arith.constant dense<0.000000e+00> : vector<4x128xf32>
    %1260 = tpu.matmul %1251, %1044, %cst_225 {dimension_numbers = #tpu.dot_dimension_numbers<[1], [0], [0], [1], [0, 0, 1, 1], [], []>} : vector<4x32xf32>, vector<32x128xf32>, vector<4x128xf32> -> vector<4x128xf32>
    %1261 = arith.addf %1259, %1260 : vector<4x128xf32>
    %1262 = vector.extract_strided_slice %1261 {offsets = [0, 0], sizes = [4, 32], strides = [1, 1]} : vector<4x128xf32> to vector<4x32xf32>
    %1263 = arith.negf %1262 : vector<4x32xf32>
    %1264 = math.exp %1263 : vector<4x32xf32>
    %cst_226 = arith.constant 1.000000e+00 : f32
    %1265 = vector.broadcast %cst_226 : f32 to vector<4x32xf32>
    %1266 = arith.addf %1265, %1264 : vector<4x32xf32>
    %1267 = arith.divf %1265, %1266 : vector<4x32xf32>
    %1268 = vector.extract_strided_slice %1261 {offsets = [0, 32], sizes = [4, 32], strides = [1, 1]} : vector<4x128xf32> to vector<4x32xf32>
    %1269 = arith.negf %1268 : vector<4x32xf32>
    %1270 = math.exp %1269 : vector<4x32xf32>
    %cst_227 = arith.constant 1.000000e+00 : f32
    %1271 = vector.broadcast %cst_227 : f32 to vector<4x32xf32>
    %1272 = arith.addf %1271, %1270 : vector<4x32xf32>
    %1273 = arith.divf %1271, %1272 : vector<4x32xf32>
    %1274 = vector.extract_strided_slice %1261 {offsets = [0, 64], sizes = [4, 32], strides = [1, 1]} : vector<4x128xf32> to vector<4x32xf32>
    %1275 = math.tanh %1274 : vector<4x32xf32>
    %1276 = vector.extract_strided_slice %1261 {offsets = [0, 96], sizes = [4, 32], strides = [1, 1]} : vector<4x128xf32> to vector<4x32xf32>
    %1277 = arith.negf %1276 : vector<4x32xf32>
    %1278 = math.exp %1277 : vector<4x32xf32>
    %cst_228 = arith.constant 1.000000e+00 : f32
    %1279 = vector.broadcast %cst_228 : f32 to vector<4x32xf32>
    %1280 = arith.addf %1279, %1278 : vector<4x32xf32>
    %1281 = arith.divf %1279, %1280 : vector<4x32xf32>
    %1282 = arith.mulf %1273, %1258 : vector<4x32xf32>
    %1283 = arith.mulf %1267, %1275 : vector<4x32xf32>
    %1284 = arith.addf %1282, %1283 : vector<4x32xf32>
    %1285 = math.tanh %1284 : vector<4x32xf32>
    %1286 = arith.mulf %1281, %1285 : vector<4x32xf32>
    %1287 = vector.broadcast %694 : vector<4x1xf32> to vector<4x32xf32>
    %1288 = arith.mulf %1287, %1286 : vector<4x32xf32>
    %cst_229 = arith.constant 1.000000e+00 : f32
    %1289 = vector.broadcast %cst_229 : f32 to vector<4x1xf32>
    %1290 = arith.subf %1289, %694 : vector<4x1xf32>
    %1291 = vector.broadcast %1290 : vector<4x1xf32> to vector<4x32xf32>
    %1292 = arith.mulf %1291, %1251 : vector<4x32xf32>
    %1293 = arith.addf %1288, %1292 : vector<4x32xf32>
    %1294 = vector.broadcast %694 : vector<4x1xf32> to vector<4x32xf32>
    %1295 = arith.mulf %1294, %1284 : vector<4x32xf32>
    %cst_230 = arith.constant 1.000000e+00 : f32
    %1296 = vector.broadcast %cst_230 : f32 to vector<4x1xf32>
    %1297 = arith.subf %1296, %694 : vector<4x1xf32>
    %1298 = vector.broadcast %1297 : vector<4x1xf32> to vector<4x32xf32>
    %1299 = arith.mulf %1298, %1258 : vector<4x32xf32>
    %1300 = arith.addf %1295, %1299 : vector<4x32xf32>
    %1301 = vector.extract_strided_slice %1048 {offsets = [24, 0], sizes = [4, 128], strides = [1, 1]} : vector<32x128xf32> to vector<4x128xf32>
    %cst_231 = arith.constant dense<0.000000e+00> : vector<4x128xf32>
    %1302 = tpu.matmul %1293, %1044, %cst_231 {dimension_numbers = #tpu.dot_dimension_numbers<[1], [0], [0], [1], [0, 0, 1, 1], [], []>} : vector<4x32xf32>, vector<32x128xf32>, vector<4x128xf32> -> vector<4x128xf32>
    %1303 = arith.addf %1301, %1302 : vector<4x128xf32>
    %1304 = vector.extract_strided_slice %1303 {offsets = [0, 0], sizes = [4, 32], strides = [1, 1]} : vector<4x128xf32> to vector<4x32xf32>
    %1305 = arith.negf %1304 : vector<4x32xf32>
    %1306 = math.exp %1305 : vector<4x32xf32>
    %cst_232 = arith.constant 1.000000e+00 : f32
    %1307 = vector.broadcast %cst_232 : f32 to vector<4x32xf32>
    %1308 = arith.addf %1307, %1306 : vector<4x32xf32>
    %1309 = arith.divf %1307, %1308 : vector<4x32xf32>
    %1310 = vector.extract_strided_slice %1303 {offsets = [0, 32], sizes = [4, 32], strides = [1, 1]} : vector<4x128xf32> to vector<4x32xf32>
    %1311 = arith.negf %1310 : vector<4x32xf32>
    %1312 = math.exp %1311 : vector<4x32xf32>
    %cst_233 = arith.constant 1.000000e+00 : f32
    %1313 = vector.broadcast %cst_233 : f32 to vector<4x32xf32>
    %1314 = arith.addf %1313, %1312 : vector<4x32xf32>
    %1315 = arith.divf %1313, %1314 : vector<4x32xf32>
    %1316 = vector.extract_strided_slice %1303 {offsets = [0, 64], sizes = [4, 32], strides = [1, 1]} : vector<4x128xf32> to vector<4x32xf32>
    %1317 = math.tanh %1316 : vector<4x32xf32>
    %1318 = vector.extract_strided_slice %1303 {offsets = [0, 96], sizes = [4, 32], strides = [1, 1]} : vector<4x128xf32> to vector<4x32xf32>
    %1319 = arith.negf %1318 : vector<4x32xf32>
    %1320 = math.exp %1319 : vector<4x32xf32>
    %cst_234 = arith.constant 1.000000e+00 : f32
    %1321 = vector.broadcast %cst_234 : f32 to vector<4x32xf32>
    %1322 = arith.addf %1321, %1320 : vector<4x32xf32>
    %1323 = arith.divf %1321, %1322 : vector<4x32xf32>
    %1324 = arith.mulf %1315, %1300 : vector<4x32xf32>
    %1325 = arith.mulf %1309, %1317 : vector<4x32xf32>
    %1326 = arith.addf %1324, %1325 : vector<4x32xf32>
    %1327 = math.tanh %1326 : vector<4x32xf32>
    %1328 = arith.mulf %1323, %1327 : vector<4x32xf32>
    %1329 = vector.broadcast %700 : vector<4x1xf32> to vector<4x32xf32>
    %1330 = arith.mulf %1329, %1328 : vector<4x32xf32>
    %cst_235 = arith.constant 1.000000e+00 : f32
    %1331 = vector.broadcast %cst_235 : f32 to vector<4x1xf32>
    %1332 = arith.subf %1331, %700 : vector<4x1xf32>
    %1333 = vector.broadcast %1332 : vector<4x1xf32> to vector<4x32xf32>
    %1334 = arith.mulf %1333, %1293 : vector<4x32xf32>
    %1335 = arith.addf %1330, %1334 : vector<4x32xf32>
    %1336 = vector.broadcast %700 : vector<4x1xf32> to vector<4x32xf32>
    %1337 = arith.mulf %1336, %1326 : vector<4x32xf32>
    %cst_236 = arith.constant 1.000000e+00 : f32
    %1338 = vector.broadcast %cst_236 : f32 to vector<4x1xf32>
    %1339 = arith.subf %1338, %700 : vector<4x1xf32>
    %1340 = vector.broadcast %1339 : vector<4x1xf32> to vector<4x32xf32>
    %1341 = arith.mulf %1340, %1300 : vector<4x32xf32>
    %1342 = arith.addf %1337, %1341 : vector<4x32xf32>
    %1343 = vector.extract_strided_slice %1048 {offsets = [28, 0], sizes = [4, 128], strides = [1, 1]} : vector<32x128xf32> to vector<4x128xf32>
    %cst_237 = arith.constant dense<0.000000e+00> : vector<4x128xf32>
    %1344 = tpu.matmul %1335, %1044, %cst_237 {dimension_numbers = #tpu.dot_dimension_numbers<[1], [0], [0], [1], [0, 0, 1, 1], [], []>} : vector<4x32xf32>, vector<32x128xf32>, vector<4x128xf32> -> vector<4x128xf32>
    %1345 = arith.addf %1343, %1344 : vector<4x128xf32>
    %1346 = vector.extract_strided_slice %1345 {offsets = [0, 0], sizes = [4, 32], strides = [1, 1]} : vector<4x128xf32> to vector<4x32xf32>
    %1347 = arith.negf %1346 : vector<4x32xf32>
    %1348 = math.exp %1347 : vector<4x32xf32>
    %cst_238 = arith.constant 1.000000e+00 : f32
    %1349 = vector.broadcast %cst_238 : f32 to vector<4x32xf32>
    %1350 = arith.addf %1349, %1348 : vector<4x32xf32>
    %1351 = arith.divf %1349, %1350 : vector<4x32xf32>
    %1352 = vector.extract_strided_slice %1345 {offsets = [0, 32], sizes = [4, 32], strides = [1, 1]} : vector<4x128xf32> to vector<4x32xf32>
    %1353 = arith.negf %1352 : vector<4x32xf32>
    %1354 = math.exp %1353 : vector<4x32xf32>
    %cst_239 = arith.constant 1.000000e+00 : f32
    %1355 = vector.broadcast %cst_239 : f32 to vector<4x32xf32>
    %1356 = arith.addf %1355, %1354 : vector<4x32xf32>
    %1357 = arith.divf %1355, %1356 : vector<4x32xf32>
    %1358 = vector.extract_strided_slice %1345 {offsets = [0, 64], sizes = [4, 32], strides = [1, 1]} : vector<4x128xf32> to vector<4x32xf32>
    %1359 = math.tanh %1358 : vector<4x32xf32>
    %1360 = vector.extract_strided_slice %1345 {offsets = [0, 96], sizes = [4, 32], strides = [1, 1]} : vector<4x128xf32> to vector<4x32xf32>
    %1361 = arith.negf %1360 : vector<4x32xf32>
    %1362 = math.exp %1361 : vector<4x32xf32>
    %cst_240 = arith.constant 1.000000e+00 : f32
    %1363 = vector.broadcast %cst_240 : f32 to vector<4x32xf32>
    %1364 = arith.addf %1363, %1362 : vector<4x32xf32>
    %1365 = arith.divf %1363, %1364 : vector<4x32xf32>
    %1366 = arith.mulf %1357, %1342 : vector<4x32xf32>
    %1367 = arith.mulf %1351, %1359 : vector<4x32xf32>
    %1368 = arith.addf %1366, %1367 : vector<4x32xf32>
    %1369 = math.tanh %1368 : vector<4x32xf32>
    %1370 = arith.mulf %1365, %1369 : vector<4x32xf32>
    %1371 = vector.broadcast %706 : vector<4x1xf32> to vector<4x32xf32>
    %1372 = arith.mulf %1371, %1370 : vector<4x32xf32>
    %cst_241 = arith.constant 1.000000e+00 : f32
    %1373 = vector.broadcast %cst_241 : f32 to vector<4x1xf32>
    %1374 = arith.subf %1373, %706 : vector<4x1xf32>
    %1375 = vector.broadcast %1374 : vector<4x1xf32> to vector<4x32xf32>
    %1376 = arith.mulf %1375, %1335 : vector<4x32xf32>
    %1377 = arith.addf %1372, %1376 : vector<4x32xf32>
    %1378 = tpu.concatenate %1083, %1125, %1167, %1209, %1251, %1293, %1335, %1377 in 0 : vector<4x32xf32>, vector<4x32xf32>, vector<4x32xf32>, vector<4x32xf32>, vector<4x32xf32>, vector<4x32xf32>, vector<4x32xf32>, vector<4x32xf32> -> vector<32x32xf32>
    %c0_242 = arith.constant 0 : index
    %c0_243 = arith.constant 0 : index
    %1379 = vector.load %arg15[%c0_242, %c0_243] : memref<32x128xf32, #tpu.memory_space<vmem>>, vector<32x128xf32>
    %cst_244 = arith.constant dense<0.000000e+00> : vector<32x128xf32>
    %1380 = tpu.matmul %1378, %1379, %cst_244 {dimension_numbers = #tpu.dot_dimension_numbers<[1], [0], [0], [1], [0, 0, 1, 1], [], []>} : vector<32x32xf32>, vector<32x128xf32>, vector<32x128xf32> -> vector<32x128xf32>
    %c0_245 = arith.constant 0 : index
    %c0_246 = arith.constant 0 : index
    %1381 = vector.load %arg16[%c0_245, %c0_246] : memref<1x128xf32, #tpu.memory_space<vmem>>, vector<1x128xf32>
    %1382 = vector.broadcast %1381 : vector<1x128xf32> to vector<32x128xf32>
    %1383 = arith.addf %1380, %1382 : vector<32x128xf32>
    %c0_247 = arith.constant 0 : index
    %c0_248 = arith.constant 0 : index
    %1384 = vector.load %arg17[%c0_247, %c0_248] : memref<32x128xf32, #tpu.memory_space<vmem>>, vector<32x128xf32>
    tpu.vector_store %arg17[%c0_247, %c0_248], %1383 {strides = array<i32>} : memref<32x128xf32, #tpu.memory_space<vmem>>, vector<32x128xf32>,
    %c0_249 = arith.constant 0 : index
    %c0_250 = arith.constant 0 : index
    %1385 = vector.load %arg2[%c0_249, %c0_250] : memref<32x1xi32, #tpu.memory_space<vmem>>, vector<32x1xi32>
    %1386 = tpu.iota {dimensions = array<i32: 1>} : vector<32x128xi32>
    %1387 = vector.broadcast %1385 : vector<32x1xi32> to vector<32x128xi32>
    %1388 = arith.cmpi eq, %1386, %1387 : vector<32x128xi32>
    %1389 = arith.extui %1388 : vector<32x128xi1> to vector<32x128xi32>
    %1390 = arith.sitofp %1389 : vector<32x128xi32> to vector<32x128xf32>
    %cst_251 = arith.constant dense<0xFF800000> : vector<32xf32>
    %1391 = vector.multi_reduction <maximumf>, %1383, %cst_251 [1] : vector<32x128xf32> to vector<32xf32>
    %1392 = vector.shape_cast %1391 : vector<32xf32> to vector<32x1xf32>
    %1393 = vector.broadcast %1392 : vector<32x1xf32> to vector<32x128xf32>
    %1394 = arith.subf %1383, %1393 : vector<32x128xf32>
    %1395 = math.exp %1394 : vector<32x128xf32>
    %cst_252 = arith.constant dense<0.000000e+00> : vector<32xf32>
    %1396 = vector.multi_reduction <add>, %1395, %cst_252 [1] : vector<32x128xf32> to vector<32xf32>
    %1397 = vector.shape_cast %1396 : vector<32xf32> to vector<32x1xf32>
    %1398 = math.log %1397 : vector<32x1xf32>
    %1399 = arith.addf %1392, %1398 : vector<32x1xf32>
    %1400 = arith.mulf %1383, %1390 : vector<32x128xf32>
    %cst_253 = arith.constant dense<0.000000e+00> : vector<32xf32>
    %1401 = vector.multi_reduction <add>, %1400, %cst_253 [1] : vector<32x128xf32> to vector<32xf32>
    %1402 = vector.shape_cast %1401 : vector<32xf32> to vector<32x1xf32>
    %1403 = arith.subf %1402, %1399 : vector<32x1xf32>
    %1404 = tpu.concatenate %664, %670, %676, %682, %688, %694, %700, %706 in 0 : vector<4x1xf32>, vector<4x1xf32>, vector<4x1xf32>, vector<4x1xf32>, vector<4x1xf32>, vector<4x1xf32>, vector<4x1xf32>, vector<4x1xf32> -> vector<32x1xf32>
    %c0_i32_254 = arith.constant 0 : i32
    %1405 = vector.broadcast %c0_i32_254 : i32 to vector<32x1xi32>
    %1406 = arith.cmpi ne, %1385, %1405 : vector<32x1xi32>
    %1407 = arith.extui %1406 : vector<32x1xi1> to vector<32x1xi32>
    %1408 = arith.sitofp %1407 : vector<32x1xi32> to vector<32x1xf32>
    %1409 = arith.mulf %1404, %1408 : vector<32x1xf32>
    %cst_255 = arith.constant 0.000000e+00 : f32
    %1410 = vector.broadcast %cst_255 : f32 to vector<32x1xf32>
    %1411 = arith.subf %1410, %1403 : vector<32x1xf32>
    %1412 = arith.mulf %1411, %1409 : vector<32x1xf32>
    %cst_256 = arith.constant dense<0.000000e+00> : vector<1xf32>
    %1413 = vector.multi_reduction <add>, %1412, %cst_256 [0] : vector<32x1xf32> to vector<1xf32>
    %1414 = vector.shape_cast %1413 : vector<1xf32> to vector<1x1xf32>
    %cst_257 = arith.constant dense<0.000000e+00> : vector<1xf32>
    %1415 = vector.multi_reduction <add>, %1409, %cst_257 [0] : vector<32x1xf32> to vector<1xf32>
    %1416 = vector.shape_cast %1415 : vector<1xf32> to vector<1x1xf32>
    %cst_258 = arith.constant 1.000000e+00 : f32
    %1417 = vector.broadcast %cst_258 : f32 to vector<1x1xf32>
    %1418 = arith.maximumf %1416, %1417 : vector<1x1xf32>
    %1419 = arith.divf %1414, %1418 : vector<1x1xf32>
    %c0_259 = arith.constant 0 : index
    %c0_260 = arith.constant 0 : index
    %1420 = vector.load %arg18[%c0_259, %c0_260] : memref<1x1xf32, #tpu.memory_space<vmem>>, vector<1x1xf32>
    tpu.vector_store %arg18[%c0_259, %c0_260], %1419 {strides = array<i32>} : memref<1x1xf32, #tpu.memory_space<vmem>>, vector<1x1xf32>,
    %1421 = arith.sitofp %1386 : vector<32x128xi32> to vector<32x128xf32>
    %1422 = vector.broadcast %1392 : vector<32x1xf32> to vector<32x128xf32>
    %1423 = arith.cmpf oeq, %1383, %1422 : vector<32x128xf32>
    %cst_261 = arith.constant 1.280000e+02 : f32
    %1424 = vector.broadcast %cst_261 : f32 to vector<32x128xf32>
    %1425 = arith.select %1423, %1421, %1424 : vector<32x128xi1>, vector<32x128xf32>
    %cst_262 = arith.constant dense<0x7F800000> : vector<32xf32>
    %1426 = vector.multi_reduction <minimumf>, %1425, %cst_262 [1] : vector<32x128xf32> to vector<32xf32>
    %1427 = vector.shape_cast %1426 : vector<32xf32> to vector<32x1xf32>
    %1428 = arith.sitofp %1385 : vector<32x1xi32> to vector<32x1xf32>
    %1429 = arith.cmpf oeq, %1427, %1428 : vector<32x1xf32>
    %1430 = arith.extui %1429 : vector<32x1xi1> to vector<32x1xi32>
    %1431 = arith.sitofp %1430 : vector<32x1xi32> to vector<32x1xf32>
    %1432 = arith.mulf %1431, %1404 : vector<32x1xf32>
    %cst_263 = arith.constant dense<0.000000e+00> : vector<1xf32>
    %1433 = vector.multi_reduction <add>, %1432, %cst_263 [0] : vector<32x1xf32> to vector<1xf32>
    %1434 = vector.shape_cast %1433 : vector<1xf32> to vector<1x1xf32>
    %c0_264 = arith.constant 0 : index
    %c0_265 = arith.constant 0 : index
    %1435 = vector.load %arg19[%c0_264, %c0_265] : memref<1x1xf32, #tpu.memory_space<vmem>>, vector<1x1xf32>
    tpu.vector_store %arg19[%c0_264, %c0_265], %1434 {strides = array<i32>} : memref<1x1xf32, #tpu.memory_space<vmem>>, vector<1x1xf32>,
    return
  }
}

</mosaic_0001>

<bundles_post_ra>
// kernel: tpu_custom_call.1
= control target key start
LH: loop header
LB: loop body
LE: loop exit
PB: predicated region body
PF: predicated region fallthrough
CT: control target
= control target key end

     0   :  { %s7820_s0 = inlined_call_operand.vmem [shape: f32[32,16], index: 0, kind: input, shape index: {}]   ;;  %s7821_s1 = inlined_call_operand.vmem [shape: s32[4,1], index: 1, kind: input, shape index: {}]   ;;  %s7822_s2 = inlined_call_operand.vmem [shape: s32[32,1], index: 2, kind: input, shape index: {}]   ;;  %s7823_s3 = inlined_call_operand.hbm [shape: f32[16,128], index: 3, kind: input, shape index: {}]   ;;  %s7824_s4 = inlined_call_operand.vmem [shape: f32[32,128], index: 4, kind: input, shape index: {}]   ;;  %s7825_s5 = inlined_call_operand.vmem [shape: f32[1,128], index: 5, kind: input, shape index: {}]   ;;  %s7826_s6 = inlined_call_operand.vmem [shape: f32[32,128], index: 6, kind: input, shape index: {}]   ;;  %s7827_s7 = inlined_call_operand.vmem [shape: f32[32,128], index: 7, kind: input, shape index: {}]   ;;  %s7828_s8 = inlined_call_operand.vmem [shape: f32[1,128], index: 8, kind: input, shape index: {}]   ;;  %s7829_s9 = inlined_call_operand.hbm [shape: f32[16,128], index: 9, kind: input, shape index: {}]   ;;  %s7830_s10 = inlined_call_operand.hbm [shape: f32[32,128], index: 10, kind: input, shape index: {}]   ;;  %s7831_s11 = inlined_call_operand.vmem [shape: f32[1,128], index: 11, kind: input, shape index: {}]   ;;  %s7832_s12 = inlined_call_operand.vmem [shape: f32[32,128], index: 12, kind: input, shape index: {}]   ;;  %s7833_s13 = inlined_call_operand.hbm [shape: f32[32,128], index: 13, kind: input, shape index: {}]   ;;  %s7834_s14 = inlined_call_operand.vmem [shape: f32[1,128], index: 14, kind: input, shape index: {}]   ;;  %s7835_s15 = inlined_call_operand.hbm [shape: f32[32,128], index: 15, kind: input, shape index: {}]   ;;  %s7836_s16 = inlined_call_operand.vmem [shape: f32[1,128], index: 16, kind: input, shape index: {}]   ;;  %s7837_s17 = inlined_call_operand.hbm [shape: f32[32,128], index: 17, kind: output, shape index: {0}]   ;;  %s7838_s18 = inlined_call_operand.hbm [shape: f32[1,1], index: 18, kind: output, shape index: {1}]   ;;  %s7839_s19 = inlined_call_operand.hbm [shape: f32[1,1], index: 19, kind: output, shape index: {2}]   ;;  %s7840_s20 = inlined_call_operand.hbm [shape: f32[2,4,32], index: 20, kind: output, shape index: {3}]   ;;  %s7841_s21 = inlined_call_operand.hbm [shape: f32[2,4,32], index: 21, kind: output, shape index: {4}]  }
   0x1   :  { %7848 = sst [smem:[#allocation24_spill]] %s7820_s0 }
   0x2   :  { %7849 = sst [smem:[#allocation25_spill]] %s7821_s1 }
   0x3   :  { %7850 = sst [smem:[#allocation26_spill]] %s7822_s2 }
   0x4   :  { %7851 = sst [smem:[#allocation27_spill]] %s7823_s3 }
   0x5   :  { %7852 = sst [smem:[#allocation28_spill]] %s7824_s4 }
   0x6   :  { %7853 = sst [smem:[#allocation29_spill]] %s7825_s5 }
   0x7   :  { %7854 = sst [smem:[#allocation30_spill]] %s7839_s19 }
   0x8   :  { %27 = vsyncpa [#allocation3], 0 }
   0x9   :  { %28 = vsyncpa [#allocation6], 0 }
   0xa   :  { %29 = vsyncpa [#allocation9], 0 }
   0xb   :  { %30 = vsyncpa [#allocation4], 0 }
   0xc   :  { %31 = vsyncpa [#allocation13], 0 }
   0xd   :  { %32 = vsyncpa [#allocation16], 0  ;;  %s6307_s2 = smov [#allocation5]   ;;  %s6308_s26 = smov [#allocation8]  }
   0xe   :  { %s66_s25 = sshll.u32 %s6307_s2, 4  ;;  %s94_s27 = sshll.u32 %s6308_s26, 4  ;;  %s67_s25 = int_to_ptr.vmem [resolvable:$true] %s66_s25  ;;  %s6437_s27 = int_to_ptr.vmem [resolvable:$true] %s94_s27 }
   0xf   :  { %s6075_s29 = scalar_lea.hbm %s7829_s9, 256 }
  0x10   :  { %p6076_p0 = scmp.ne.s32.totalorder %s7829_s9, %s6075_s29  ;;  %p6079_p1 = scmp.lt.u32.totalorder %s6075_s29, %s7829_s9 }
  0x12   :  { %p6081_p2 = pnand %p6079_p1, %p6076_p0 }
  0x14   :  { %6084 = shalt.err (!%p6081_p2)
}
  0x15   :  { %s6085_s22 = scalar_lea.vmem %s67_s25, 256  ;;  %p6090_p4 = scmp.lt.s32.totalorder %s67_s25, %s67_s25 }
  0x16   :  { %p6086_p3 = scmp.ne.s32.totalorder %s67_s25, %s6085_s22  ;;  %p6091_p5 = scmp.lt.s32.totalorder %s6085_s22, %s6085_s22 }
  0x18   :  { %p6092_p6 = por %p6091_p5, %p6090_p4 }
  0x1a   :  { %p6093_p7 = pnand %p6092_p6, %p6086_p3 }
  0x1c   :  { %6096 = shalt.err (!%p6093_p7)
}
  0x1d   :  { %s6309_s23 = smov 128   ;;  %s6310_s1 = smov 8  }
  0x1e   :  { %72 = dma.hbm_to_vmem [thread:$0]  %s7829_s9, 256, %s67_s25, [#allocation6], %s6309_s23, %s6309_s23, %s6310_s1  }
  0x1f   :  { %s6097_s28 = scalar_lea.hbm %s7833_s13, 512 }
  0x20   :  { %p6098_p8 = scmp.ne.s32.totalorder %s7833_s13, %s6097_s28  ;;  %p6101_p9 = scmp.lt.u32.totalorder %s6097_s28, %s7833_s13 }
  0x22   :  { %p6103_p10 = pnand %p6101_p9, %p6098_p8 }
  0x24   :  { %6106 = shalt.err (!%p6103_p10)
}
  0x25   :  { %s6107_s5 = scalar_lea.vmem %s6437_s27, 512  ;;  %p6112_p12 = scmp.lt.s32.totalorder %s6437_s27, %s6437_s27 }
  0x26   :  { %p6108_p11 = scmp.ne.s32.totalorder %s6437_s27, %s6107_s5  ;;  %p6113_p13 = scmp.lt.s32.totalorder %s6107_s5, %s6107_s5 }
  0x28   :  { %p6114_p0 = por %p6113_p13, %p6112_p12 }
  0x2a   :  { %p6115_p1 = pnand %p6114_p0, %p6108_p11 }
  0x2c   :  { %6118 = shalt.err (!%p6115_p1)
}
  0x2d   :  { %100 = dma.hbm_to_vmem [thread:$0]  %s7833_s13, 512, %s6437_s27, [#allocation9], %s6309_s23, %s6309_s23, %s6310_s1  }
  0x2e   :  { %s6311_s22 = smov [#allocation2]   ;;  %s6312_s2 = smov [#allocation7]  }
  0x2f   :  { %s44_s24 = sshll.u32 %s6311_s22, 4  ;;  %s78_s26 = sshll.u32 %s6312_s2, 4  ;;  %s45_s24 = int_to_ptr.vmem [resolvable:$true] %s44_s24  ;;  %s6474_s26 = int_to_ptr.vmem [resolvable:$true] %s78_s26 }
  0x30   :  { %s7855_s29 = sld [smem:[#allocation27_spill]] }
  0x36   :  { %s6119_s0 = scalar_lea.hbm %s7855_s29, 256 }
  0x37   :  { %p6120_p2 = scmp.ne.s32.totalorder %s7855_s29, %s6119_s0  ;;  %p6123_p3 = scmp.lt.u32.totalorder %s6119_s0, %s7855_s29 }
  0x39   :  { %p6125_p4 = pnand %p6123_p3, %p6120_p2 }
  0x3b   :  { %6128 = shalt.err (!%p6125_p4)
}
  0x3c   :  { %s6129_s13 = scalar_lea.vmem %s45_s24, 256  ;;  %p6134_p6 = scmp.lt.s32.totalorder %s45_s24, %s45_s24 }
  0x3d   :  { %p6130_p5 = scmp.ne.s32.totalorder %s45_s24, %s6129_s13  ;;  %p6135_p7 = scmp.lt.s32.totalorder %s6129_s13, %s6129_s13 }
  0x3f   :  { %p6136_p8 = por %p6135_p7, %p6134_p6 }
  0x41   :  { %p6137_p9 = pnand %p6136_p8, %p6130_p5 }
  0x43   :  { %6140 = shalt.err (!%p6137_p9)
}
  0x44   :  { %50 = dma.hbm_to_vmem [thread:$0]  %s7855_s29, 256, %s45_s24, [#allocation3], %s6309_s23, %s6309_s23, %s6310_s1  }
  0x45   :  { %s6141_s19 = scalar_lea.hbm %s7830_s10, 512 }
  0x46   :  { %p6142_p10 = scmp.ne.s32.totalorder %s7830_s10, %s6141_s19  ;;  %p6145_p11 = scmp.lt.u32.totalorder %s6141_s19, %s7830_s10 }
  0x48   :  { %p6147_p12 = pnand %p6145_p11, %p6142_p10 }
  0x4a   :  { %6150 = shalt.err (!%p6147_p12)
}
  0x4b   :  { %s6151_s4 = scalar_lea.vmem %s6474_s26, 512  ;;  %p6156_p0 = scmp.lt.s32.totalorder %s6474_s26, %s6474_s26 }
  0x4c   :  { %p6152_p13 = scmp.ne.s32.totalorder %s6474_s26, %s6151_s4  ;;  %p6157_p1 = scmp.lt.s32.totalorder %s6151_s4, %s6151_s4 }
  0x4e   :  { %p6158_p2 = por %p6157_p1, %p6156_p0 }
  0x50   :  { %p6159_p3 = pnand %p6158_p2, %p6152_p13 }
  0x52   :  { %6162 = shalt.err (!%p6159_p3)
}
  0x53   :  { %84 = dma.hbm_to_vmem [thread:$0]  %s7830_s10, 512, %s6474_s26, [#allocation6], %s6309_s23, %s6309_s23, %s6310_s1  }
  0x54   :  { %s6313_s30 = smov [#allocation10]   ;;  %s6163_s9 = scalar_lea.hbm %s7835_s15, 512 }
  0x55   :  { %s108_s5 = sshll.u32 %s6313_s30, 4  ;;  %p6164_p4 = scmp.ne.s32.totalorder %s7835_s15, %s6163_s9  ;;  %s109_s5 = int_to_ptr.vmem [resolvable:$true] %s108_s5 }
  0x56   :  { %p6167_p5 = scmp.lt.u32.totalorder %s6163_s9, %s7835_s15 }
  0x58   :  { %p6169_p6 = pnand %p6167_p5, %p6164_p4 }
  0x5a   :  { %6172 = shalt.err (!%p6169_p6)
}
  0x5b   :  { %s6173_s3 = scalar_lea.vmem %s109_s5, 512  ;;  %p6178_p8 = scmp.lt.s32.totalorder %s109_s5, %s109_s5 }
  0x5c   :  { %p6174_p7 = scmp.ne.s32.totalorder %s109_s5, %s6173_s3  ;;  %p6179_p9 = scmp.lt.s32.totalorder %s6173_s3, %s6173_s3 }
  0x5e   :  { %p6180_p10 = por %p6179_p9, %p6178_p8 }
  0x60   :  { %p6181_p11 = pnand %p6180_p10, %p6174_p7 }
  0x62   :  { %6184 = shalt.err (!%p6181_p11)
}
  0x63   :  { %114 = dma.hbm_to_vmem [thread:$0]  %s7835_s15, 512, %s109_s5, [#allocation9], %s6309_s23, %s6309_s23, %s6310_s1  }
  0x64   :  { %6295 = dma.done.wait [#allocation3], 256  }
  0x65   :  { %6296 = vsyncadd [#allocation3], 4294967040 }
  0x66   :  { %6297 = dma.done.wait [#allocation6], 768  }
  0x67   :  { %6298 = vsyncadd [#allocation6], 4294966528 }
  0x68   :  { %6299 = dma.done.wait [#allocation9], 1024  }
  0x69   :  { %6300 = vsyncadd [#allocation9], 4294966272  ;;  %v6314_v0 = vmov 0.0|0.0   ;;  %vm6315_vm0 = vmmov 0   ;;  %v6316_v1 = vmov 0.0   ;;  %v159_v2 = vld [vmem:[#allocation2] sm:$0xff] }
  0x6a   :  { %5582 = vmatprep.subr.bf16.mxu1 %v6314_v0  ;;  %5204 = vmatprep.mubr.msk.f32.mxu1 %vm6315_vm0, %v6316_v1  ;;  %v160_v3 = vld [vmem:[#allocation2 + $0x8] sm:$0xff]  ;;  %s7856_s4 = sld [smem:[#allocation28_spill]]  ;;  %s7857_s5 = sld [smem:[#allocation24_spill]]  ;;  %vm176_vm1 = vcmask 1043456   ;;  %vm184_vm2 = vcmask 130048   ;;  %v6317_v20 = vmov 0  }
  0x6b   :  { %v5578_v5 = vpack.c.bf16 %v160_v3, %v159_v2  ;;  %s7858_s28 = sld [smem:[#allocation25_spill]]  ;;  %5810 = vset.pattern.permute.xlu1 %v6317_v20  ;;  %5811 = vset.pattern.permute.xlu0 %v6317_v20  ;;  %s7859_s15 = sld [smem:[#allocation29_spill]]  ;;  %vm278_vm4 = vcmask 261120   ;;  %vm2170_vm11 = vcmask 257024  }
  0x6c   :  { %s6318_s24 = smov 64   ;;  %s6319_s29 = smov 32  }
  0x6d   :  { %5579 = vmatprep.subr.bf16.mxu0 %v5578_v5  ;;  %s6320_s27 = smov 96   ;;  %s7860_s3 = sld [smem:[#allocation26_spill]] }
  0x6e   :  { %5581 = vmatpush3.bf16.msra.mxu0 %v5578_v5 }
  0x6f   :  { %5588 = vmatprep.subr.bf16.mxu0 %v6314_v0 }
  0x70   :  { %v161_v4 = vld [vmem:[%s7856_s4] sm:$0xff]  ;;  %v162_v6 = vld [vmem:[%s7856_s4 + $0x8] sm:$0xff]  ;;  %v6546_v12 = vld [vmem:[%s7857_s5 + $0x10] sm:$0xff] }
  0x71   :  { %v132_v7 = vld [vmem:[%s7857_s5] sm:$0xff]  ;;  %v133_v8 = vld [vmem:[%s7857_s5 + $0x8] sm:$0xff]  ;;  %v6541_v9 = vpack.c.bf16 %v162_v6, %v161_v4  ;;  %v163_v13 = vld [vmem:[%s7856_s4 + $0x10] sm:$0xff]  ;;  %v180_v15 = vrot.slane %v6546_v12, 4 }
  0x72   :  { %v177_v10 = vrot.slane %v132_v7, 4  ;;  %v178_v11 = vrot.slane %v133_v8, 4  ;;  %v164_v14 = vld [vmem:[%s7856_s4 + $0x18] sm:$0xff]  ;;  %v136_v19 = vld [vmem:[%s7858_s28] sm:$0xf] }
  0x73   :  { %5584 = vmatpush3.bf16.msra.mxu1 %v6541_v9  ;;  %v6557_v17 = vpack.c.bf16 %v164_v14, %v163_v13  ;;  %v6580_v21 = vadd.s32 4294967294, %v136_v19  ;;  %v6587_v24 = vld [vmem:[%s7859_s15] ss:$0 sm:$0xff]  ;;  %v135_v41 = vld [vmem:[%s7857_s5 + $0x18] sm:$0xff] }
  0x74   :  { %v179_v16 = vsel %vm176_vm1, %v177_v10, %v178_v11  ;;  %5585 = vmatprep.subr.bf16.mxu1 %v6314_v0  ;;  %v181_v18 = vsel %vm176_vm1, %v178_v11, %v180_v15  ;;  %v182_v42 = vrot.slane %v135_v41, 4 }
  0x75   :  { %5190 = vmatprep.mubr.msk.f32.mxu0 %vm184_vm2, %v179_v16  ;;  %vm138_vm3 = vcmp.gt.s32.totalorder %v6580_v21, 0  ;;  %vm141_vm5 = vcmp.gt.s32.totalorder %v6580_v21, 1  ;;  %vm144_vm6 = vcmp.gt.s32.totalorder %v6580_v21, 2  ;;  %vm147_vm7 = vcmp.gt.s32.totalorder %v6580_v21, 3 }
  0x76   :  { %5191 = vmatmul.mubr.msk.f32.vlgmr.msra.gmra.mrb[0].mxu0 %vm184_vm2, %v181_v18  ;;  %v4889_v22 = vsel %vm138_vm3, 1.0, %v6316_v1  ;;  %v183_v43 = vsel %vm176_vm1, %v180_v15, %v182_v42  ;;  %v4890_v59 = vsel %vm141_vm5, 1.0, %v6316_v1  ;;  %vm150_vm8 = vcmp.gt.s32.totalorder %v6580_v21, 4 }
  0x77   :  { %5587 = vmatpush3.bf16.msra.mxu1 %v6557_v17  ;;  %5590 = vmatpush3.bf16.msra.mxu0 %v6541_v9  ;;  %v383_v23 = vsub.f32 1.0, %v4889_v22  ;;  %v510_v61 = vsub.f32 1.0, %v4890_v59  ;;  %vm153_vm9 = vcmp.gt.s32.totalorder %v6580_v21, 5  ;;  %vm156_vm10 = vcmp.gt.s32.totalorder %v6580_v21, 6 }
  0x78   :  { %5591 = vmatprep.subr.bf16.mxu0 %v6314_v0  ;;  %5594 = vmatprep.subr.bf16.mxu1 %v6314_v0 }
  0x79   :  { %379 = vperm.xlu1 %5810, %v4889_v22   ;;  %5193 = vmatprep.mubr.msk.f32.mxu0 %vm184_vm2, %v183_v43 }
  0x7a   :  { %5205 = vmatmul.mubr.f32.vlgmr.msra.gmra.mrb[0].mxu1 %v6316_v1  ;;  %5194 = vmatmul.mubr.msk.f32.gmra.mrb[2].mxu0 %vm184_vm2, %v182_v42 }
  0x7b   :  { %5593 = vmatpush3.bf16.msra.mxu0 %v6557_v17  ;;  %5596 = vmatpush3.bf16.msra.mxu1 %v6541_v9 }
  0x7c   :  { %5597 = vmatprep.subr.bf16.mxu1 %v6314_v0  ;;  %5226 = vmatprep.mubr.msk.f32.mxu1 %vm6315_vm0, %v6316_v1 }
  0x7d   :  { %5600 = vmatprep.subr.bf16.mxu0 %v6314_v0  ;;  %386 = vperm.xlu1 %5810, %v383_v23  }
  0x7e   :  { %5215 = vmatprep.mubr.msk.f32.mxu0 %vm6315_vm0, %v6316_v1 }
  0x7f   :  { %5599 = vmatpush3.bf16.msra.mxu1 %v6557_v17 }
  0x80   :  { %5606 = vmatprep.subr.bf16.mxu1 %v6314_v0 }
  0xf8   :  { %v6603_v45 = vpop.permute.xlu1 %379 }
  0xfc   :  { %v387_v46 = vpop.permute.xlu1 %386 }
  0xfd   :  { %v6605_v49 = vmul.f32 0.0, %v387_v46 }
 0x149   :  { %v6589_v25 = vpop.f32.mrb[0].mxu0 }
 0x14a   :  { %v259_v26 = vpop.f32.mrb[1].mxu0 }
 0x14b   :  { %v260_v27 = vadd.f32 %v6587_v24, %v259_v26 }
 0x14d   :  { %v348_v28 = vpop.f32.mrb[0].mxu1  ;;  %v6613_v52 = vpop.f32.mrb[2].mxu0 }
 0x14e   :  { %v352_v29 = vadd.f32 %v348_v28, %v260_v27  ;;  %v5206_v30 = vpop.f32.mrb[1].mxu1  ;;  %v6615_v53 = vpop.f32.mrb[3].mxu0 }
 0x150   :  { %5812 = vtanh.f32 %v352_v29  ;;  %v4901_v32 = vmul.f32 -1.442695, %v352_v29 }
 0x152   :  { %5814 = vpow2.f32 %v4901_v32 }
 0x15a   :  { %v5813_v31 = vpop.eup %5812 }
 0x15b   :  { %362 = vrot.lane.b32.xlu0 %v5813_v31, %s6318_s24 }
 0x15c   :  { %v5815_v33 = vpop.eup %5814 }
 0x15d   :  { %v356_v34 = vadd.f32 1.0, %v5815_v33  ;;  %v4891_v33 = vsel %vm144_vm6, 1.0, %v6316_v1 }
 0x15f   :  { %5816 = vrcp.f32 %v356_v34 }
 0x169   :  { %v5817_v35 = vpop.eup %5816 }
 0x16a   :  { %v360_v38 = vmul.f32 0.0, %v5817_v35 }
 0x1cd   :  { %v363_v36 = vpop.permute.xlu0 %362 }
 0x1ce   :  { %v365_v37 = vmul.f32 %v5817_v35, %v363_v36  ;;  %v265_v36 = vadd.f32 %v6589_v25, %v6587_v24 }
 0x1d0   :  { %367 = vrot.lane.b32.xlu0 %v365_v37, %s6319_s29 }
 0x242   :  { %v368_v39 = vpop.permute.xlu0 %367 }
 0x243   :  { %v370_v40 = vadd.f32 %v368_v39, %v360_v38 }
 0x245   :  { %5818 = vtanh.f32 %v370_v40  ;;  %v391_v6 = vmul.f32 %v6603_v45, %v370_v40 }
 0x247   :  { %v392_v7 = vadd.f32 %v391_v6, %v6605_v49 }
 0x249   :  { %v480_v8 = vrot.slane %v392_v7, 4 }
 0x24f   :  { %v5819_v44 = vpop.eup %5818 }
 0x250   :  { %373 = vrot.lane.b32.xlu0 %v5819_v44, %s6318_s24 }
 0x2c2   :  { %v374_v47 = vpop.permute.xlu0 %373 }
 0x2c3   :  { %v376_v48 = vmul.f32 %v5817_v35, %v374_v47  ;;  %v642_v35 = vsub.f32 1.0, %v4891_v33 }
 0x2c5   :  { %v382_v50 = vmul.f32 %v6603_v45, %v376_v48 }
 0x2c7   :  { %v6609_v51 = vadd.f32 %v6605_v49, %v382_v50 }
 0x2c9   :  { %394 = vrot.lane.b32.xlu1 %v6609_v51, %s6319_s29 }
 0x33b   :  { %v395_v54 = vpop.permute.xlu1 %394 }
 0x33c   :  { %5216 = vmatmul.mubr.msk.f32.vlgmr.msra.gmra.mrb[4].mxu0 %vm278_vm4, %v395_v54 }
 0x33d   :  { %5602 = vmatpush3.bf16.msra.mxu0 %v6541_v9  ;;  %5237 = vmatprep.mubr.msk.f32.mxu0 %vm6315_vm0, %v6316_v1 }
 0x33e   :  { %5603 = vmatprep.subr.bf16.mxu0 %v6314_v0 }
 0x341   :  { %5605 = vmatpush3.bf16.msra.mxu0 %v6557_v17 }
 0x342   :  { %5612 = vmatprep.subr.bf16.mxu0 %v6314_v0 }
 0x40f   :  { %v464_v55 = vpop.f32.mrb[4].mxu0 }
 0x410   :  { %v469_v56 = vrot.slane %v464_v55, 4  ;;  %v5217_v57 = vpop.f32.mrb[5].mxu0 }
 0x412   :  { %v471_v58 = vadd.f32 %v469_v56, %v260_v27 }
 0x414   :  { %5820 = vtanh.f32 %v471_v58  ;;  %v4903_v62 = vmul.f32 -1.442695, %v471_v58 }
 0x416   :  { %5822 = vpow2.f32 %v4903_v62 }
 0x41e   :  { %v5821_v60 = vpop.eup %5820 }
 0x41f   :  { %484 = vrot.lane.b32.xlu0 %v5821_v60, %s6318_s24 }
 0x420   :  { %v5823_v63 = vpop.eup %5822 }
 0x421   :  { %v475_v2 = vadd.f32 1.0, %v5823_v63 }
 0x423   :  { %513 = vperm.xlu0 %5811, %v510_v61   ;;  %5824 = vrcp.f32 %v475_v2  ;;  %v4892_v2 = vsel %vm147_vm7, 1.0, %v6316_v1 }
 0x42d   :  { %v5825_v3 = vpop.eup %5824 }
 0x42e   :  { %v482_v10 = vmul.f32 %v5825_v3, %v480_v8 }
 0x491   :  { %v485_v4 = vpop.permute.xlu0 %484 }
 0x492   :  { %v487_v5 = vmul.f32 %v5825_v3, %v485_v4  ;;  %v778_v4 = vsub.f32 1.0, %v4892_v2 }
 0x494   :  { %489 = vrot.lane.b32.xlu1 %v487_v5, %s6319_s29 }
 0x4a2   :  { %v6631_v14 = vpop.permute.xlu0 %513 }
 0x4a3   :  { %v516_v15 = vmul.f32 %v6631_v14, %v6609_v51  ;;  %v528_v16 = vmul.f32 %v6631_v14, %v392_v7 }
 0x506   :  { %v490_v11 = vpop.permute.xlu1 %489 }
 0x507   :  { %v492_v12 = vadd.f32 %v490_v11, %v482_v10 }
 0x509   :  { %5826 = vtanh.f32 %v492_v12  ;;  %v523_v22 = vrot.slane %v492_v12, 4 }
 0x513   :  { %v5827_v13 = vpop.eup %5826 }
 0x514   :  { %495 = vrot.lane.b32.xlu1 %v5827_v13, %s6318_s24 }
 0x518   :  { %501 = vperm.xlu1 %5810, %v4890_v59  }
 0x51c   :  { %518 = vrot.lane.b32.xlu1 %v516_v15, %s6319_s29 }
 0x520   :  { %530 = vrot.lane.b32.xlu1 %v528_v16, %s6320_s27 }
 0x586   :  { %v496_v18 = vpop.permute.xlu1 %495 }
 0x587   :  { %v498_v19 = vmul.f32 %v5825_v3, %v496_v18 }
 0x589   :  { %v505_v20 = vrot.slane %v498_v19, 4 }
 0x58b   :  { %506 = vrot.lane.b32.xlu0 %v505_v20, %s6319_s29 }
 0x58f   :  { %524 = vrot.lane.b32.xlu0 %v523_v22, %s6320_s27 }
 0x597   :  { %v6640_v23 = vpop.permute.xlu1 %501 }
 0x59b   :  { %v519_v26 = vpop.permute.xlu1 %518 }
 0x59f   :  { %v531_v32 = vpop.permute.xlu1 %530 }
 0x5fd   :  { %v507_v27 = vpop.permute.xlu0 %506 }
 0x5fe   :  { %v509_v28 = vmul.f32 %v507_v27, %v6640_v23 }
 0x600   :  { %v6643_v29 = vadd.f32 %v519_v26, %v509_v28 }
 0x601   :  { %v525_v30 = vpop.permute.xlu0 %524 }
 0x602   :  { %v527_v31 = vmul.f32 %v525_v30, %v6640_v23  ;;  %5227 = vmatmul.mubr.msk.f32.vlgmr.msra.gmra.mrb[2].mxu1 %vm278_vm4, %v6643_v29 }
 0x603   :  { %5608 = vmatpush3.bf16.msra.mxu1 %v6541_v9  ;;  %5248 = vmatprep.mubr.msk.f32.mxu1 %vm6315_vm0, %v6316_v1 }
 0x604   :  { %v533_v34 = vadd.f32 %v531_v32, %v527_v31  ;;  %5609 = vmatprep.subr.bf16.mxu1 %v6314_v0 }
 0x606   :  { %616 = vrot.lane.b32.xlu1 %v533_v34, %s6319_s29 }
 0x607   :  { %5611 = vmatpush3.bf16.msra.mxu1 %v6557_v17 }
 0x608   :  { %5618 = vmatprep.subr.bf16.mxu1 %v6314_v0 }
 0x60a   :  { %645 = vperm.xlu1 %5810, %v642_v35  }
 0x678   :  { %v617_v48 = vpop.permute.xlu1 %616 }
 0x689   :  { %v6661_v50 = vpop.permute.xlu1 %645 }
 0x68a   :  { %v648_v25 = vmul.f32 %v6661_v50, %v6643_v29  ;;  %v655_v3 = vmul.f32 %v6661_v50, %v533_v34 }
 0x6d5   :  { %v603_v37 = vpop.f32.mrb[2].mxu1 }
 0x6d6   :  { %v607_v38 = vadd.f32 %v603_v37, %v265_v36  ;;  %v5228_v39 = vpop.f32.mrb[3].mxu1 }
 0x6d8   :  { %5828 = vtanh.f32 %v607_v38  ;;  %v4905_v41 = vmul.f32 -1.442695, %v607_v38 }
 0x6da   :  { %5830 = vpow2.f32 %v4905_v41 }
 0x6e2   :  { %v5829_v40 = vpop.eup %5828 }
 0x6e3   :  { %621 = vrot.lane.b32.xlu0 %v5829_v40, %s6318_s24 }
 0x6e4   :  { %v5831_v42 = vpop.eup %5830 }
 0x6e5   :  { %v611_v43 = vadd.f32 1.0, %v5831_v42 }
 0x6e7   :  { %5832 = vrcp.f32 %v611_v43 }
 0x6f1   :  { %v5833_v44 = vpop.eup %5832 }
 0x6f2   :  { %v619_v54 = vmul.f32 %v5833_v44, %v617_v48 }
 0x755   :  { %v622_v46 = vpop.permute.xlu0 %621 }
 0x756   :  { %v624_v47 = vmul.f32 %v5833_v44, %v622_v46 }
 0x758   :  { %626 = vrot.lane.b32.xlu0 %v624_v47, %s6319_s29 }
 0x75c   :  { %638 = vperm.xlu0 %5811, %v4891_v33  }
 0x760   :  { %650 = vrot.lane.b32.xlu0 %v648_v25, %s6320_s27  ;;  %v4893_v25 = vsel %vm150_vm8, 1.0, %v6316_v1 }
 0x7ca   :  { %v627_v55 = vpop.permute.xlu0 %626 }
 0x7cb   :  { %v629_v56 = vadd.f32 %v627_v55, %v619_v54  ;;  %v910_v55 = vsub.f32 1.0, %v4893_v25 }
 0x7cd   :  { %5834 = vtanh.f32 %v629_v56 }
 0x7d7   :  { %v5835_v57 = vpop.eup %5834 }
 0x7d8   :  { %632 = vrot.lane.b32.xlu1 %v5835_v57, %s6318_s24 }
 0x7db   :  { %v6667_v58 = vpop.permute.xlu0 %638 }
 0x7dc   :  { %v654_v8 = vmul.f32 %v6667_v58, %v629_v56  ;;  %v270_v56 = vadd.f32 %v6587_v24, %v6615_v53 }
 0x7df   :  { %v651_v62 = vpop.permute.xlu0 %650 }
 0x84a   :  { %v633_v59 = vpop.permute.xlu1 %632 }
 0x84b   :  { %v635_v60 = vmul.f32 %v5833_v44, %v633_v59 }
 0x84d   :  { %v641_v61 = vmul.f32 %v6667_v58, %v635_v60 }
 0x84f   :  { %v6670_v63 = vadd.f32 %v651_v62, %v641_v61 }
 0x851   :  { %662 = vrot.lane.b32.xlu1 %v6670_v63, %s6319_s29 }
 0x855   :  { %657 = vrot.lane.b32.xlu1 %v655_v3, %s6319_s29 }
 0x859   :  { %781 = vperm.xlu1 %5810, %v778_v4  }
 0x85d   :  { %769 = vperm.xlu1 %5810, %v4892_v2  }
 0x8c3   :  { %v663_v5 = vpop.permute.xlu1 %662 }
 0x8c4   :  { %5238 = vmatmul.mubr.msk.f32.vlgmr.msra.gmra.mrb[6].mxu0 %vm278_vm4, %v663_v5 }
 0x8c5   :  { %5614 = vmatpush3.bf16.msra.mxu0 %v6541_v9  ;;  %5259 = vmatprep.mubr.msk.f32.mxu0 %vm6315_vm0, %v6316_v1 }
 0x8c6   :  { %5615 = vmatprep.subr.bf16.mxu0 %v6314_v0 }
 0x8c7   :  { %v658_v6 = vpop.permute.xlu1 %657 }
 0x8c8   :  { %v660_v11 = vadd.f32 %v658_v6, %v654_v8 }
 0x8c9   :  { %5617 = vmatpush3.bf16.msra.mxu0 %v6557_v17 }
 0x8ca   :  { %v748_v31 = vrot.slane %v660_v11, 4 }
 0x8d8   :  { %v6684_v7 = vpop.permute.xlu1 %781 }
 0x8d9   :  { %v784_v10 = vmul.f32 %v6684_v7, %v6670_v63  ;;  %v796_v12 = vmul.f32 %v6684_v7, %v660_v11 }
 0x8db   :  { %786 = vrot.lane.b32.xlu1 %v784_v10, %s6319_s29 }
 0x8dc   :  { %v6697_v40 = vpop.permute.xlu1 %769 }
 0x8df   :  { %798 = vrot.lane.b32.xlu1 %v796_v12, %s6320_s27 }
 0x94d   :  { %v787_v41 = vpop.permute.xlu1 %786 }
 0x951   :  { %v799_v48 = vpop.permute.xlu1 %798 }
 0x997   :  { %v732_v13 = vpop.f32.mrb[6].mxu0 }
 0x998   :  { %v737_v15 = vrot.slane %v732_v13, 4  ;;  %v5239_v16 = vpop.f32.mrb[7].mxu0 }
 0x99a   :  { %v739_v18 = vadd.f32 %v737_v15, %v265_v36 }
 0x99c   :  { %5836 = vtanh.f32 %v739_v18  ;;  %v4907_v20 = vmul.f32 -1.442695, %v739_v18 }
 0x99e   :  { %5838 = vpow2.f32 %v4907_v20 }
 0x9a6   :  { %v5837_v19 = vpop.eup %5836 }
 0x9a7   :  { %752 = vrot.lane.b32.xlu0 %v5837_v19, %s6318_s24 }
 0x9a8   :  { %v5839_v22 = vpop.eup %5838 }
 0x9a9   :  { %v743_v26 = vadd.f32 1.0, %v5839_v22  ;;  %v4894_v22 = vsel %vm153_vm9, 1.0, %v6316_v1 }
 0x9ab   :  { %5840 = vrcp.f32 %v743_v26 }
 0x9b5   :  { %v5841_v27 = vpop.eup %5840 }
 0x9b6   :  { %v750_v32 = vmul.f32 %v5841_v27, %v748_v31 }
 0xa19   :  { %v753_v28 = vpop.permute.xlu0 %752 }
 0xa1a   :  { %v755_v30 = vmul.f32 %v5841_v27, %v753_v28  ;;  %v1197_v28 = vrot.slane %v6643_v29, 4 }
 0xa1c   :  { %757 = vrot.lane.b32.xlu0 %v755_v30, %s6319_s29 }
 0xa8e   :  { %v758_v33 = vpop.permute.xlu0 %757 }
 0xa8f   :  { %v760_v34 = vadd.f32 %v758_v33, %v750_v32 }
 0xa91   :  { %5842 = vtanh.f32 %v760_v34  ;;  %v791_v39 = vrot.slane %v760_v34, 4 }
 0xa9b   :  { %v5843_v35 = vpop.eup %5842 }
 0xa9c   :  { %763 = vrot.lane.b32.xlu0 %v5843_v35, %s6318_s24 }
 0xb0e   :  { %v764_v36 = vpop.permute.xlu0 %763 }
 0xb0f   :  { %v766_v37 = vmul.f32 %v5841_v27, %v764_v36  ;;  %v1046_v27 = vsub.f32 1.0, %v4894_v22 }
 0xb11   :  { %v773_v38 = vrot.slane %v766_v37, 4 }
 0xb13   :  { %774 = vrot.lane.b32.xlu0 %v773_v38, %s6319_s29 }
 0xb17   :  { %792 = vrot.lane.b32.xlu0 %v791_v39, %s6320_s27 }
 0xb85   :  { %v775_v42 = vpop.permute.xlu0 %774 }
 0xb86   :  { %v777_v43 = vmul.f32 %v775_v42, %v6697_v40 }
 0xb88   :  { %v6700_v44 = vadd.f32 %v787_v41, %v777_v43 }
 0xb89   :  { %v793_v46 = vpop.permute.xlu0 %792 }
 0xb8a   :  { %v795_v47 = vmul.f32 %v793_v46, %v6697_v40  ;;  %5249 = vmatmul.mubr.msk.f32.vlgmr.msra.gmra.mrb[4].mxu1 %vm278_vm4, %v6700_v44 }
 0xb8b   :  { %5620 = vmatpush3.bf16.msra.mxu1 %v6541_v9  ;;  %5270 = vmatprep.mubr.msk.f32.mxu1 %vm6315_vm0, %v6316_v1 }
 0xb8c   :  { %v801_v54 = vadd.f32 %v799_v48, %v795_v47  ;;  %5621 = vmatprep.subr.bf16.mxu1 %v6314_v0 }
 0xb8e   :  { %884 = vrot.lane.b32.xlu1 %v801_v54, %s6319_s29 }
 0xb8f   :  { %5623 = vmatpush3.bf16.msra.mxu1 %v6557_v17 }
 0xb90   :  { %5632 = vmatprep.subr.bf16.mxu1 %v6314_v0 }
 0xb92   :  { %913 = vperm.xlu1 %5810, %v910_v55  }
 0xc00   :  { %v885_v5 = vpop.permute.xlu1 %884 }
 0xc11   :  { %v6718_v6 = vpop.permute.xlu1 %913 }
 0xc12   :  { %v916_v53 = vmul.f32 %v6718_v6, %v6700_v44  ;;  %v923_v26 = vmul.f32 %v6718_v6, %v801_v54 }
 0xc5d   :  { %v871_v57 = vpop.f32.mrb[4].mxu1 }
 0xc5e   :  { %v875_v59 = vadd.f32 %v871_v57, %v270_v56  ;;  %v5250_v9 = vpop.f32.mrb[5].mxu1 }
 0xc5f   :  { %v1213_v9 = vld [vmem:[%s7826_s6 + $0x8] sm:$0xff] }
 0xc60   :  { %5844 = vtanh.f32 %v875_v59  ;;  %v4909_v61 = vmul.f32 -1.442695, %v875_v59  ;;  %v1212_v59 = vld [vmem:[%s7826_s6] sm:$0xff] }
 0xc62   :  { %5846 = vpow2.f32 %v4909_v61  ;;  %v1201_v61 = vrot.slane %v6700_v44, 4 }
 0xc6a   :  { %v5845_v60 = vpop.eup %5844 }
 0xc6b   :  { %889 = vrot.lane.b32.xlu0 %v5845_v60, %s6318_s24  ;;  %v5624_v60 = vpack.c.bf16 %v1213_v9, %v1212_v59 }
 0xc6c   :  { %v5847_v62 = vpop.eup %5846 }
 0xc6d   :  { %v879_v2 = vadd.f32 1.0, %v5847_v62  ;;  %5625 = vmatprep.subr.bf16.mxu0 %v5624_v60  ;;  %v1214_v62 = vld [vmem:[%s7826_s6 + $0x10] sm:$0xff] }
 0xc6f   :  { %5848 = vrcp.f32 %v879_v2  ;;  %v1215_v2 = vld [vmem:[%s7826_s6 + $0x18] sm:$0xff] }
 0xc79   :  { %v5849_v3 = vpop.eup %5848 }
 0xc7a   :  { %v887_v8 = vmul.f32 %v5849_v3, %v885_v5 }
 0xcdd   :  { %v890_v17 = vpop.permute.xlu0 %889 }
 0xcde   :  { %v892_v4 = vmul.f32 %v5849_v3, %v890_v17 }
 0xce0   :  { %894 = vrot.lane.b32.xlu0 %v892_v4, %s6319_s29 }
 0xce4   :  { %906 = vperm.xlu0 %5811, %v4893_v25  }
 0xce8   :  { %918 = vrot.lane.b32.xlu0 %v916_v53, %s6320_s27 }
 0xd52   :  { %v895_v10 = vpop.permute.xlu0 %894 }
 0xd53   :  { %v897_v11 = vadd.f32 %v895_v10, %v887_v8 }
 0xd55   :  { %5850 = vtanh.f32 %v897_v11 }
 0xd5f   :  { %v5851_v12 = vpop.eup %5850 }
 0xd60   :  { %900 = vrot.lane.b32.xlu1 %v5851_v12, %s6318_s24 }
 0xd63   :  { %v6724_v13 = vpop.permute.xlu0 %906 }
 0xd64   :  { %v922_v47 = vmul.f32 %v6724_v13, %v897_v11 }
 0xd67   :  { %v919_v19 = vpop.permute.xlu0 %918 }
 0xdd2   :  { %v901_v15 = vpop.permute.xlu1 %900 }
 0xdd3   :  { %v903_v16 = vmul.f32 %v5849_v3, %v901_v15  ;;  %v5628_v3 = vpack.c.bf16 %v1215_v2, %v1214_v62  ;;  %v4895_v2 = vsel %vm156_vm10, 1.0, %v6316_v1 }
 0xdd5   :  { %v909_v18 = vmul.f32 %v6724_v13, %v903_v16  ;;  %v1217_v16 = vld [vmem:[%s7827_s7 + $0x8] sm:$0xff] }
 0xdd7   :  { %v6727_v20 = vadd.f32 %v919_v19, %v909_v18 }
 0xdd9   :  { %930 = vrot.lane.b32.xlu1 %v6727_v20, %s6319_s29 }
 0xddd   :  { %925 = vrot.lane.b32.xlu1 %v923_v26, %s6319_s29 }
 0xde1   :  { %1049 = vperm.xlu1 %5810, %v1046_v27   ;;  %v1218_v27 = vld [vmem:[%s7827_s7 + $0x10] sm:$0xff] }
 0xde5   :  { %1198 = vrot.lane.b32.xlu1 %v1197_v28, %s6320_s27  ;;  %v1219_v28 = vld [vmem:[%s7827_s7 + $0x18] sm:$0xff] }
 0xde9   :  { %1037 = vperm.xlu1 %5810, %v4894_v22  }
 0xe4b   :  { %v931_v30 = vpop.permute.xlu1 %930 }
 0xe4c   :  { %5260 = vmatmul.mubr.msk.f32.vlgmr.msra.gmra.mrb[8].mxu0 %vm278_vm4, %v931_v30 }
 0xe4d   :  { %5627 = vmatpush3.bf16.msra.mxu0 %v5624_v60 }
 0xe4e   :  { %5629 = vmatprep.subr.bf16.mxu0 %v5628_v3 }
 0xe4f   :  { %v926_v31 = vpop.permute.xlu1 %925 }
 0xe50   :  { %v928_v48 = vadd.f32 %v926_v31, %v922_v47 }
 0xe51   :  { %5631 = vmatpush3.bf16.msra.mxu0 %v5628_v3 }
 0xe52   :  { %v1016_v25 = vrot.slane %v928_v48, 4  ;;  %5638 = vmatprep.subr.bf16.mxu0 %v6314_v0 }
 0xe60   :  { %v6738_v32 = vpop.permute.xlu1 %1049 }
 0xe61   :  { %v1052_v33 = vmul.f32 %v6738_v32, %v6727_v20  ;;  %v1064_v11 = vmul.f32 %v6738_v32, %v928_v48 }
 0xe63   :  { %1054 = vrot.lane.b32.xlu1 %v1052_v33, %s6319_s29  ;;  %v6796_v33 = vpack.c.bf16 %v1219_v28, %v1218_v27 }
 0xe64   :  { %v1199_v53 = vpop.permute.xlu1 %1198 }
 0xe65   :  { %v1209_v10 = vsel %vm176_vm1, %v6609_v51, %v1199_v53 }
 0xe68   :  { %v6772_v15 = vpop.permute.xlu1 %1037 }
 0xed5   :  { %v1055_v18 = vpop.permute.xlu1 %1054 }
 0xf1f   :  { %v1000_v34 = vpop.f32.mrb[8].mxu0 }
 0xf20   :  { %v1005_v35 = vrot.slane %v1000_v34, 4  ;;  %v5261_v36 = vpop.f32.mrb[9].mxu0  ;;  %v275_v34 = vadd.f32 %v6613_v52, %v6587_v24 }
 0xf22   :  { %v1007_v37 = vadd.f32 %v1005_v35, %v270_v56 }
 0xf24   :  { %5852 = vtanh.f32 %v1007_v37  ;;  %v4911_v38 = vmul.f32 -1.442695, %v1007_v37 }
 0xf26   :  { %5854 = vpow2.f32 %v4911_v38 }
 0xf2e   :  { %v5853_v29 = vpop.eup %5852 }
 0xf2f   :  { %1020 = vrot.lane.b32.xlu0 %v5853_v29, %s6318_s24 }
 0xf30   :  { %v5855_v39 = vpop.eup %5854 }
 0xf31   :  { %v1011_v41 = vadd.f32 1.0, %v5855_v39  ;;  %v6821_v39 = vld [vmem:[%s7828_s8] ss:$0 sm:$0xff] }
 0xf33   :  { %5856 = vrcp.f32 %v1011_v41 }
 0xf3d   :  { %v5857_v42 = vpop.eup %5856 }
 0xf3e   :  { %v1018_v54 = vmul.f32 %v5857_v42, %v1016_v25 }
 0xfa1   :  { %v1021_v43 = vpop.permute.xlu0 %1020 }
 0xfa2   :  { %v1023_v46 = vmul.f32 %v5857_v42, %v1021_v43 }
 0xfa4   :  { %1025 = vrot.lane.b32.xlu0 %v1023_v46, %s6319_s29 }
0x1016   :  { %v1026_v55 = vpop.permute.xlu0 %1025 }
0x1017   :  { %v1028_v56 = vadd.f32 %v1026_v55, %v1018_v54 }
0x1019   :  { %5858 = vtanh.f32 %v1028_v56  ;;  %v1059_v12 = vrot.slane %v1028_v56, 4 }
0x1023   :  { %v5859_v57 = vpop.eup %5858 }
0x1024   :  { %1031 = vrot.lane.b32.xlu0 %v5859_v57, %s6318_s24 }
0x1028   :  { %1202 = vrot.lane.b32.xlu0 %v1201_v61, %s6320_s27 }
0x1096   :  { %v1032_v17 = vpop.permute.xlu0 %1031 }
0x1097   :  { %v1034_v4 = vmul.f32 %v5857_v42, %v1032_v17  ;;  %v1178_v17 = vsub.f32 1.0, %v4895_v2 }
0x1099   :  { %v1041_v44 = vrot.slane %v1034_v4, 4 }
0x109a   :  { %v1203_v5 = vpop.permute.xlu0 %1202 }
0x109b   :  { %1042 = vrot.lane.b32.xlu0 %v1041_v44, %s6319_s29  ;;  %v1210_v8 = vsel %vm176_vm1, %v6670_v63, %v1203_v5  ;;  %v1216_v63 = vld [vmem:[%s7827_s7] sm:$0xff] }
0x109c   :  { %1233 = vrot.lane.b32.xlu1 %v1210_v8, %s6319_s29  ;;  %v6781_v22 = vpack.c.bf16 %v1217_v16, %v1216_v63 }
0x109f   :  { %1231 = vrot.lane.b32.xlu0 %v1209_v10, %s6319_s29 }
0x10a0   :  { %1066 = vrot.lane.b32.xlu1 %v1064_v11, %s6320_s27 }
0x10a3   :  { %1060 = vrot.lane.b32.xlu0 %v1059_v12, %s6320_s27 }
0x110d   :  { %v1043_v51 = vpop.permute.xlu0 %1042 }
0x110e   :  { %v1045_v19 = vmul.f32 %v1043_v51, %v6772_v15  ;;  %v1234_v31 = vpop.permute.xlu1 %1233 }
0x1110   :  { %v6783_v26 = vadd.f32 %v1055_v18, %v1045_v19 }
0x1111   :  { %v1232_v30 = vpop.permute.xlu0 %1231 }
0x1112   :  { %5271 = vmatmul.mubr.msk.f32.vlgmr.msra.gmra.mrb[6].mxu1 %vm278_vm4, %v6783_v26  ;;  %5281 = vmatprep.mubr.msk.f32.mxu0 %vm278_vm4, %v1232_v30  ;;  %v1067_v48 = vpop.permute.xlu1 %1066  ;;  %v1205_v51 = vrot.slane %v6783_v26, 4 }
0x1113   :  { %5634 = vmatpush3.bf16.msra.mxu1 %v6781_v22  ;;  %5282 = vmatmul.mubr.msk.f32.vlgmr.msra.gmra.mrb[10].mxu0 %vm278_vm4, %v1234_v31 }
0x1114   :  { %5635 = vmatprep.subr.bf16.mxu1 %v6314_v0  ;;  %5295 = vmatprep.mubr.msk.f32.mxu1 %vm6315_vm0, %v6316_v1 }
0x1115   :  { %5640 = vmatpush3.bf16.msra.mxu0 %v6781_v22  ;;  %v1061_v43 = vpop.permute.xlu0 %1060 }
0x1116   :  { %5641 = vmatprep.subr.bf16.mxu0 %v6314_v0  ;;  %v1063_v52 = vmul.f32 %v1061_v43, %v6772_v15 }
0x1117   :  { %5637 = vmatpush3.bf16.msra.mxu1 %v6796_v33 }
0x1118   :  { %5644 = vmatprep.subr.bf16.mxu1 %v6314_v0  ;;  %v6829_v25 = vadd.f32 %v1067_v48, %v1063_v52 }
0x1119   :  { %5643 = vmatpush3.bf16.msra.mxu0 %v6796_v33 }
0x111a   :  { %5296 = vmatmul.mubr.f32.vlgmr.msra.gmra.mrb[8].mxu1 %v6316_v1  ;;  %5650 = vmatprep.subr.bf16.mxu0 %v6314_v0 }
0x111b   :  { %5646 = vmatpush3.bf16.msra.mxu1 %v6781_v22  ;;  %5317 = vmatprep.mubr.msk.f32.mxu1 %vm6315_vm0, %v6316_v1 }
0x111c   :  { %5647 = vmatprep.subr.bf16.mxu1 %v6314_v0 }
0x111f   :  { %5649 = vmatpush3.bf16.msra.mxu1 %v6796_v33 }
0x1120   :  { %5656 = vmatprep.subr.bf16.mxu1 %v6314_v0 }
0x11e5   :  { %v1139_v35 = vpop.f32.mrb[6].mxu1 }
0x11e6   :  { %v1143_v36 = vadd.f32 %v1139_v35, %v275_v34  ;;  %v5272_v37 = vpop.f32.mrb[7].mxu1  ;;  %v6816_v29 = vpop.f32.mrb[10].mxu0 }
0x11e7   :  { %v1313_v38 = vpop.f32.mrb[11].mxu0 }
0x11e8   :  { %5860 = vtanh.f32 %v1143_v36  ;;  %v6824_v41 = vadd.f32 %v6821_v39, %v1313_v38  ;;  %v4913_v55 = vmul.f32 -1.442695, %v1143_v36 }
0x11ed   :  { %v1398_v42 = vpop.f32.mrb[8].mxu1 }
0x11ee   :  { %v1402_v46 = vadd.f32 %v1398_v42, %v6824_v41  ;;  %v5297_v24 = vpop.f32.mrb[9].mxu1 }
0x11f0   :  { %5862 = vtanh.f32 %v1402_v46  ;;  %v4919_v56 = vmul.f32 -1.442695, %v1402_v46 }
0x11f1   :  { %5864 = vpow2.f32 %v4913_v55 }
0x11f2   :  { %v5861_v47 = vpop.eup %5860  ;;  %5866 = vpow2.f32 %v4919_v56 }
0x11f3   :  { %1157 = vrot.lane.b32.xlu0 %v5861_v47, %s6318_s24 }
0x11f7   :  { %1152 = vrot.lane.b32.xlu0 %v6829_v25, %s6319_s29 }
0x11fa   :  { %v5863_v54 = vpop.eup %5862 }
0x11fb   :  { %1412 = vrot.lane.b32.xlu1 %v5863_v54, %s6318_s24  ;;  %v5865_v57 = vpop.eup %5864 }
0x11fc   :  { %v1147_v59 = vadd.f32 1.0, %v5865_v57  ;;  %v5867_v9 = vpop.eup %5866 }
0x11fd   :  { %v1406_v60 = vadd.f32 1.0, %v5867_v9 }
0x11fe   :  { %5868 = vrcp.f32 %v1147_v59 }
0x11ff   :  { %5870 = vrcp.f32 %v1406_v60 }
0x1208   :  { %v5869_v61 = vpop.eup %5868 }
0x1209   :  { %v5871_v4 = vpop.eup %5870 }
0x120a   :  { %v1410_v11 = vmul.f32 0.0, %v5871_v4 }
0x1265   :  { %v1158_v62 = vpop.permute.xlu0 %1157 }
0x1266   :  { %v1160_v3 = vmul.f32 %v5869_v61, %v1158_v62 }
0x1268   :  { %1162 = vrot.lane.b32.xlu1 %v1160_v3, %s6319_s29 }
0x1269   :  { %v1153_v53 = vpop.permute.xlu0 %1152 }
0x126a   :  { %v1155_v8 = vmul.f32 %v5869_v61, %v1153_v53 }
0x126c   :  { %1181 = vperm.xlu1 %5810, %v1178_v17  }
0x126d   :  { %v1413_v44 = vpop.permute.xlu1 %1412 }
0x126e   :  { %v1415_v5 = vmul.f32 %v5871_v4, %v1413_v44 }
0x1270   :  { %1417 = vrot.lane.b32.xlu0 %v1415_v5, %s6319_s29 }
0x1274   :  { %1174 = vperm.xlu0 %5811, %v4895_v2  }
0x12da   :  { %v1163_v10 = vpop.permute.xlu1 %1162 }
0x12db   :  { %v6838_v21 = vadd.f32 %v1163_v10, %v1155_v8 }
0x12dd   :  { %5872 = vtanh.f32 %v6838_v21 }
0x12e2   :  { %v1418_v12 = vpop.permute.xlu0 %1417 }
0x12e3   :  { %v1420_v63 = vadd.f32 %v1418_v12, %v1410_v11 }
0x12e5   :  { %5874 = vtanh.f32 %v1420_v63  ;;  %v1429_v17 = vmul.f32 %v1420_v63, %v6603_v45 }
0x12e7   :  { %v5873_v16 = vpop.eup %5872 }
0x12e8   :  { %1168 = vrot.lane.b32.xlu1 %v5873_v16, %s6318_s24 }
0x12eb   :  { %v6843_v18 = vpop.permute.xlu1 %1181 }
0x12ec   :  { %1206 = vrot.lane.b32.xlu1 %v1205_v51, %s6320_s27  ;;  %v1184_v19 = vmul.f32 %v6843_v18, %v6783_v26 }
0x12ee   :  { %1186 = vrot.lane.b32.xlu0 %v1184_v19, %s6320_s27 }
0x12ef   :  { %v5875_v27 = vpop.eup %5874 }
0x12f2   :  { %1423 = vrot.lane.b32.xlu0 %v5875_v27, %s6318_s24 }
0x12f3   :  { %v6850_v31 = vpop.permute.xlu0 %1174 }
0x135a   :  { %v1169_v28 = vpop.permute.xlu1 %1168 }
0x135b   :  { %v1171_v30 = vmul.f32 %v5869_v61, %v1169_v28 }
0x135d   :  { %v1177_v36 = vmul.f32 %v6850_v31, %v1171_v30 }
0x135e   :  { %v1207_v34 = vpop.permute.xlu1 %1206 }
0x135f   :  { %v1211_v35 = vsel %vm176_vm1, %v6727_v20, %v1207_v34 }
0x1360   :  { %1235 = vrot.lane.b32.xlu1 %v1211_v35, %s6319_s29  ;;  %v1187_v37 = vpop.permute.xlu0 %1186 }
0x1361   :  { %v6856_v38 = vadd.f32 %v1187_v37, %v1177_v36 }
0x1363   :  { %1237 = vrot.lane.b32.xlu0 %v6856_v38, %s6319_s29 }
0x1364   :  { %v1424_v26 = vpop.permute.xlu0 %1423 }
0x1365   :  { %v1426_v42 = vmul.f32 %v5871_v4, %v1424_v26  ;;  %v1430_v4 = vadd.f32 %v1429_v17, %v6605_v49 }
0x1367   :  { %v1427_v43 = vmul.f32 %v1426_v42, %v6603_v45  ;;  %v1518_v44 = vrot.slane %v1430_v4, 4  ;;  %v1555_v11 = vmul.f32 %v1430_v4, %v6631_v14 }
0x1369   :  { %v1428_v46 = vadd.f32 %v1427_v43, %v6605_v49 }
0x136b   :  { %1432 = vrot.lane.b32.xlu1 %v1428_v46, %s6319_s29  ;;  %v1543_v10 = vmul.f32 %v1428_v46, %v6631_v14 }
0x13d2   :  { %v1236_v24 = vpop.permute.xlu1 %1235 }
0x13d3   :  { %5284 = vmatprep.mubr.msk.f32.mxu0 %vm278_vm4, %v1236_v24 }
0x13d5   :  { %v6864_v20 = vpop.permute.xlu0 %1237 }
0x13d6   :  { %2171 = vst.msk [vmem:[#allocation15] sm:$0xf] %vm2170_vm11, %v6864_v20  ;;  %5285 = vmatmul.mubr.msk.f32.gmra.mrb[12].mxu0 %vm278_vm4, %v6864_v20 }
0x13d7   :  { %5306 = vmatprep.mubr.msk.f32.mxu0 %vm6315_vm0, %v6316_v1 }
0x13dd   :  { %v1433_v52 = vpop.permute.xlu1 %1432 }
0x13de   :  { %5307 = vmatmul.mubr.msk.f32.vlgmr.msra.gmra.mrb[14].mxu0 %vm278_vm4, %v1433_v52 }
0x13df   :  { %5652 = vmatpush3.bf16.msra.mxu0 %v6781_v22  ;;  %5328 = vmatprep.mubr.msk.f32.mxu0 %vm6315_vm0, %v6316_v1 }
0x13e0   :  { %5653 = vmatprep.subr.bf16.mxu0 %v6314_v0 }
0x13e3   :  { %5655 = vmatpush3.bf16.msra.mxu0 %v6796_v33 }
0x13e4   :  { %5662 = vmatprep.subr.bf16.mxu0 %v6314_v0 }
0x14a9   :  { %v6879_v47 = vpop.f32.mrb[12].mxu0 }
0x14aa   :  { %v6881_v48 = vpop.f32.mrb[13].mxu0 }
0x14b1   :  { %v1502_v54 = vpop.f32.mrb[14].mxu0 }
0x14b2   :  { %v1507_v55 = vrot.slane %v1502_v54, 4  ;;  %v5308_v56 = vpop.f32.mrb[15].mxu0 }
0x14b4   :  { %v1509_v57 = vadd.f32 %v1507_v55, %v6824_v41 }
0x14b6   :  { %5876 = vtanh.f32 %v1509_v57  ;;  %v4921_v9 = vmul.f32 -1.442695, %v1509_v57 }
0x14b8   :  { %5878 = vpow2.f32 %v4921_v9 }
0x14c0   :  { %v5877_v59 = vpop.eup %5876 }
0x14c1   :  { %1522 = vrot.lane.b32.xlu0 %v5877_v59, %s6318_s24 }
0x14c2   :  { %v5879_v60 = vpop.eup %5878 }
0x14c3   :  { %v1513_v61 = vadd.f32 1.0, %v5879_v60 }
0x14c5   :  { %5880 = vrcp.f32 %v1513_v61 }
0x14cf   :  { %v5881_v62 = vpop.eup %5880 }
0x14d0   :  { %v1520_v41 = vmul.f32 %v5881_v62, %v1518_v44 }
0x1533   :  { %v1523_v2 = vpop.permute.xlu0 %1522 }
0x1534   :  { %v1525_v3 = vmul.f32 %v5881_v62, %v1523_v2 }
0x1536   :  { %1527 = vrot.lane.b32.xlu1 %v1525_v3, %s6319_s29 }
0x15a8   :  { %v1528_v5 = vpop.permute.xlu1 %1527 }
0x15a9   :  { %v1530_v53 = vadd.f32 %v1528_v5, %v1520_v41 }
0x15ab   :  { %5882 = vtanh.f32 %v1530_v53  ;;  %v1550_v49 = vrot.slane %v1530_v53, 4 }
0x15b5   :  { %v5883_v8 = vpop.eup %5882 }
0x15b6   :  { %1533 = vrot.lane.b32.xlu0 %v5883_v8, %s6318_s24 }
0x15ba   :  { %1545 = vrot.lane.b32.xlu0 %v1543_v10, %s6319_s29 }
0x15be   :  { %1557 = vrot.lane.b32.xlu0 %v1555_v11, %s6320_s27 }
0x1628   :  { %v1534_v12 = vpop.permute.xlu0 %1533 }
0x1629   :  { %v1536_v45 = vmul.f32 %v5881_v62, %v1534_v12 }
0x162b   :  { %v1538_v63 = vrot.slane %v1536_v45, 4 }
0x162c   :  { %v1546_v16 = vpop.permute.xlu0 %1545 }
0x162d   :  { %1539 = vrot.lane.b32.xlu1 %v1538_v63, %s6319_s29 }
0x1630   :  { %v1558_v14 = vpop.permute.xlu0 %1557 }
0x1631   :  { %1551 = vrot.lane.b32.xlu1 %v1550_v49, %s6320_s27 }
0x169f   :  { %v1540_v51 = vpop.permute.xlu1 %1539 }
0x16a0   :  { %v1542_v19 = vmul.f32 %v1540_v51, %v6640_v23 }
0x16a2   :  { %v1548_v27 = vadd.f32 %v1546_v16, %v1542_v19 }
0x16a3   :  { %v1552_v28 = vpop.permute.xlu1 %1551 }
0x16a4   :  { %v1554_v30 = vmul.f32 %v1552_v28, %v6640_v23  ;;  %5318 = vmatmul.mubr.msk.f32.vlgmr.msra.gmra.mrb[10].mxu1 %vm278_vm4, %v1548_v27  ;;  %v1319_v23 = vadd.f32 %v6816_v29, %v6821_v39  ;;  %v1664_v55 = vmul.f32 %v1548_v27, %v6661_v50 }
0x16a5   :  { %5658 = vmatpush3.bf16.msra.mxu1 %v6781_v22  ;;  %5339 = vmatprep.mubr.msk.f32.mxu1 %vm6315_vm0, %v6316_v1 }
0x16a6   :  { %v1560_v34 = vadd.f32 %v1558_v14, %v1554_v30  ;;  %5659 = vmatprep.subr.bf16.mxu1 %v6314_v0 }
0x16a8   :  { %1643 = vrot.lane.b32.xlu0 %v1560_v34, %s6319_s29  ;;  %v1671_v17 = vmul.f32 %v1560_v34, %v6661_v50 }
0x16a9   :  { %5661 = vmatpush3.bf16.msra.mxu1 %v6796_v33 }
0x16aa   :  { %5668 = vmatprep.subr.bf16.mxu1 %v6314_v0 }
0x171a   :  { %v1644_v29 = vpop.permute.xlu0 %1643 }
0x1777   :  { %v1630_v35 = vpop.f32.mrb[10].mxu1 }
0x1778   :  { %v1634_v36 = vadd.f32 %v1630_v35, %v1319_v23  ;;  %v5319_v37 = vpop.f32.mrb[11].mxu1 }
0x177a   :  { %5884 = vtanh.f32 %v1634_v36  ;;  %v4923_v42 = vmul.f32 -1.442695, %v1634_v36 }
0x177c   :  { %5886 = vpow2.f32 %v4923_v42 }
0x1784   :  { %v5885_v26 = vpop.eup %5884 }
0x1785   :  { %1648 = vrot.lane.b32.xlu1 %v5885_v26, %s6318_s24 }
0x1786   :  { %v5887_v43 = vpop.eup %5886 }
0x1787   :  { %v1638_v46 = vadd.f32 1.0, %v5887_v43 }
0x1789   :  { %5888 = vrcp.f32 %v1638_v46 }
0x1793   :  { %v5889_v24 = vpop.eup %5888 }
0x1794   :  { %v1646_v56 = vmul.f32 %v5889_v24, %v1644_v29 }
0x17f7   :  { %v1649_v52 = vpop.permute.xlu1 %1648 }
0x17f8   :  { %v1651_v54 = vmul.f32 %v5889_v24, %v1649_v52 }
0x17fa   :  { %1653 = vrot.lane.b32.xlu1 %v1651_v54, %s6319_s29 }
0x17fe   :  { %1666 = vrot.lane.b32.xlu1 %v1664_v55, %s6320_s27 }
0x186c   :  { %v1654_v57 = vpop.permute.xlu1 %1653 }
0x186d   :  { %v1656_v59 = vadd.f32 %v1654_v57, %v1646_v56 }
0x186f   :  { %5890 = vtanh.f32 %v1656_v59  ;;  %v1670_v16 = vmul.f32 %v1656_v59, %v6667_v58 }
0x1870   :  { %v1667_v2 = vpop.permute.xlu1 %1666 }
0x1879   :  { %v5891_v9 = vpop.eup %5890 }
0x187a   :  { %1659 = vrot.lane.b32.xlu0 %v5891_v9, %s6318_s24 }
0x18ec   :  { %v1660_v60 = vpop.permute.xlu0 %1659 }
0x18ed   :  { %v1662_v61 = vmul.f32 %v5889_v24, %v1660_v60 }
0x18ef   :  { %v1663_v62 = vmul.f32 %v1662_v61, %v6667_v58 }
0x18f1   :  { %v1669_v3 = vadd.f32 %v1667_v2, %v1663_v62 }
0x18f3   :  { %1678 = vrot.lane.b32.xlu0 %v1669_v3, %s6319_s29  ;;  %v1789_v34 = vmul.f32 %v1669_v3, %v6684_v7 }
0x18f7   :  { %1673 = vrot.lane.b32.xlu0 %v1671_v17, %s6319_s29 }
0x1965   :  { %v1679_v4 = vpop.permute.xlu0 %1678 }
0x1966   :  { %5329 = vmatmul.mubr.msk.f32.vlgmr.msra.gmra.mrb[16].mxu0 %vm278_vm4, %v1679_v4 }
0x1967   :  { %5664 = vmatpush3.bf16.msra.mxu0 %v6781_v22  ;;  %5350 = vmatprep.mubr.msk.f32.mxu0 %vm6315_vm0, %v6316_v1 }
0x1968   :  { %5665 = vmatprep.subr.bf16.mxu0 %v6314_v0 }
0x1969   :  { %v1674_v49 = vpop.permute.xlu0 %1673 }
0x196a   :  { %v1676_v51 = vadd.f32 %v1674_v49, %v1670_v16  ;;  %v6070_v49 = vld [vmem:[%s7857_s5] sm:$0xff] }
0x196b   :  { %5667 = vmatpush3.bf16.msra.mxu0 %v6796_v33 }
0x196c   :  { %v1764_v19 = vrot.slane %v1676_v51, 4 }
0x1a39   :  { %v1748_v44 = vpop.f32.mrb[16].mxu0 }
0x1a3a   :  { %v1753_v41 = vrot.slane %v1748_v44, 4  ;;  %v5330_v5 = vpop.f32.mrb[17].mxu0  ;;  %v2214_v44 = vld [vmem:[#allocation5] sm:$0xff] }
0x1a3c   :  { %v1755_v53 = vadd.f32 %v1753_v41, %v1319_v23  ;;  %v1801_v23 = vmul.f32 %v1676_v51, %v6684_v7  ;;  %v2215_v41 = vld [vmem:[#allocation5 + $0x8] sm:$0xff]  ;;  %v2218_v51 = vld [vmem:[#allocation7 + $0x10] sm:$0xff] }
0x1a3d   :  { %v5674_v5 = vpack.c.bf16 %v2215_v41, %v2214_v44 }
0x1a3e   :  { %5892 = vtanh.f32 %v1755_v53  ;;  %v4925_v8 = vmul.f32 -1.442695, %v1755_v53 }
0x1a3f   :  { %5675 = vmatprep.subr.bf16.mxu0 %v5674_v5 }
0x1a40   :  { %5894 = vpow2.f32 %v4925_v8 }
0x1a48   :  { %v5893_v50 = vpop.eup %5892 }
0x1a49   :  { %1768 = vrot.lane.b32.xlu1 %v5893_v50, %s6318_s24 }
0x1a4a   :  { %v5895_v10 = vpop.eup %5894 }
0x1a4b   :  { %v1759_v11 = vadd.f32 1.0, %v5895_v10 }
0x1a4d   :  { %5896 = vrcp.f32 %v1759_v11 }
0x1a57   :  { %v5897_v12 = vpop.eup %5896 }
0x1a58   :  { %v1766_v27 = vmul.f32 %v5897_v12, %v1764_v19  ;;  %v2219_v19 = vld [vmem:[#allocation7 + $0x18] sm:$0xff] }
0x1abb   :  { %v1769_v45 = vpop.permute.xlu1 %1768 }
0x1abc   :  { %v1771_v63 = vmul.f32 %v5897_v12, %v1769_v45  ;;  %v2217_v45 = vld [vmem:[#allocation7 + $0x8] sm:$0xff] }
0x1abe   :  { %1773 = vrot.lane.b32.xlu1 %v1771_v63, %s6319_s29 }
0x1b30   :  { %v1774_v28 = vpop.permute.xlu1 %1773 }
0x1b31   :  { %v1776_v30 = vadd.f32 %v1774_v28, %v1766_v27  ;;  %v6071_v27 = vld [vmem:[%s7857_s5 + $0x8] sm:$0xff]  ;;  %v6072_v28 = vld [vmem:[%s7857_s5 + $0x10] sm:$0xff] }
0x1b33   :  { %5898 = vtanh.f32 %v1776_v30  ;;  %v1796_v37 = vrot.slane %v1776_v30, 4  ;;  %v6980_v30 = vpack.c.bf16 %v2219_v19, %v2218_v51 }
0x1b3d   :  { %v5899_v14 = vpop.eup %5898 }
0x1b3e   :  { %1779 = vrot.lane.b32.xlu0 %v5899_v14, %s6318_s24  ;;  %v6073_v14 = vld [vmem:[%s7857_s5 + $0x18] sm:$0xff] }
0x1b42   :  { %1791 = vrot.lane.b32.xlu0 %v1789_v34, %s6319_s29 }
0x1b46   :  { %1803 = vrot.lane.b32.xlu0 %v1801_v23, %s6320_s27 }
0x1bb0   :  { %v1780_v35 = vpop.permute.xlu0 %1779 }
0x1bb1   :  { %v1782_v36 = vmul.f32 %v5897_v12, %v1780_v35  ;;  %v2216_v12 = vld [vmem:[#allocation7] sm:$0xff] }
0x1bb2   :  { %v6968_v16 = vpack.c.bf16 %v2217_v45, %v2216_v12 }
0x1bb3   :  { %v1784_v58 = vrot.slane %v1782_v36, 4  ;;  %v4941_v36 = vld [vmem:[%s7831_s11] ss:$0 sm:$0xff]  ;;  %s6321_s11 = smov [#allocation15]  }
0x1bb4   :  { %v1792_v26 = vpop.permute.xlu0 %1791  ;;  %s4848_s15 = sshll.u32 %s6321_s11, 4  ;;  %s4849_s15 = int_to_ptr.vmem [resolvable:$true] %s4848_s15 }
0x1bb5   :  { %1785 = vrot.lane.b32.xlu1 %v1784_v58, %s6319_s29  ;;  %p6190_p13 = scmp.lt.s32.totalorder %s4849_s15, %s4849_s15 }
0x1bb8   :  { %v1804_v7 = vpop.permute.xlu0 %1803 }
0x1bb9   :  { %1797 = vrot.lane.b32.xlu1 %v1796_v37, %s6320_s27 }
0x1c27   :  { %v1786_v42 = vpop.permute.xlu1 %1785 }
0x1c28   :  { %v1788_v43 = vmul.f32 %v1786_v42, %v6697_v40 }
0x1c2a   :  { %v1794_v46 = vadd.f32 %v1792_v26, %v1788_v43 }
0x1c2b   :  { %v1798_v24 = vpop.permute.xlu1 %1797 }
0x1c2c   :  { %v1800_v52 = vmul.f32 %v1798_v24, %v6697_v40  ;;  %5340 = vmatmul.mubr.msk.f32.vlgmr.msra.gmra.mrb[12].mxu1 %vm278_vm4, %v1794_v46  ;;  %v6947_v40 = vadd.f32 %v6821_v39, %v6881_v48  ;;  %v1910_v48 = vmul.f32 %v1794_v46, %v6718_v6 }
0x1c2d   :  { %5670 = vmatpush3.bf16.msra.mxu1 %v6781_v22  ;;  %5361 = vmatprep.mubr.msk.f32.mxu1 %vm6315_vm0, %v6316_v1 }
0x1c2e   :  { %v6938_v54 = vadd.f32 %v1804_v7, %v1800_v52  ;;  %5671 = vmatprep.subr.bf16.mxu1 %v6314_v0 }
0x1c30   :  { %1889 = vrot.lane.b32.xlu0 %v6938_v54, %s6319_s29 }
0x1c31   :  { %5673 = vmatpush3.bf16.msra.mxu1 %v6796_v33 }
0x1c32   :  { %5684 = vmatprep.subr.bf16.mxu1 %v6314_v0 }
0x1ca2   :  { %v1890_v62 = vpop.permute.xlu0 %1889 }
0x1cff   :  { %v1876_v55 = vpop.f32.mrb[12].mxu1 }
0x1d00   :  { %v1880_v22 = vadd.f32 %v1876_v55, %v6947_v40  ;;  %v5341_v29 = vpop.f32.mrb[13].mxu1 }
0x1d02   :  { %5900 = vtanh.f32 %v1880_v22  ;;  %v4927_v57 = vmul.f32 -1.442695, %v1880_v22 }
0x1d04   :  { %5902 = vpow2.f32 %v4927_v57 }
0x1d0c   :  { %v5901_v56 = vpop.eup %5900 }
0x1d0d   :  { %1894 = vrot.lane.b32.xlu1 %v5901_v56, %s6318_s24  ;;  %v1191_v56 = vmul.f32 %v6843_v18, %v6829_v25  ;;  %v6074_v25 = vld [vmem:[%s7858_s28] sm:$0xf]  ;;  %s6185_s28 = scalar_lea.vmem %s4849_s15, 128 }
0x1d0e   :  { %v5903_v59 = vpop.eup %5902  ;;  %p6186_p12 = scmp.ne.s32.totalorder %s4849_s15, %s6185_s28  ;;  %p6191_p0 = scmp.lt.s32.totalorder %s6185_s28, %s6185_s28 }
0x1d0f   :  { %v1884_v9 = vadd.f32 1.0, %v5903_v59 }
0x1d10   :  { %p6192_p1 = por %p6191_p0, %p6190_p13 }
0x1d11   :  { %5904 = vrcp.f32 %v1884_v9 }
0x1d12   :  { %p6193_p2 = pnand %p6192_p1, %p6186_p12 }
0x1d1b   :  { %v5905_v33 = vpop.eup %5904 }
0x1d1c   :  { %v1892_v2 = vmul.f32 %v5905_v33, %v1890_v62 }
0x1d7f   :  { %v1895_v60 = vpop.permute.xlu1 %1894 }
0x1d80   :  { %v1897_v61 = vmul.f32 %v5905_v33, %v1895_v60 }
0x1d82   :  { %1899 = vrot.lane.b32.xlu1 %v1897_v61, %s6319_s29 }
0x1d86   :  { %1912 = vrot.lane.b32.xlu1 %v1910_v48, %s6320_s27 }
0x1df4   :  { %v1900_v3 = vpop.permute.xlu1 %1899 }
0x1df5   :  { %v6954_v17 = vadd.f32 %v1900_v3, %v1892_v2  ;;  %v7024_v2 = vadd.s32 4294967295, %v6074_v25 }
0x1df7   :  { %5906 = vtanh.f32 %v6954_v17  ;;  %vm2190_vm12 = vcmp.gt.s32.totalorder %v7024_v2, 0  ;;  %vm2193_vm13 = vcmp.gt.s32.totalorder %v7024_v2, 1  ;;  %vm2196_vm14 = vcmp.gt.s32.totalorder %v7024_v2, 2 }
0x1df8   :  { %v1913_v10 = vpop.permute.xlu1 %1912  ;;  %v7029_v41 = vsel %vm2190_vm12, 1.0, %v6316_v1  ;;  %vm2199_vm15 = vcmp.gt.s32.totalorder %v7024_v2, 3  ;;  %vm2205_vm3 = vcmp.gt.s32.totalorder %v7024_v2, 5  ;;  %vm2208_vm5 = vcmp.gt.s32.totalorder %v7024_v2, 6 }
0x1df9   :  { %vm2211_vm6 = vcmp.gt.s32.totalorder %v7024_v2, 7 }
0x1e01   :  { %v5907_v4 = vpop.eup %5906 }
0x1e02   :  { %1905 = vrot.lane.b32.xlu0 %v5907_v4, %s6318_s24 }
0x1e74   :  { %v1906_v53 = vpop.permute.xlu0 %1905 }
0x1e75   :  { %v1908_v50 = vmul.f32 %v5905_v33, %v1906_v53  ;;  %v1916_v53 = vmul.f32 %v6954_v17, %v6724_v13 }
0x1e77   :  { %v1909_v8 = vmul.f32 %v1908_v50, %v6724_v13 }
0x1e79   :  { %v6959_v11 = vadd.f32 %v1913_v10, %v1909_v8 }
0x1e7b   :  { %1924 = vrot.lane.b32.xlu0 %v6959_v11, %s6319_s29 }
0x1eed   :  { %v1925_v63 = vpop.permute.xlu0 %1924 }
0x1eee   :  { %5351 = vmatmul.mubr.msk.f32.vlgmr.msra.gmra.mrb[18].mxu0 %vm278_vm4, %v1925_v63 }
0x1eef   :  { %5677 = vmatpush3.bf16.msra.mxu0 %v5674_v5  ;;  %5368 = vmatprep.mubr.msk.f32.mxu0 %vm184_vm2, %v6070_v49  ;;  %v1190_v49 = vmul.f32 %v6850_v31, %v6838_v21  ;;  %v2035_v21 = vmul.f32 %v6959_v11, %v6738_v32 }
0x1ef0   :  { %5678 = vmatprep.subr.bf16.mxu0 %v6314_v0 }
0x1ef2   :  { %5369 = vmatmul.mubr.msk.f32.vlgmr.msra.gmra.mrb[20].mxu0 %vm184_vm2, %v6071_v27 }
0x1ef3   :  { %5680 = vmatpush3.bf16.msra.mxu0 %v6968_v16  ;;  %5371 = vmatprep.mubr.msk.f32.mxu0 %vm184_vm2, %v6072_v28  ;;  %v2421_v28 = vsub.f32 1.0, %v7029_v41 }
0x1ef4   :  { %5681 = vmatprep.subr.bf16.mxu0 %v6314_v0 }
0x1ef6   :  { %5372 = vmatmul.mubr.msk.f32.gmra.mrb[22].mxu0 %vm184_vm2, %v6073_v14  ;;  %vm2202_vm2 = vcmp.gt.s32.totalorder %v7024_v2, 4 }
0x1ef7   :  { %5683 = vmatpush3.bf16.msra.mxu0 %v6980_v30  ;;  %5382 = vmatprep.mubr.msk.f32.mxu0 %vm6315_vm0, %v6316_v1 }
0x1ef8   :  { %5690 = vmatprep.subr.bf16.mxu0 %v6314_v0 }
0x1efa   :  { %5383 = vmatmul.mubr.msk.f32.vlgmr.msra.gmra.mrb[24].mxu0 %vm278_vm4, %v6864_v20 }
0x1efb   :  { %5692 = vmatpush3.bf16.msra.mxu0 %v6968_v16  ;;  %5404 = vmatprep.mubr.msk.f32.mxu0 %vm6315_vm0, %v6316_v1 }
0x1efc   :  { %5693 = vmatprep.subr.bf16.mxu0 %v6314_v0 }
0x1eff   :  { %5695 = vmatpush3.bf16.msra.mxu0 %v6980_v30 }
0x1f00   :  { %5702 = vmatprep.subr.bf16.mxu0 %v6314_v0 }
0x1fc1   :  { %v1994_v34 = vpop.f32.mrb[18].mxu0 }
0x1fc2   :  { %v1999_v23 = vrot.slane %v1994_v34, 4  ;;  %v5352_v35 = vpop.f32.mrb[19].mxu0 }
0x1fc4   :  { %v2001_v20 = vadd.f32 %v1999_v23, %v6947_v40  ;;  %v1917_v40 = vmul.f32 %v6938_v54, %v6718_v6 }
0x1fc5   :  { %v5370_v58 = vpop.f32.mrb[20].mxu0 }
0x1fc6   :  { %5908 = vtanh.f32 %v2001_v20  ;;  %v7003_v37 = vadd.f32 %v5370_v58, %v4941_v36  ;;  %v2301_v26 = vpop.f32.mrb[21].mxu0  ;;  %v4929_v59 = vmul.f32 -1.442695, %v2001_v20 }
0x1fc7   :  { %v7005_v43 = vadd.f32 %v4941_v36, %v2301_v26 }
0x1fc9   :  { %v5373_v42 = vpop.f32.mrb[22].mxu0 }
0x1fca   :  { %v7007_v46 = vadd.f32 %v5373_v42, %v4941_v36  ;;  %v2311_v24 = vpop.f32.mrb[23].mxu0 }
0x1fcb   :  { %v7009_v52 = vadd.f32 %v4941_v36, %v2311_v24 }
0x1fcd   :  { %v2386_v7 = vpop.f32.mrb[24].mxu0 }
0x1fce   :  { %v2390_v55 = vadd.f32 %v2386_v7, %v7005_v43  ;;  %v5384_v22 = vpop.f32.mrb[25].mxu0 }
0x1fd0   :  { %v5909_v29 = vpop.eup %5908  ;;  %5910 = vtanh.f32 %v2390_v55  ;;  %v4947_v9 = vmul.f32 -1.442695, %v2390_v55 }
0x1fd1   :  { %2014 = vrot.lane.b32.xlu1 %v5909_v29, %s6318_s24  ;;  %5912 = vpow2.f32 %v4929_v59 }
0x1fd2   :  { %5914 = vpow2.f32 %v4947_v9 }
0x1fd5   :  { %1919 = vrot.lane.b32.xlu1 %v1917_v40, %s6319_s29  ;;  %v1329_v40 = vadd.f32 %v6879_v47, %v6821_v39 }
0x1fd9   :  { %1193 = vrot.lane.b32.xlu1 %v1191_v56, %s6319_s29 }
0x1fda   :  { %v5911_v57 = vpop.eup %5910 }
0x1fdb   :  { %2400 = vrot.lane.b32.xlu0 %v5911_v57, %s6318_s24  ;;  %v5913_v33 = vpop.eup %5912 }
0x1fdc   :  { %v2005_v60 = vadd.f32 1.0, %v5913_v33  ;;  %v5915_v61 = vpop.eup %5914 }
0x1fdd   :  { %v2394_v48 = vadd.f32 1.0, %v5915_v61 }
0x1fde   :  { %5916 = vrcp.f32 %v2005_v60 }
0x1fdf   :  { %5918 = vrcp.f32 %v2394_v48  ;;  %v7091_v48 = vsel %vm2193_vm13, 1.0, %v6316_v1 }
0x1fe0   :  { %v2549_v39 = vsub.f32 1.0, %v7091_v48 }
0x1fe8   :  { %v5917_v6 = vpop.eup %5916 }
0x1fe9   :  { %v5919_v3 = vpop.eup %5918 }
0x2043   :  { %v2015_v54 = vpop.permute.xlu1 %2014 }
0x2044   :  { %v2017_v62 = vmul.f32 %v5917_v6, %v2015_v54 }
0x2046   :  { %2019 = vrot.lane.b32.xlu0 %v2017_v62, %s6319_s29 }
0x2047   :  { %v1920_v5 = vpop.permute.xlu1 %1919 }
0x2048   :  { %v7034_v50 = vadd.f32 %v1920_v5, %v1916_v53 }
0x204a   :  { %v2010_v8 = vrot.slane %v7034_v50, 4 }
0x204b   :  { %v1194_v63 = vpop.permute.xlu1 %1193 }
0x204c   :  { %v2012_v10 = vmul.f32 %v5917_v6, %v2010_v8  ;;  %v7042_v51 = vadd.f32 %v1194_v63, %v1190_v49 }
0x204d   :  { %v2401_v4 = vpop.permute.xlu0 %2400 }
0x204e   :  { %v2403_v44 = vmul.f32 %v5919_v3, %v2401_v4  ;;  %v2398_v19 = vmul.f32 %v5919_v3, %v7042_v51 }
0x2050   :  { %2405 = vrot.lane.b32.xlu0 %v2403_v44, %s6319_s29 }
0x2054   :  { %2417 = vperm.xlu0 %5811, %v7029_v41  }
0x20b8   :  { %v2020_v12 = vpop.permute.xlu0 %2019 }
0x20b9   :  { %v7037_v45 = vadd.f32 %v2020_v12, %v2012_v10 }
0x20bb   :  { %5920 = vtanh.f32 %v7037_v45 }
0x20c2   :  { %v2406_v27 = vpop.permute.xlu0 %2405 }
0x20c3   :  { %v7045_v13 = vadd.f32 %v2406_v27, %v2398_v19 }
0x20c5   :  { %v5921_v17 = vpop.eup %5920  ;;  %5922 = vtanh.f32 %v7045_v13 }
0x20c6   :  { %2025 = vrot.lane.b32.xlu1 %v5921_v17, %s6318_s24 }
0x20ca   :  { %2424 = vperm.xlu1 %5810, %v2421_v28  }
0x20cf   :  { %v5923_v14 = vpop.eup %5922 }
0x20d0   :  { %2411 = vrot.lane.b32.xlu0 %v5923_v14, %s6318_s24 }
0x20d3   :  { %v7055_v36 = vpop.permute.xlu0 %2417 }
0x20d4   :  { %2037 = vrot.lane.b32.xlu0 %v2035_v21, %s6319_s29  ;;  %v2429_v5 = vmul.f32 %v7055_v36, %v7045_v13 }
0x2138   :  { %v2026_v34 = vpop.permute.xlu1 %2025 }
0x2139   :  { %v2028_v23 = vmul.f32 %v5917_v6, %v2026_v34 }
0x213b   :  { %v2030_v35 = vrot.slane %v2028_v23, 4 }
0x213d   :  { %2031 = vrot.lane.b32.xlu1 %v2030_v35, %s6319_s29 }
0x2142   :  { %v2412_v20 = vpop.permute.xlu0 %2411 }
0x2143   :  { %v2414_v58 = vmul.f32 %v5919_v3, %v2412_v20 }
0x2145   :  { %v2420_v42 = vmul.f32 %v7055_v36, %v2414_v58 }
0x2146   :  { %v2038_v22 = vpop.permute.xlu0 %2037 }
0x2149   :  { %v7057_v26 = vpop.permute.xlu1 %2424 }
0x214a   :  { %v2427_v24 = vmul.f32 %v7057_v26, %v6856_v38  ;;  %v2430_v4 = vmul.f32 %v7057_v26, %v7042_v51 }
0x214c   :  { %v7062_v7 = vadd.f32 %v2427_v24, %v2420_v42  ;;  %v2431_v8 = vadd.f32 %v2430_v4, %v2429_v5 }
0x214e   :  { %2433 = vrot.lane.b32.xlu1 %v7062_v7, %s6319_s29  ;;  %v2519_v12 = vrot.slane %v2431_v8, 4 }
0x21af   :  { %v2032_v11 = vpop.permute.xlu1 %2031 }
0x21b0   :  { %v2034_v55 = vmul.f32 %v2032_v11, %v6772_v15  ;;  %v7121_v11 = vsel %vm2196_vm14, 1.0, %v6316_v1 }
0x21b2   :  { %v7067_v29 = vadd.f32 %v2038_v22, %v2034_v55  ;;  %v2681_v22 = vsub.f32 1.0, %v7121_v11 }
0x21b4   :  { %5362 = vmatmul.mubr.msk.f32.vlgmr.msra.gmra.mrb[14].mxu1 %vm278_vm4, %v7067_v29 }
0x21b5   :  { %5686 = vmatpush3.bf16.msra.mxu1 %v6968_v16  ;;  %5393 = vmatprep.mubr.msk.f32.mxu1 %vm6315_vm0, %v6316_v1 }
0x21b6   :  { %5687 = vmatprep.subr.bf16.mxu1 %v6314_v0 }
0x21b9   :  { %5689 = vmatpush3.bf16.msra.mxu1 %v6980_v30 }
0x21ba   :  { %5696 = vmatprep.subr.bf16.mxu1 %v6314_v0 }
0x21c0   :  { %v2434_v38 = vpop.permute.xlu1 %2433 }
0x21c1   :  { %5394 = vmatmul.mubr.msk.f32.vlgmr.msra.gmra.mrb[16].mxu1 %vm278_vm4, %v2434_v38 }
0x21c2   :  { %5698 = vmatpush3.bf16.msra.mxu1 %v6968_v16  ;;  %5415 = vmatprep.mubr.msk.f32.mxu1 %vm6315_vm0, %v6316_v1 }
0x21c3   :  { %5699 = vmatprep.subr.bf16.mxu1 %v6314_v0 }
0x21c6   :  { %5701 = vmatpush3.bf16.msra.mxu1 %v6980_v30 }
0x21c7   :  { %5708 = vmatprep.subr.bf16.mxu1 %v6314_v0 }
0x2287   :  { %v2122_v56 = vpop.f32.mrb[14].mxu1 }
0x2288   :  { %v7086_v57 = vadd.f32 %v2122_v56, %v1329_v40  ;;  %v5363_v59 = vpop.f32.mrb[15].mxu1 }
0x2294   :  { %v2503_v9 = vpop.f32.mrb[16].mxu1 }
0x2295   :  { %v2508_v33 = vrot.slane %v2503_v9, 4  ;;  %v5395_v60 = vpop.f32.mrb[17].mxu1 }
0x2297   :  { %v2510_v61 = vadd.f32 %v2508_v33, %v7005_v43 }
0x2299   :  { %5924 = vtanh.f32 %v2510_v61  ;;  %v4949_v47 = vmul.f32 -1.442695, %v2510_v61 }
0x229b   :  { %5926 = vpow2.f32 %v4949_v47 }
0x22a3   :  { %v5925_v6 = vpop.eup %5924 }
0x22a4   :  { %2523 = vrot.lane.b32.xlu0 %v5925_v6, %s6318_s24 }
0x22a5   :  { %v5927_v54 = vpop.eup %5926 }
0x22a6   :  { %v2514_v62 = vadd.f32 1.0, %v5927_v54 }
0x22a8   :  { %2552 = vperm.xlu0 %5811, %v2549_v39   ;;  %5928 = vrcp.f32 %v2514_v62 }
0x22ac   :  { %2540 = vperm.xlu0 %5811, %v7091_v48  }
0x22b2   :  { %v5929_v43 = vpop.eup %5928 }
0x22b3   :  { %v2521_v63 = vmul.f32 %v5929_v43, %v2519_v12 }
0x2316   :  { %v2524_v25 = vpop.permute.xlu0 %2523 }
0x2317   :  { %v2526_v3 = vmul.f32 %v5929_v43, %v2524_v25 }
0x2319   :  { %2528 = vrot.lane.b32.xlu1 %v2526_v3, %s6319_s29 }
0x2327   :  { %v7099_v44 = vpop.permute.xlu0 %2552 }
0x2328   :  { %v2555_v53 = vmul.f32 %v7099_v44, %v7062_v7  ;;  %v2567_v10 = vmul.f32 %v7099_v44, %v2431_v8 }
0x232a   :  { %2557 = vrot.lane.b32.xlu0 %v2555_v53, %s6319_s29 }
0x232b   :  { %v7111_v21 = vpop.permute.xlu0 %2540 }
0x232e   :  { %2569 = vrot.lane.b32.xlu0 %v2567_v10, %s6320_s27 }
0x238b   :  { %v2529_v49 = vpop.permute.xlu1 %2528 }
0x238c   :  { %v2531_v19 = vadd.f32 %v2529_v49, %v2521_v63  ;;  %v7150_v49 = vsel %vm2199_vm15, 1.0, %v6316_v1 }
0x238e   :  { %5930 = vtanh.f32 %v2531_v19  ;;  %v2562_v14 = vrot.slane %v2531_v19, 4 }
0x2398   :  { %v5931_v27 = vpop.eup %5930 }
0x2399   :  { %2534 = vrot.lane.b32.xlu1 %v5931_v27, %s6318_s24  ;;  %v2817_v27 = vsub.f32 1.0, %v7150_v49 }
0x239c   :  { %v2558_v34 = vpop.permute.xlu0 %2557 }
0x23a0   :  { %v2570_v24 = vpop.permute.xlu0 %2569 }
0x240b   :  { %v2535_v17 = vpop.permute.xlu1 %2534 }
0x240c   :  { %v2537_v13 = vmul.f32 %v5929_v43, %v2535_v17 }
0x240e   :  { %v2544_v28 = vrot.slane %v2537_v13, 4 }
0x2410   :  { %2545 = vrot.lane.b32.xlu1 %v2544_v28, %s6319_s29 }
0x2414   :  { %2563 = vrot.lane.b32.xlu1 %v2562_v14, %s6320_s27 }
0x2482   :  { %v2546_v23 = vpop.permute.xlu1 %2545 }
0x2483   :  { %v2548_v35 = vmul.f32 %v2546_v23, %v7111_v21 }
0x2485   :  { %v7114_v20 = vadd.f32 %v2558_v34, %v2548_v35 }
0x2486   :  { %v2564_v58 = vpop.permute.xlu1 %2563 }
0x2487   :  { %v2566_v42 = vmul.f32 %v2564_v58, %v7111_v21  ;;  %5405 = vmatmul.mubr.msk.f32.vlgmr.msra.gmra.mrb[26].mxu0 %vm278_vm4, %v7114_v20 }
0x2488   :  { %5704 = vmatpush3.bf16.msra.mxu0 %v6968_v16  ;;  %5426 = vmatprep.mubr.msk.f32.mxu0 %vm6315_vm0, %v6316_v1 }
0x2489   :  { %v2572_v55 = vadd.f32 %v2570_v24, %v2566_v42  ;;  %5705 = vmatprep.subr.bf16.mxu0 %v6314_v0 }
0x248b   :  { %2655 = vrot.lane.b32.xlu0 %v2572_v55, %s6319_s29 }
0x248c   :  { %5707 = vmatpush3.bf16.msra.mxu0 %v6980_v30 }
0x248d   :  { %5714 = vmatprep.subr.bf16.mxu0 %v6314_v0 }
0x248f   :  { %2684 = vperm.xlu0 %5811, %v2681_v22  }
0x24fd   :  { %v2656_v47 = vpop.permute.xlu0 %2655 }
0x250e   :  { %v7134_v54 = vpop.permute.xlu0 %2684 }
0x250f   :  { %v2687_v62 = vmul.f32 %v7134_v54, %v7114_v20  ;;  %v2694_v19 = vmul.f32 %v7134_v54, %v2572_v55 }
0x255a   :  { %v2642_v38 = vpop.f32.mrb[26].mxu0 }
0x255b   :  { %v2646_v40 = vadd.f32 %v2642_v38, %v7003_v37  ;;  %v5406_v56 = vpop.f32.mrb[27].mxu0 }
0x255d   :  { %5932 = vtanh.f32 %v2646_v40  ;;  %v4951_v9 = vmul.f32 -1.442695, %v2646_v40 }
0x255f   :  { %5934 = vpow2.f32 %v4951_v9 }
0x2567   :  { %v5933_v59 = vpop.eup %5932 }
0x2568   :  { %2660 = vrot.lane.b32.xlu1 %v5933_v59, %s6318_s24 }
0x2569   :  { %v5935_v33 = vpop.eup %5934 }
0x256a   :  { %v2650_v60 = vadd.f32 1.0, %v5935_v33 }
0x256c   :  { %5936 = vrcp.f32 %v2650_v60 }
0x2576   :  { %v5937_v61 = vpop.eup %5936 }
0x2577   :  { %v2658_v43 = vmul.f32 %v5937_v61, %v2656_v47 }
0x25da   :  { %v2661_v6 = vpop.permute.xlu1 %2660 }
0x25db   :  { %v2663_v39 = vmul.f32 %v5937_v61, %v2661_v6 }
0x25dd   :  { %2665 = vrot.lane.b32.xlu1 %v2663_v39, %s6319_s29 }
0x25e1   :  { %2677 = vperm.xlu1 %5810, %v7121_v11  }
0x25e5   :  { %2689 = vrot.lane.b32.xlu1 %v2687_v62, %s6320_s27 }
0x264f   :  { %v2666_v25 = vpop.permute.xlu1 %2665 }
0x2650   :  { %v2668_v3 = vadd.f32 %v2666_v25, %v2658_v43 }
0x2652   :  { %5938 = vtanh.f32 %v2668_v3 }
0x265c   :  { %v5939_v4 = vpop.eup %5938 }
0x265d   :  { %2671 = vrot.lane.b32.xlu0 %v5939_v4, %s6318_s24 }
0x2660   :  { %v7141_v5 = vpop.permute.xlu1 %2677 }
0x2661   :  { %v2693_v14 = vmul.f32 %v7141_v5, %v2668_v3 }
0x2664   :  { %v2690_v12 = vpop.permute.xlu1 %2689 }
0x26cf   :  { %v2672_v53 = vpop.permute.xlu0 %2671 }
0x26d0   :  { %v2674_v8 = vmul.f32 %v5937_v61, %v2672_v53 }
0x26d2   :  { %v2680_v10 = vmul.f32 %v7141_v5, %v2674_v8 }
0x26d4   :  { %v7144_v63 = vadd.f32 %v2690_v12, %v2680_v10 }
0x26d6   :  { %2701 = vrot.lane.b32.xlu0 %v7144_v63, %s6319_s29 }
0x26da   :  { %2696 = vrot.lane.b32.xlu0 %v2694_v19, %s6319_s29 }
0x26de   :  { %2820 = vperm.xlu0 %5811, %v2817_v27  }
0x26e2   :  { %2808 = vperm.xlu0 %5811, %v7150_v49  }
0x2748   :  { %v2702_v17 = vpop.permute.xlu0 %2701 }
0x2749   :  { %5416 = vmatmul.mubr.msk.f32.vlgmr.msra.gmra.mrb[18].mxu1 %vm278_vm4, %v2702_v17  ;;  %v7187_v17 = vsel %vm2202_vm2, 1.0, %v6316_v1 }
0x274a   :  { %5710 = vmatpush3.bf16.msra.mxu1 %v6968_v16  ;;  %5437 = vmatprep.mubr.msk.f32.mxu1 %vm6315_vm0, %v6316_v1 }
0x274b   :  { %5711 = vmatprep.subr.bf16.mxu1 %v6314_v0 }
0x274c   :  { %v2697_v13 = vpop.permute.xlu0 %2696 }
0x274d   :  { %v2699_v23 = vadd.f32 %v2697_v13, %v2693_v14  ;;  %v2949_v14 = vsub.f32 1.0, %v7187_v17 }
0x274e   :  { %5713 = vmatpush3.bf16.msra.mxu1 %v6980_v30 }
0x274f   :  { %5720 = vmatprep.subr.bf16.mxu1 %v6314_v0  ;;  %v2787_v60 = vrot.slane %v2699_v23, 4 }
0x275d   :  { %v7163_v28 = vpop.permute.xlu0 %2820 }
0x275e   :  { %v2823_v34 = vmul.f32 %v7163_v28, %v7144_v63  ;;  %v2835_v35 = vmul.f32 %v7163_v28, %v2699_v23 }
0x2760   :  { %2825 = vrot.lane.b32.xlu0 %v2823_v34, %s6319_s29 }
0x2761   :  { %v7177_v3 = vpop.permute.xlu0 %2808 }
0x2764   :  { %2837 = vrot.lane.b32.xlu0 %v2835_v35, %s6320_s27 }
0x27d2   :  { %v2826_v4 = vpop.permute.xlu0 %2825 }
0x27d6   :  { %v2838_v27 = vpop.permute.xlu0 %2837 }
0x281c   :  { %v2771_v58 = vpop.f32.mrb[18].mxu1 }
0x281d   :  { %v2776_v42 = vrot.slane %v2771_v58, 4  ;;  %v5417_v24 = vpop.f32.mrb[19].mxu1 }
0x281f   :  { %v2778_v55 = vadd.f32 %v2776_v42, %v7003_v37 }
0x2821   :  { %5940 = vtanh.f32 %v2778_v55  ;;  %v4953_v38 = vmul.f32 -1.442695, %v2778_v55 }
0x2823   :  { %5942 = vpow2.f32 %v4953_v38 }
0x282b   :  { %v5941_v22 = vpop.eup %5940 }
0x282c   :  { %2791 = vrot.lane.b32.xlu1 %v5941_v22, %s6318_s24 }
0x282d   :  { %v5943_v40 = vpop.eup %5942 }
0x282e   :  { %v2782_v56 = vadd.f32 1.0, %v5943_v40 }
0x2830   :  { %5944 = vrcp.f32 %v2782_v56 }
0x283a   :  { %v5945_v59 = vpop.eup %5944 }
0x283b   :  { %v2789_v61 = vmul.f32 %v5945_v59, %v2787_v60 }
0x289e   :  { %v2792_v9 = vpop.permute.xlu1 %2791 }
0x289f   :  { %v2794_v33 = vmul.f32 %v5945_v59, %v2792_v9 }
0x28a1   :  { %2796 = vrot.lane.b32.xlu1 %v2794_v33, %s6319_s29 }
0x2913   :  { %v2797_v6 = vpop.permute.xlu1 %2796 }
0x2914   :  { %v2799_v39 = vadd.f32 %v2797_v6, %v2789_v61 }
0x2916   :  { %5946 = vtanh.f32 %v2799_v39  ;;  %v2830_v25 = vrot.slane %v2799_v39, 4 }
0x2920   :  { %v5947_v37 = vpop.eup %5946 }
0x2921   :  { %2802 = vrot.lane.b32.xlu1 %v5947_v37, %s6318_s24 }
0x2993   :  { %v2803_v47 = vpop.permute.xlu1 %2802 }
0x2994   :  { %v2805_v62 = vmul.f32 %v5945_v59, %v2803_v47 }
0x2996   :  { %v2812_v43 = vrot.slane %v2805_v62, 4 }
0x2998   :  { %2813 = vrot.lane.b32.xlu1 %v2812_v43, %s6319_s29 }
0x299c   :  { %2831 = vrot.lane.b32.xlu1 %v2830_v25, %s6320_s27 }
0x2a0a   :  { %v2814_v53 = vpop.permute.xlu1 %2813 }
0x2a0b   :  { %v2816_v8 = vmul.f32 %v2814_v53, %v7177_v3 }
0x2a0d   :  { %v7180_v10 = vadd.f32 %v2826_v4, %v2816_v8  ;;  %v7215_v4 = vsel %vm2205_vm3, 1.0, %v6316_v1 }
0x2a0e   :  { %v2832_v12 = vpop.permute.xlu1 %2831  ;;  %v3085_v8 = vsub.f32 1.0, %v7215_v4 }
0x2a0f   :  { %v2834_v19 = vmul.f32 %v2832_v12, %v7177_v3  ;;  %5427 = vmatmul.mubr.msk.f32.vlgmr.msra.gmra.mrb[28].mxu0 %vm278_vm4, %v7180_v10 }
0x2a10   :  { %5716 = vmatpush3.bf16.msra.mxu0 %v6968_v16  ;;  %5448 = vmatprep.mubr.msk.f32.mxu0 %vm6315_vm0, %v6316_v1 }
0x2a11   :  { %v2840_v13 = vadd.f32 %v2838_v27, %v2834_v19  ;;  %5717 = vmatprep.subr.bf16.mxu0 %v6314_v0 }
0x2a13   :  { %2923 = vrot.lane.b32.xlu0 %v2840_v13, %s6319_s29 }
0x2a14   :  { %5719 = vmatpush3.bf16.msra.mxu0 %v6980_v30 }
0x2a17   :  { %2952 = vperm.xlu0 %5811, %v2949_v14  }
0x2a85   :  { %v2924_v56 = vpop.permute.xlu0 %2923 }
0x2a96   :  { %v7199_v59 = vpop.permute.xlu0 %2952 }
0x2a97   :  { %v2955_v9 = vmul.f32 %v7199_v59, %v7180_v10  ;;  %v2962_v53 = vmul.f32 %v7199_v59, %v2840_v13 }
0x2ae2   :  { %v2910_v34 = vpop.f32.mrb[28].mxu0 }
0x2ae3   :  { %v2914_v23 = vadd.f32 %v2910_v34, %v7009_v52  ;;  %v5428_v35 = vpop.f32.mrb[29].mxu0 }
0x2ae5   :  { %5948 = vtanh.f32 %v2914_v23  ;;  %v4955_v42 = vmul.f32 -1.442695, %v2914_v23 }
0x2ae7   :  { %5950 = vpow2.f32 %v4955_v42 }
0x2aef   :  { %v5949_v58 = vpop.eup %5948 }
0x2af0   :  { %2928 = vrot.lane.b32.xlu1 %v5949_v58, %s6318_s24 }
0x2af1   :  { %v5951_v24 = vpop.eup %5950 }
0x2af2   :  { %v2918_v55 = vadd.f32 1.0, %v5951_v24 }
0x2af4   :  { %5952 = vrcp.f32 %v2918_v55 }
0x2afe   :  { %v5953_v22 = vpop.eup %5952 }
0x2aff   :  { %v2926_v33 = vmul.f32 %v5953_v22, %v2924_v56 }
0x2b62   :  { %v2929_v38 = vpop.permute.xlu1 %2928 }
0x2b63   :  { %v2931_v40 = vmul.f32 %v5953_v22, %v2929_v38 }
0x2b65   :  { %2933 = vrot.lane.b32.xlu1 %v2931_v40, %s6319_s29 }
0x2b69   :  { %2945 = vperm.xlu1 %5810, %v7187_v17  }
0x2b6d   :  { %2957 = vrot.lane.b32.xlu1 %v2955_v9, %s6320_s27 }
0x2bd7   :  { %v2934_v60 = vpop.permute.xlu1 %2933 }
0x2bd8   :  { %v2936_v61 = vadd.f32 %v2934_v60, %v2926_v33 }
0x2bda   :  { %5954 = vtanh.f32 %v2936_v61 }
0x2be4   :  { %v5955_v6 = vpop.eup %5954 }
0x2be5   :  { %2939 = vrot.lane.b32.xlu0 %v5955_v6, %s6318_s24 }
0x2be8   :  { %v7206_v39 = vpop.permute.xlu1 %2945 }
0x2be9   :  { %v2961_v13 = vmul.f32 %v7206_v39, %v2936_v61 }
0x2bec   :  { %v2958_v43 = vpop.permute.xlu1 %2957 }
0x2c57   :  { %v2940_v37 = vpop.permute.xlu0 %2939 }
0x2c58   :  { %v2942_v47 = vmul.f32 %v5953_v22, %v2940_v37 }
0x2c5a   :  { %v2948_v62 = vmul.f32 %v7206_v39, %v2942_v47 }
0x2c5c   :  { %v7209_v25 = vadd.f32 %v2958_v43, %v2948_v62 }
0x2c5e   :  { %2969 = vrot.lane.b32.xlu0 %v7209_v25, %s6319_s29 }
0x2c62   :  { %2964 = vrot.lane.b32.xlu0 %v2962_v53, %s6319_s29 }
0x2c66   :  { %3088 = vperm.xlu0 %5811, %v3085_v8  }
0x2c6a   :  { %3076 = vperm.xlu0 %5811, %v7215_v4  }
0x2cd0   :  { %v2970_v12 = vpop.permute.xlu0 %2969 }
0x2cd1   :  { %5438 = vmatmul.mubr.msk.f32.vlgmr.msra.gmra.mrb[20].mxu1 %vm278_vm4, %v2970_v12 }
0x2cd2   :  { %5722 = vmatpush3.bf16.msra.mxu1 %v6968_v16  ;;  %5459 = vmatprep.mubr.msk.f32.mxu1 %vm6315_vm0, %v6316_v1 }
0x2cd3   :  { %5723 = vmatprep.subr.bf16.mxu1 %v6314_v0 }
0x2cd4   :  { %v2965_v19 = vpop.permute.xlu0 %2964 }
0x2cd5   :  { %v2967_v34 = vadd.f32 %v2965_v19, %v2961_v13 }
0x2cd6   :  { %5725 = vmatpush3.bf16.msra.mxu1 %v6980_v30 }
0x2cd7   :  { %5734 = vmatprep.subr.bf16.mxu1 %v6314_v0  ;;  %v3055_v9 = vrot.slane %v2967_v34, 4 }
0x2ce5   :  { %v7228_v27 = vpop.permute.xlu0 %3088 }
0x2ce6   :  { %v3091_v14 = vmul.f32 %v7228_v27, %v7209_v25  ;;  %v3103_v16 = vmul.f32 %v7228_v27, %v2967_v34 }
0x2ce8   :  { %3093 = vrot.lane.b32.xlu0 %v3091_v14, %s6319_s29 }
0x2ce9   :  { %v7242_v43 = vpop.permute.xlu0 %3076 }
0x2cec   :  { %3105 = vrot.lane.b32.xlu0 %v3103_v16, %s6320_s27  ;;  %v7252_v16 = vsel %vm2208_vm5, 1.0, %v6316_v1 }
0x2d5a   :  { %v3094_v53 = vpop.permute.xlu0 %3093 }
0x2d5e   :  { %v3106_v34 = vpop.permute.xlu0 %3105 }
0x2da4   :  { %v3039_v23 = vpop.f32.mrb[20].mxu1 }
0x2da5   :  { %v3044_v35 = vrot.slane %v3039_v23, 4  ;;  %v5439_v30 = vpop.f32.mrb[21].mxu1 }
0x2da6   :  { %v2047_v30 = vmul.f32 %v7034_v50, %v6738_v32 }
0x2da7   :  { %v3046_v58 = vadd.f32 %v3044_v35, %v7009_v52  ;;  %v3217_v35 = vsub.f32 1.0, %v7252_v16 }
0x2da9   :  { %5956 = vtanh.f32 %v3046_v58  ;;  %v4957_v24 = vmul.f32 -1.442695, %v3046_v58 }
0x2dab   :  { %5958 = vpow2.f32 %v4957_v24 }
0x2db3   :  { %v5957_v42 = vpop.eup %5956 }
0x2db4   :  { %3059 = vrot.lane.b32.xlu1 %v5957_v42, %s6318_s24  ;;  %v4931_v42 = vmul.f32 -1.442695, %v7086_v57 }
0x2db5   :  { %v5959_v55 = vpop.eup %5958 }
0x2db6   :  { %v3050_v22 = vadd.f32 1.0, %v5959_v55 }
0x2db8   :  { %5960 = vrcp.f32 %v3050_v22 }
0x2dc2   :  { %v5961_v38 = vpop.eup %5960 }
0x2dc3   :  { %v3057_v33 = vmul.f32 %v5961_v38, %v3055_v9 }
0x2e26   :  { %v3060_v40 = vpop.permute.xlu1 %3059 }
0x2e27   :  { %v3062_v56 = vmul.f32 %v5961_v38, %v3060_v40 }
0x2e29   :  { %3064 = vrot.lane.b32.xlu1 %v3062_v56, %s6319_s29 }
0x2e9b   :  { %v3065_v60 = vpop.permute.xlu1 %3064 }
0x2e9c   :  { %v3067_v61 = vadd.f32 %v3065_v60, %v3057_v33 }
0x2e9e   :  { %5962 = vtanh.f32 %v3067_v61  ;;  %v3098_v62 = vrot.slane %v3067_v61, 4 }
0x2e9f   :  { %5964 = vtanh.f32 %v7086_v57 }
0x2ea0   :  { %5966 = vpow2.f32 %v4931_v42 }
0x2ea8   :  { %v5963_v52 = vpop.eup %5962 }
0x2ea9   :  { %3070 = vrot.lane.b32.xlu1 %v5963_v52, %s6318_s24  ;;  %v5965_v58 = vpop.eup %5964 }
0x2eaa   :  { %v5967_v24 = vpop.eup %5966 }
0x2eab   :  { %v2130_v55 = vadd.f32 1.0, %v5967_v24 }
0x2ead   :  { %5968 = vrcp.f32 %v2130_v55 }
0x2eb7   :  { %v7270_v50 = vpop.eup %5968 }
0x2f1b   :  { %v3071_v6 = vpop.permute.xlu1 %3070 }
0x2f1c   :  { %v3073_v37 = vmul.f32 %v5961_v38, %v3071_v6 }
0x2f1e   :  { %v3080_v47 = vrot.slane %v3073_v37, 4 }
0x2f20   :  { %3081 = vrot.lane.b32.xlu1 %v3080_v47, %s6319_s29 }
0x2f24   :  { %3099 = vrot.lane.b32.xlu1 %v3098_v62, %s6320_s27 }
0x2f92   :  { %v3082_v8 = vpop.permute.xlu1 %3081 }
0x2f93   :  { %v3084_v12 = vmul.f32 %v3082_v8, %v7242_v43  ;;  %v2042_v8 = vrot.slane %v7037_v45, 4 }
0x2f95   :  { %v7245_v19 = vadd.f32 %v3094_v53, %v3084_v12 }
0x2f96   :  { %v3100_v13 = vpop.permute.xlu1 %3099 }
0x2f97   :  { %v3102_v14 = vmul.f32 %v3100_v13, %v7242_v43  ;;  %5449 = vmatmul.mubr.msk.f32.vlgmr.msra.gmra.mrb[30].mxu0 %vm278_vm4, %v7245_v19 }
0x2f99   :  { %v7254_v23 = vadd.f32 %v3106_v34, %v3102_v14 }
0x2f9b   :  { %3191 = vrot.lane.b32.xlu0 %v7254_v23, %s6319_s29 }
0x2f9f   :  { %3220 = vperm.xlu0 %5811, %v3217_v35  }
0x2fa3   :  { %2049 = vrot.lane.b32.xlu0 %v2047_v30, %s6320_s27 }
0x2fa7   :  { %2140 = vrot.lane.b32.xlu0 %v5965_v58, %s6318_s24 }
0x300d   :  { %v3192_v22 = vpop.permute.xlu0 %3191 }
0x301e   :  { %v7265_v38 = vpop.permute.xlu0 %3220 }
0x301f   :  { %v3223_v40 = vmul.f32 %v7265_v38, %v7245_v19 }
0x3021   :  { %3225 = vrot.lane.b32.xlu0 %v3223_v40, %s6320_s27 }
0x3022   :  { %v2050_v32 = vpop.permute.xlu0 %2049 }
0x3026   :  { %v2141_v56 = vpop.permute.xlu0 %2140 }
0x3027   :  { %v2143_v9 = vmul.f32 %v7270_v50, %v2141_v56 }
0x3029   :  { %2145 = vrot.lane.b32.xlu0 %v2143_v9, %s6319_s29 }
0x306a   :  { %v3178_v57 = vpop.f32.mrb[30].mxu0 }
0x306b   :  { %v3182_v33 = vadd.f32 %v3178_v57, %v7007_v46  ;;  %v5450_v60 = vpop.f32.mrb[31].mxu0 }
0x306d   :  { %5970 = vtanh.f32 %v3182_v33  ;;  %v4959_v52 = vmul.f32 -1.442695, %v3182_v33  ;;  %v2156_v33 = vmul.f32 %v7067_v29, %v6843_v18  ;;  %v3388_v29 = vld [vmem:[%s7832_s12 + $0x10] sm:$0xff] }
0x306f   :  { %5972 = vpow2.f32 %v4959_v52  ;;  %v3386_v52 = vld [vmem:[%s7832_s12] sm:$0xff] }
0x3077   :  { %v5971_v61 = vpop.eup %5970 }
0x3078   :  { %3196 = vrot.lane.b32.xlu1 %v5971_v61, %s6318_s24  ;;  %v3369_v61 = vrot.slane %v7180_v10, 4  ;;  %v3390_v10 = vld [vmem:[#allocation8] sm:$0xff] }
0x3079   :  { %v5973_v6 = vpop.eup %5972 }
0x307a   :  { %v3186_v37 = vadd.f32 1.0, %v5973_v6 }
0x307c   :  { %5974 = vrcp.f32 %v3186_v37  ;;  %v3389_v37 = vld [vmem:[%s7832_s12 + $0x18] sm:$0xff] }
0x3086   :  { %v5975_v47 = vpop.eup %5974 }
0x3087   :  { %v3194_v12 = vmul.f32 %v5975_v47, %v3192_v22 }
0x3093   :  { %v3226_v55 = vpop.permute.xlu0 %3225 }
0x309b   :  { %v2146_v9 = vpop.permute.xlu0 %2145 }
0x30ea   :  { %v3197_v62 = vpop.permute.xlu1 %3196 }
0x30eb   :  { %v3199_v53 = vmul.f32 %v5975_v47, %v3197_v62  ;;  %v5730_v62 = vpack.c.bf16 %v3389_v37, %v3388_v29 }
0x30ed   :  { %3201 = vrot.lane.b32.xlu1 %v3199_v53, %s6319_s29 }
0x30f1   :  { %2043 = vrot.lane.b32.xlu1 %v2042_v8, %s6320_s27  ;;  %v3392_v8 = vld [vmem:[#allocation8 + $0x10] sm:$0xff] }
0x30f5   :  { %3213 = vperm.xlu1 %5810, %v7252_v16  }
0x315f   :  { %v3202_v13 = vpop.permute.xlu1 %3201 }
0x3160   :  { %v7280_v14 = vadd.f32 %v3202_v13, %v3194_v12  ;;  %v3393_v12 = vld [vmem:[#allocation8 + $0x18] sm:$0xff] }
0x3162   :  { %5976 = vtanh.f32 %v7280_v14 }
0x3163   :  { %v2044_v34 = vpop.permute.xlu1 %2043 }
0x3164   :  { %v2046_v35 = vmul.f32 %v2044_v34, %v6772_v15  ;;  %v7324_v34 = vpack.c.bf16 %v3393_v12, %v3392_v8 }
0x3166   :  { %v7285_v58 = vadd.f32 %v2050_v32, %v2046_v35  ;;  %v3365_v32 = vrot.slane %v7114_v20, 4  ;;  %v3387_v20 = vld [vmem:[%s7832_s12 + $0x8] sm:$0xff] }
0x3167   :  { %v5726_v6 = vpack.c.bf16 %v3387_v20, %v3386_v52 }
0x3169   :  { %5727 = vmatprep.subr.bf16.mxu0 %v5726_v6 }
0x316a   :  { %5729 = vmatpush3.bf16.msra.mxu0 %v5726_v6 }
0x316b   :  { %5731 = vmatprep.subr.bf16.mxu0 %v5730_v62 }
0x316c   :  { %v5977_v30 = vpop.eup %5976 }
0x316d   :  { %3207 = vrot.lane.b32.xlu1 %v5977_v30, %s6318_s24 }
0x316e   :  { %5733 = vmatpush3.bf16.msra.mxu0 %v5730_v62 }
0x316f   :  { %5740 = vmatprep.subr.bf16.mxu0 %v6314_v0 }
0x3171   :  { %2135 = vrot.lane.b32.xlu1 %v7285_v58, %s6319_s29 }
0x3174   :  { %v7289_v45 = vpop.permute.xlu1 %3213 }
0x31df   :  { %v3208_v42 = vpop.permute.xlu1 %3207 }
0x31e0   :  { %v3210_v24 = vmul.f32 %v5975_v47, %v3208_v42  ;;  %v3391_v47 = vld [vmem:[#allocation8 + $0x8] sm:$0xff] }
0x31e1   :  { %v7320_v53 = vpack.c.bf16 %v3391_v47, %v3390_v10  ;;  %v7365_v47 = vsel %vm2211_vm6, 1.0, %v6316_v1 }
0x31e2   :  { %v3216_v22 = vmul.f32 %v7289_v45, %v3210_v24  ;;  %v3353_v12 = vsub.f32 1.0, %v7365_v47 }
0x31e3   :  { %v2136_v40 = vpop.permute.xlu1 %2135 }
0x31e4   :  { %v7292_v56 = vadd.f32 %v3226_v55, %v3216_v22  ;;  %v2138_v15 = vmul.f32 %v7270_v50, %v2136_v40 }
0x31e6   :  { %v7295_v57 = vadd.f32 %v2146_v9, %v2138_v15  ;;  %3237 = vrot.lane.b32.xlu1 %v7292_v56, %s6319_s29 }
0x31e8   :  { %5978 = vtanh.f32 %v7295_v57 }
0x31ea   :  { %3366 = vrot.lane.b32.xlu1 %v3365_v32, %s6320_s27 }
0x31ee   :  { %2158 = vrot.lane.b32.xlu1 %v2156_v33, %s6320_s27 }
0x31f2   :  { %v5979_v60 = vpop.eup %5978 }
0x31f3   :  { %2151 = vrot.lane.b32.xlu0 %v5979_v60, %s6318_s24 }
0x31f7   :  { %3370 = vrot.lane.b32.xlu0 %v3369_v61, %s6320_s27 }
0x3258   :  { %v3238_v13 = vpop.permute.xlu1 %3237 }
0x3259   :  { %5460 = vmatmul.mubr.msk.f32.vlgmr.msra.gmra.mrb[22].mxu1 %vm278_vm4, %v3238_v13 }
0x325a   :  { %5736 = vmatpush3.bf16.msra.mxu1 %v7320_v53  ;;  %5484 = vmatprep.mubr.msk.f32.mxu1 %vm6315_vm0, %v6316_v1 }
0x325b   :  { %5737 = vmatprep.subr.bf16.mxu1 %v6314_v0 }
0x325c   :  { %v3367_v35 = vpop.permute.xlu1 %3366 }
0x325d   :  { %v3382_v30 = vsel %vm176_vm1, %v7062_v7, %v3367_v35  ;;  %v3230_v7 = vmul.f32 %v7265_v38, %v7254_v23 }
0x325e   :  { %3405 = vrot.lane.b32.xlu0 %v3382_v30, %s6319_s29  ;;  %5739 = vmatpush3.bf16.msra.mxu1 %v7324_v34 }
0x325f   :  { %5746 = vmatprep.subr.bf16.mxu1 %v6314_v0 }
0x3260   :  { %v2159_v22 = vpop.permute.xlu1 %2158 }
0x3265   :  { %v2152_v42 = vpop.permute.xlu0 %2151 }
0x3266   :  { %v2154_v24 = vmul.f32 %v7270_v50, %v2152_v42 }
0x3268   :  { %v2155_v55 = vmul.f32 %v2154_v24, %v6850_v31  ;;  %v2163_v24 = vmul.f32 %v7285_v58, %v6843_v18 }
0x3269   :  { %v3371_v40 = vpop.permute.xlu0 %3370 }
0x326a   :  { %v7337_v15 = vadd.f32 %v2159_v22, %v2155_v55  ;;  %v3383_v9 = vsel %vm176_vm1, %v7144_v63, %v3371_v40 }
0x326b   :  { %3407 = vrot.lane.b32.xlu1 %v3383_v9, %s6319_s29  ;;  %v3229_v9 = vmul.f32 %v7289_v45, %v7280_v14 }
0x326c   :  { %2173 = vrot.lane.b32.xlu0 %v7337_v15, %s6319_s29 }
0x3270   :  { %3232 = vrot.lane.b32.xlu0 %v3230_v7, %s6319_s29 }
0x32d0   :  { %v3406_v50 = vpop.permute.xlu0 %3405 }
0x32d1   :  { %5470 = vmatprep.mubr.msk.f32.mxu0 %vm278_vm4, %v3406_v50 }
0x32dd   :  { %v3408_v32 = vpop.permute.xlu1 %3407 }
0x32de   :  { %v2174_v33 = vpop.permute.xlu0 %2173  ;;  %5471 = vmatmul.mubr.msk.f32.vlgmr.msra.gmra.mrb[32].mxu0 %vm278_vm4, %v3408_v32 }
0x32df   :  { %2177 = vst.msk [vmem:[#allocation15 + $0x4] sm:$0xf] %vm2170_vm11, %v2174_v33  ;;  %5485 = vmatmul.mubr.msk.f32.vlgmr.msra.gmra.mrb[24].mxu1 %vm278_vm4, %v2174_v33  ;;  %5742 = vmatpush3.bf16.msra.mxu0 %v7320_v53 }
0x32e0   :  { %5743 = vmatprep.subr.bf16.mxu0 %v6314_v0  ;;  %5748 = vmatpush3.bf16.msra.mxu1 %v7320_v53 }
0x32e1   :  { %5749 = vmatprep.subr.bf16.mxu1 %v6314_v0  ;;  %5506 = vmatprep.mubr.msk.f32.mxu1 %vm6315_vm0, %v6316_v1 }
0x32e2   :  { %v3233_v40 = vpop.permute.xlu0 %3232 }
0x32e3   :  { %5745 = vmatpush3.bf16.msra.mxu0 %v7324_v34  ;;  %v3235_v7 = vadd.f32 %v3233_v40, %v3229_v9 }
0x32e4   :  { %5751 = vmatpush3.bf16.msra.mxu1 %v7324_v34  ;;  %5752 = vmatprep.subr.bf16.mxu0 %v6314_v0 }
0x32e5   :  { %5758 = vmatprep.subr.bf16.mxu1 %v6314_v0  ;;  %v3323_v50 = vrot.slane %v3235_v7, 4 }
0x332c   :  { %v3307_v63 = vpop.f32.mrb[22].mxu1 }
0x332d   :  { %v3312_v23 = vrot.slane %v3307_v63, 4  ;;  %v5461_v60 = vpop.f32.mrb[23].mxu1 }
0x332f   :  { %v3314_v61 = vadd.f32 %v3312_v23, %v7007_v46  ;;  %v7370_v46 = vld [vmem:[%s7834_s14] ss:$0 sm:$0xff] }
0x3331   :  { %5980 = vtanh.f32 %v3314_v61  ;;  %v4961_v20 = vmul.f32 -1.442695, %v3314_v61 }
0x3333   :  { %5982 = vpow2.f32 %v4961_v20 }
0x333b   :  { %v5981_v52 = vpop.eup %5980 }
0x333c   :  { %3327 = vrot.lane.b32.xlu1 %v5981_v52, %s6318_s24 }
0x333d   :  { %v5983_v6 = vpop.eup %5982 }
0x333e   :  { %v3318_v29 = vadd.f32 1.0, %v5983_v6 }
0x3340   :  { %5984 = vrcp.f32 %v3318_v29  ;;  %v2162_v29 = vmul.f32 %v7295_v57, %v6850_v31 }
0x334a   :  { %v5985_v37 = vpop.eup %5984 }
0x334b   :  { %v3325_v32 = vmul.f32 %v5985_v37, %v3323_v50 }
0x33ae   :  { %v3328_v10 = vpop.permute.xlu1 %3327 }
0x33af   :  { %v3330_v62 = vmul.f32 %v5985_v37, %v3328_v10 }
0x33b1   :  { %v7372_v8 = vpop.f32.mrb[32].mxu0  ;;  %3332 = vrot.lane.b32.xlu1 %v3330_v62, %s6319_s29 }
0x33b2   :  { %v3487_v13 = vpop.f32.mrb[33].mxu0  ;;  %v3574_v35 = vpop.f32.mrb[24].mxu1 }
0x33b3   :  { %v7377_v2 = vadd.f32 %v7370_v46, %v3487_v13  ;;  %v5486_v30 = vpop.f32.mrb[25].mxu1 }
0x33b5   :  { %v3578_v42 = vadd.f32 %v3574_v35, %v7377_v2  ;;  %3356 = vperm.xlu1 %5810, %v3353_v12  }
0x33b7   :  { %5986 = vtanh.f32 %v3578_v42  ;;  %v4968_v22 = vmul.f32 -1.442695, %v3578_v42 }
0x33b9   :  { %2165 = vrot.lane.b32.xlu1 %v2163_v24, %s6319_s29  ;;  %5988 = vpow2.f32 %v4968_v22  ;;  %v3373_v24 = vrot.slane %v7245_v19, 4 }
0x33bd   :  { %3344 = vperm.xlu1 %5810, %v7365_v47  }
0x33c1   :  { %v5987_v55 = vpop.eup %5986 }
0x33c2   :  { %3588 = vrot.lane.b32.xlu0 %v5987_v55, %s6318_s24 }
0x33c3   :  { %v5989_v33 = vpop.eup %5988 }
0x33c4   :  { %v3582_v58 = vadd.f32 1.0, %v5989_v33  ;;  %v3604_v33 = vmul.f32 %v7057_v26, %v7337_v15 }
0x3423   :  { %v3333_v63 = vpop.permute.xlu1 %3332 }
0x3424   :  { %v3335_v18 = vadd.f32 %v3333_v63, %v3325_v32 }
0x3426   :  { %5990 = vtanh.f32 %v3335_v18 }
0x3427   :  { %5992 = vrcp.f32 %v3582_v58 }
0x3430   :  { %v5991_v23 = vpop.eup %5990 }
0x3431   :  { %3338 = vrot.lane.b32.xlu0 %v5991_v23, %s6318_s24  ;;  %v5993_v60 = vpop.eup %5992 }
0x3434   :  { %v7388_v61 = vpop.permute.xlu1 %3356  ;;  %v3589_v52 = vpop.permute.xlu0 %3588 }
0x3435   :  { %v3359_v20 = vmul.f32 %v7388_v61, %v7292_v56  ;;  %v3591_v14 = vmul.f32 %v5993_v60, %v3589_v52 }
0x3437   :  { %3361 = vrot.lane.b32.xlu1 %v3359_v20, %s6319_s29  ;;  %3593 = vrot.lane.b32.xlu0 %v3591_v14, %s6319_s29 }
0x3438   :  { %v2166_v6 = vpop.permute.xlu1 %2165 }
0x3439   :  { %v7396_v62 = vadd.f32 %v2166_v6, %v2162_v29 }
0x343b   :  { %v3586_v35 = vmul.f32 %v5993_v60, %v7396_v62 }
0x343c   :  { %v7403_v31 = vpop.permute.xlu1 %3344 }
0x34a3   :  { %v3339_v10 = vpop.permute.xlu0 %3338 }
0x34a4   :  { %v3341_v12 = vmul.f32 %v5985_v37, %v3339_v10 }
0x34a6   :  { %v3348_v13 = vrot.slane %v3341_v12, 4 }
0x34a8   :  { %3349 = vrot.lane.b32.xlu0 %v3348_v13, %s6319_s29 }
0x34a9   :  { %v3594_v30 = vpop.permute.xlu0 %3593  ;;  %v3362_v22 = vpop.permute.xlu1 %3361 }
0x34aa   :  { %v3596_v42 = vadd.f32 %v3594_v30, %v3586_v35 }
0x34ac   :  { %5994 = vtanh.f32 %v3596_v42  ;;  %3374 = vrot.lane.b32.xlu0 %v3373_v24, %s6320_s27 }
0x34b6   :  { %v5995_v55 = vpop.eup %5994 }
0x34b7   :  { %3599 = vrot.lane.b32.xlu1 %v5995_v55, %s6318_s24 }
0x351a   :  { %v3350_v57 = vpop.permute.xlu0 %3349 }
0x351b   :  { %v3352_v37 = vmul.f32 %v3350_v57, %v7403_v31  ;;  %v3606_v57 = vmul.f32 %v3596_v42, %v7055_v36 }
0x351d   :  { %v3364_v40 = vadd.f32 %v3362_v22, %v3352_v37  ;;  %v3607_v37 = vmul.f32 %v7057_v26, %v7396_v62 }
0x351e   :  { %v3375_v9 = vpop.permute.xlu0 %3374 }
0x351f   :  { %v3378_v7 = vrot.slane %v3364_v40, 4  ;;  %v3384_v50 = vsel %vm176_vm1, %v7209_v25, %v3375_v9 }
0x3520   :  { %3409 = vrot.lane.b32.xlu1 %v3384_v50, %s6319_s29 }
0x3521   :  { %3379 = vrot.lane.b32.xlu0 %v3378_v7, %s6320_s27 }
0x3529   :  { %v3600_v19 = vpop.permute.xlu1 %3599 }
0x352a   :  { %v3602_v32 = vmul.f32 %v5993_v60, %v3600_v19 }
0x352c   :  { %v3603_v63 = vmul.f32 %v3602_v32, %v7055_v36 }
0x352e   :  { %v7413_v18 = vadd.f32 %v3604_v33, %v3603_v63 }
0x3530   :  { %3610 = vrot.lane.b32.xlu1 %v7413_v18, %s6319_s29  ;;  %v3721_v19 = vmul.f32 %v7413_v18, %v7099_v44 }
0x3592   :  { %v3410_v58 = vpop.permute.xlu1 %3409 }
0x3593   :  { %v3380_v23 = vpop.permute.xlu0 %3379  ;;  %5473 = vmatprep.mubr.msk.f32.mxu0 %vm278_vm4, %v3410_v58 }
0x3594   :  { %v3385_v25 = vsel %vm176_vm1, %v7292_v56, %v3380_v23 }
0x3595   :  { %3411 = vrot.lane.b32.xlu0 %v3385_v25, %s6319_s29 }
0x35a2   :  { %v3611_v15 = vpop.permute.xlu1 %3610 }
0x3607   :  { %v3412_v60 = vpop.permute.xlu0 %3411 }
0x3608   :  { %5474 = vmatmul.mubr.msk.f32.gmra.mrb[34].mxu0 %vm278_vm4, %v3412_v60 }
0x3609   :  { %5495 = vmatprep.mubr.msk.f32.mxu0 %vm6315_vm0, %v6316_v1 }
0x360c   :  { %5496 = vmatmul.mubr.msk.f32.vlgmr.msra.gmra.mrb[36].mxu0 %vm278_vm4, %v3611_v15 }
0x360d   :  { %5754 = vmatpush3.bf16.msra.mxu0 %v7320_v53  ;;  %5517 = vmatprep.mubr.msk.f32.mxu0 %vm6315_vm0, %v6316_v1 }
0x360e   :  { %5755 = vmatprep.subr.bf16.mxu0 %v6314_v0 }
0x3611   :  { %5757 = vmatpush3.bf16.msra.mxu0 %v7324_v34 }
0x3612   :  { %5764 = vmatprep.subr.bf16.mxu0 %v6314_v0 }
0x36db   :  { %v7431_v56 = vpop.f32.mrb[34].mxu0 }
0x36dc   :  { %v7433_v52 = vpop.f32.mrb[35].mxu0 }
0x36df   :  { %v3680_v20 = vpop.f32.mrb[36].mxu0 }
0x36e0   :  { %v3685_v14 = vrot.slane %v3680_v20, 4  ;;  %v5497_v6 = vpop.f32.mrb[37].mxu0 }
0x36e2   :  { %v3687_v29 = vadd.f32 %v3685_v14, %v7377_v2  ;;  %v3608_v2 = vadd.f32 %v3607_v37, %v3606_v57 }
0x36e4   :  { %5996 = vtanh.f32 %v3687_v29  ;;  %v4970_v12 = vmul.f32 -1.442695, %v3687_v29  ;;  %v3696_v22 = vrot.slane %v3608_v2, 4  ;;  %v3733_v32 = vmul.f32 %v3608_v2, %v7099_v44 }
0x36e6   :  { %5998 = vpow2.f32 %v4970_v12 }
0x36ee   :  { %v5997_v10 = vpop.eup %5996 }
0x36ef   :  { %3700 = vrot.lane.b32.xlu0 %v5997_v10, %s6318_s24 }
0x36f0   :  { %v5999_v13 = vpop.eup %5998 }
0x36f1   :  { %v3691_v35 = vadd.f32 1.0, %v5999_v13 }
0x36f3   :  { %6000 = vrcp.f32 %v3691_v35 }
0x36fd   :  { %v6001_v30 = vpop.eup %6000 }
0x36fe   :  { %v3698_v40 = vmul.f32 %v6001_v30, %v3696_v22 }
0x3761   :  { %v3701_v24 = vpop.permute.xlu0 %3700 }
0x3762   :  { %v3703_v55 = vmul.f32 %v6001_v30, %v3701_v24 }
0x3764   :  { %3705 = vrot.lane.b32.xlu1 %v3703_v55, %s6319_s29 }
0x37d6   :  { %v3706_v9 = vpop.permute.xlu1 %3705 }
0x37d7   :  { %v3708_v7 = vadd.f32 %v3706_v9, %v3698_v40 }
0x37d9   :  { %6002 = vtanh.f32 %v3708_v7  ;;  %v3728_v33 = vrot.slane %v3708_v7, 4 }
0x37e3   :  { %v6003_v50 = vpop.eup %6002 }
0x37e4   :  { %3711 = vrot.lane.b32.xlu0 %v6003_v50, %s6318_s24 }
0x37e8   :  { %3723 = vrot.lane.b32.xlu0 %v3721_v19, %s6319_s29 }
0x37ec   :  { %3735 = vrot.lane.b32.xlu0 %v3733_v32, %s6320_s27 }
0x3856   :  { %v3712_v36 = vpop.permute.xlu0 %3711 }
0x3857   :  { %v3714_v26 = vmul.f32 %v6001_v30, %v3712_v36 }
0x3859   :  { %v3716_v42 = vrot.slane %v3714_v26, 4 }
0x385a   :  { %v3724_v63 = vpop.permute.xlu0 %3723 }
0x385b   :  { %3717 = vrot.lane.b32.xlu1 %v3716_v42, %s6319_s29 }
0x385e   :  { %v3736_v44 = vpop.permute.xlu0 %3735 }
0x385f   :  { %3729 = vrot.lane.b32.xlu1 %v3728_v33, %s6320_s27 }
0x38cd   :  { %v3718_v58 = vpop.permute.xlu1 %3717 }
0x38ce   :  { %v3720_v23 = vmul.f32 %v3718_v58, %v7111_v21 }
0x38d0   :  { %v7450_v25 = vadd.f32 %v3724_v63, %v3720_v23 }
0x38d1   :  { %v3730_v60 = vpop.permute.xlu1 %3729 }
0x38d2   :  { %v3732_v15 = vmul.f32 %v3730_v60, %v7111_v21  ;;  %5507 = vmatmul.mubr.msk.f32.vlgmr.msra.gmra.mrb[26].mxu1 %vm278_vm4, %v7450_v25  ;;  %v3493_v21 = vadd.f32 %v7372_v8, %v7370_v46  ;;  %v3842_v8 = vmul.f32 %v7450_v25, %v7134_v54 }
0x38d3   :  { %5760 = vmatpush3.bf16.msra.mxu1 %v7320_v53  ;;  %5528 = vmatprep.mubr.msk.f32.mxu1 %vm6315_vm0, %v6316_v1 }
0x38d4   :  { %v3738_v20 = vadd.f32 %v3736_v44, %v3732_v15  ;;  %5761 = vmatprep.subr.bf16.mxu1 %v6314_v0 }
0x38d6   :  { %3821 = vrot.lane.b32.xlu0 %v3738_v20, %s6319_s29  ;;  %v3849_v36 = vmul.f32 %v3738_v20, %v7134_v54 }
0x38d7   :  { %5763 = vmatpush3.bf16.msra.mxu1 %v7324_v34 }
0x38d8   :  { %5770 = vmatprep.subr.bf16.mxu1 %v6314_v0 }
0x3948   :  { %v3822_v57 = vpop.permute.xlu0 %3821 }
0x39a5   :  { %v3808_v14 = vpop.f32.mrb[26].mxu1 }
0x39a6   :  { %v3812_v6 = vadd.f32 %v3808_v14, %v3493_v21  ;;  %v5508_v29 = vpop.f32.mrb[27].mxu1 }
0x39a8   :  { %6004 = vtanh.f32 %v3812_v6  ;;  %v4972_v12 = vmul.f32 -1.442695, %v3812_v6 }
0x39aa   :  { %6006 = vpow2.f32 %v4972_v12 }
0x39b2   :  { %v6005_v10 = vpop.eup %6004 }
0x39b3   :  { %3826 = vrot.lane.b32.xlu1 %v6005_v10, %s6318_s24 }
0x39b4   :  { %v6007_v13 = vpop.eup %6006 }
0x39b5   :  { %v3816_v35 = vadd.f32 1.0, %v6007_v13 }
0x39b7   :  { %6008 = vrcp.f32 %v3816_v35 }
0x39c1   :  { %v6009_v30 = vpop.eup %6008 }
0x39c2   :  { %v3824_v37 = vmul.f32 %v6009_v30, %v3822_v57 }
0x3a25   :  { %v3827_v24 = vpop.permute.xlu1 %3826 }
0x3a26   :  { %v3829_v55 = vmul.f32 %v6009_v30, %v3827_v24 }
0x3a28   :  { %3831 = vrot.lane.b32.xlu1 %v3829_v55, %s6319_s29 }
0x3a2c   :  { %3844 = vrot.lane.b32.xlu1 %v3842_v8, %s6320_s27 }
0x3a9a   :  { %v3832_v2 = vpop.permute.xlu1 %3831 }
0x3a9b   :  { %v3834_v22 = vadd.f32 %v3832_v2, %v3824_v37 }
0x3a9d   :  { %6010 = vtanh.f32 %v3834_v22  ;;  %v3848_v29 = vmul.f32 %v3834_v22, %v7141_v5 }
0x3a9e   :  { %v3845_v19 = vpop.permute.xlu1 %3844 }
0x3aa7   :  { %v6011_v40 = vpop.eup %6010 }
0x3aa8   :  { %3837 = vrot.lane.b32.xlu0 %v6011_v40, %s6318_s24 }
0x3b1a   :  { %v3838_v9 = vpop.permute.xlu0 %3837 }
0x3b1b   :  { %v3840_v7 = vmul.f32 %v6009_v30, %v3838_v9 }
0x3b1d   :  { %v3841_v50 = vmul.f32 %v3840_v7, %v7141_v5 }
0x3b1f   :  { %v7471_v32 = vadd.f32 %v3845_v19, %v3841_v50 }
0x3b21   :  { %3856 = vrot.lane.b32.xlu0 %v7471_v32, %s6319_s29  ;;  %v3967_v24 = vmul.f32 %v7471_v32, %v7163_v28 }
0x3b25   :  { %3851 = vrot.lane.b32.xlu0 %v3849_v36, %s6319_s29  ;;  %v3498_v36 = vadd.f32 %v7370_v46, %v7433_v52 }
0x3b93   :  { %v3857_v26 = vpop.permute.xlu0 %3856 }
0x3b94   :  { %5518 = vmatmul.mubr.msk.f32.vlgmr.msra.gmra.mrb[38].mxu0 %vm278_vm4, %v3857_v26 }
0x3b95   :  { %5766 = vmatpush3.bf16.msra.mxu0 %v7320_v53  ;;  %5539 = vmatprep.mubr.msk.f32.mxu0 %vm6315_vm0, %v6316_v1 }
0x3b96   :  { %5767 = vmatprep.subr.bf16.mxu0 %v6314_v0 }
0x3b97   :  { %v3852_v6 = vpop.permute.xlu0 %3851 }
0x3b98   :  { %v3854_v10 = vadd.f32 %v3852_v6, %v3848_v29 }
0x3b99   :  { %5769 = vmatpush3.bf16.msra.mxu0 %v7324_v34 }
0x3b9a   :  { %5776 = vmatprep.subr.bf16.mxu0 %v6314_v0  ;;  %v3942_v12 = vrot.slane %v3854_v10, 4  ;;  %v3979_v55 = vmul.f32 %v3854_v10, %v7163_v28 }
0x3c67   :  { %v3926_v42 = vpop.f32.mrb[38].mxu0 }
0x3c68   :  { %v3931_v33 = vrot.slane %v3926_v42, 4  ;;  %v5519_v63 = vpop.f32.mrb[39].mxu0 }
0x3c6a   :  { %v3933_v54 = vadd.f32 %v3931_v33, %v3493_v21 }
0x3c6c   :  { %6012 = vtanh.f32 %v3933_v54  ;;  %v4974_v23 = vmul.f32 -1.442695, %v3933_v54 }
0x3c6e   :  { %6014 = vpow2.f32 %v4974_v23 }
0x3c76   :  { %v6013_v58 = vpop.eup %6012 }
0x3c77   :  { %3946 = vrot.lane.b32.xlu1 %v6013_v58, %s6318_s24 }
0x3c78   :  { %v6015_v60 = vpop.eup %6014 }
0x3c79   :  { %v3937_v15 = vadd.f32 1.0, %v6015_v60 }
0x3c7b   :  { %6016 = vrcp.f32 %v3937_v15 }
0x3c85   :  { %v6017_v44 = vpop.eup %6016 }
0x3c86   :  { %v3944_v21 = vmul.f32 %v6017_v44, %v3942_v12 }
0x3ce9   :  { %v3947_v20 = vpop.permute.xlu1 %3946 }
0x3cea   :  { %v3949_v14 = vmul.f32 %v6017_v44, %v3947_v20 }
0x3cec   :  { %3951 = vrot.lane.b32.xlu1 %v3949_v14, %s6319_s29 }
0x3d5e   :  { %v3952_v13 = vpop.permute.xlu1 %3951 }
0x3d5f   :  { %v3954_v35 = vadd.f32 %v3952_v13, %v3944_v21 }
0x3d61   :  { %6018 = vtanh.f32 %v3954_v35  ;;  %v3974_v37 = vrot.slane %v3954_v35, 4 }
0x3d6b   :  { %v6019_v30 = vpop.eup %6018 }
0x3d6c   :  { %3957 = vrot.lane.b32.xlu0 %v6019_v30, %s6318_s24 }
0x3d70   :  { %3969 = vrot.lane.b32.xlu0 %v3967_v24, %s6319_s29 }
0x3d74   :  { %3981 = vrot.lane.b32.xlu0 %v3979_v55, %s6320_s27 }
0x3dde   :  { %v3958_v8 = vpop.permute.xlu0 %3957 }
0x3ddf   :  { %v3960_v5 = vmul.f32 %v6017_v44, %v3958_v8 }
0x3de1   :  { %v3962_v57 = vrot.slane %v3960_v5, 4 }
0x3de2   :  { %v3970_v2 = vpop.permute.xlu0 %3969 }
0x3de3   :  { %3963 = vrot.lane.b32.xlu1 %v3962_v57, %s6319_s29 }
0x3de6   :  { %v3982_v28 = vpop.permute.xlu0 %3981 }
0x3de7   :  { %3975 = vrot.lane.b32.xlu1 %v3974_v37, %s6320_s27 }
0x3e55   :  { %v3964_v22 = vpop.permute.xlu1 %3963 }
0x3e56   :  { %v3966_v40 = vmul.f32 %v3964_v22, %v7177_v3 }
0x3e58   :  { %v7496_v9 = vadd.f32 %v3970_v2, %v3966_v40 }
0x3e59   :  { %v3976_v7 = vpop.permute.xlu1 %3975 }
0x3e5a   :  { %v3978_v50 = vmul.f32 %v3976_v7, %v7177_v3  ;;  %5529 = vmatmul.mubr.msk.f32.vlgmr.msra.gmra.mrb[28].mxu1 %vm278_vm4, %v7496_v9  ;;  %v4088_v52 = vmul.f32 %v7496_v9, %v7199_v59 }
0x3e5b   :  { %5772 = vmatpush3.bf16.msra.mxu1 %v7320_v53  ;;  %5550 = vmatprep.mubr.msk.f32.mxu1 %vm6315_vm0, %v6316_v1 }
0x3e5c   :  { %v3984_v19 = vadd.f32 %v3982_v28, %v3978_v50  ;;  %5773 = vmatprep.subr.bf16.mxu1 %v6314_v0 }
0x3e5e   :  { %4067 = vrot.lane.b32.xlu0 %v3984_v19, %s6319_s29  ;;  %v4095_v30 = vmul.f32 %v3984_v19, %v7199_v59 }
0x3e5f   :  { %5775 = vmatpush3.bf16.msra.mxu1 %v7324_v34 }
0x3ed0   :  { %v4068_v44 = vpop.permute.xlu0 %4067 }
0x3f2d   :  { %v4054_v3 = vpop.f32.mrb[28].mxu1 }
0x3f2e   :  { %v4058_v26 = vadd.f32 %v4054_v3, %v3498_v36  ;;  %v5530_v42 = vpop.f32.mrb[29].mxu1 }
0x3f30   :  { %6020 = vtanh.f32 %v4058_v26  ;;  %v4976_v63 = vmul.f32 -1.442695, %v4058_v26 }
0x3f32   :  { %6022 = vpow2.f32 %v4976_v63 }
0x3f3a   :  { %v6021_v33 = vpop.eup %6020 }
0x3f3b   :  { %4072 = vrot.lane.b32.xlu1 %v6021_v33, %s6318_s24 }
0x3f3c   :  { %v6023_v54 = vpop.eup %6022 }
0x3f3d   :  { %v4062_v58 = vadd.f32 1.0, %v6023_v54 }
0x3f3f   :  { %6024 = vrcp.f32 %v4062_v58 }
0x3f49   :  { %v6025_v23 = vpop.eup %6024 }
0x3f4a   :  { %v4070_v20 = vmul.f32 %v6025_v23, %v4068_v44 }
0x3fad   :  { %v4073_v60 = vpop.permute.xlu1 %4072 }
0x3fae   :  { %v4075_v15 = vmul.f32 %v6025_v23, %v4073_v60 }
0x3fb0   :  { %4077 = vrot.lane.b32.xlu1 %v4075_v15, %s6319_s29 }
0x3fb4   :  { %4090 = vrot.lane.b32.xlu1 %v4088_v52, %s6320_s27 }
0x4022   :  { %v4078_v14 = vpop.permute.xlu1 %4077 }
0x4023   :  { %v4080_v6 = vadd.f32 %v4078_v14, %v4070_v20 }
0x4025   :  { %6026 = vtanh.f32 %v4080_v6 }
0x4026   :  { %v4091_v13 = vpop.permute.xlu1 %4090 }
0x402f   :  { %v6027_v29 = vpop.eup %6026 }
0x4030   :  { %4083 = vrot.lane.b32.xlu0 %v6027_v29, %s6318_s24 }
0x40a2   :  { %v4084_v10 = vpop.permute.xlu0 %4083 }
0x40a3   :  { %v4086_v12 = vmul.f32 %v6025_v23, %v4084_v10 }
0x40a5   :  { %v4087_v21 = vmul.f32 %v4086_v12, %v7206_v39 }
0x40a7   :  { %v7516_v35 = vadd.f32 %v4091_v13, %v4087_v21 }
0x40a9   :  { %4102 = vrot.lane.b32.xlu0 %v7516_v35, %s6319_s29  ;;  %v4213_v42 = vmul.f32 %v7516_v35, %v7228_v27 }
0x40ad   :  { %4097 = vrot.lane.b32.xlu0 %v4095_v30, %s6319_s29 }
0x411b   :  { %v4103_v24 = vpop.permute.xlu0 %4102 }
0x411c   :  { %5540 = vmatmul.mubr.msk.f32.vlgmr.msra.gmra.mrb[40].mxu0 %vm278_vm4, %v4103_v24 }
0x411d   :  { %5778 = vmatpush3.bf16.msra.mxu0 %v7320_v53  ;;  %5561 = vmatprep.mubr.msk.f32.mxu0 %vm6315_vm0, %v6316_v1 }
0x411e   :  { %5779 = vmatprep.subr.bf16.mxu0 %v6314_v0 }
0x411f   :  { %v4098_v0 = vpop.permute.xlu0 %4097 }
0x4121   :  { %5781 = vmatpush3.bf16.msra.mxu0 %v7324_v34  ;;  %v4094_v34 = vmul.f32 %v4080_v6, %v7206_v39  ;;  %v3503_v6 = vadd.f32 %v7431_v56, %v7370_v46 }
0x4123   :  { %v4100_v50 = vadd.f32 %v4098_v0, %v4094_v34 }
0x4125   :  { %v4188_v28 = vrot.slane %v4100_v50, 4  ;;  %v4225_v33 = vmul.f32 %v4100_v50, %v7228_v27 }
0x41ef   :  { %v4172_v55 = vpop.f32.mrb[40].mxu0 }
0x41f0   :  { %v4177_v8 = vrot.slane %v4172_v55, 4  ;;  %v5541_v5 = vpop.f32.mrb[41].mxu0 }
0x41f2   :  { %v4179_v57 = vadd.f32 %v4177_v8, %v3498_v36 }
0x41f4   :  { %6028 = vtanh.f32 %v4179_v57  ;;  %v4978_v37 = vmul.f32 -1.442695, %v4179_v57 }
0x41f6   :  { %6030 = vpow2.f32 %v4978_v37 }
0x41fe   :  { %v6029_v59 = vpop.eup %6028 }
0x41ff   :  { %4192 = vrot.lane.b32.xlu1 %v6029_v59, %s6318_s24 }
0x4200   :  { %v6031_v2 = vpop.eup %6030 }
0x4201   :  { %v4183_v22 = vadd.f32 1.0, %v6031_v2 }
0x4203   :  { %6032 = vrcp.f32 %v4183_v22 }
0x420d   :  { %v6033_v53 = vpop.eup %6032 }
0x420e   :  { %v4190_v19 = vmul.f32 %v6033_v53, %v4188_v28 }
0x4271   :  { %v4193_v40 = vpop.permute.xlu1 %4192 }
0x4272   :  { %v4195_v7 = vmul.f32 %v6033_v53, %v4193_v40 }
0x4274   :  { %4197 = vrot.lane.b32.xlu1 %v4195_v7, %s6319_s29 }
0x42e6   :  { %v4198_v36 = vpop.permute.xlu1 %4197 }
0x42e7   :  { %v4200_v3 = vadd.f32 %v4198_v36, %v4190_v19 }
0x42e9   :  { %6034 = vtanh.f32 %v4200_v3  ;;  %v4220_v58 = vrot.slane %v4200_v3, 4 }
0x42f3   :  { %v6035_v26 = vpop.eup %6034 }
0x42f4   :  { %4203 = vrot.lane.b32.xlu0 %v6035_v26, %s6318_s24 }
0x42f8   :  { %4215 = vrot.lane.b32.xlu0 %v4213_v42, %s6319_s29 }
0x42fc   :  { %4227 = vrot.lane.b32.xlu0 %v4225_v33, %s6320_s27 }
0x4366   :  { %v4204_v63 = vpop.permute.xlu0 %4203 }
0x4367   :  { %v4206_v39 = vmul.f32 %v6033_v53, %v4204_v63 }
0x4369   :  { %v4208_v54 = vrot.slane %v4206_v39, 4 }
0x436a   :  { %v4216_v23 = vpop.permute.xlu0 %4215 }
0x436b   :  { %4209 = vrot.lane.b32.xlu1 %v4208_v54, %s6319_s29 }
0x436e   :  { %v4228_v27 = vpop.permute.xlu0 %4227 }
0x436f   :  { %4221 = vrot.lane.b32.xlu1 %v4220_v58, %s6320_s27 }
0x43dd   :  { %v4210_v60 = vpop.permute.xlu1 %4209 }
0x43de   :  { %v4212_v15 = vmul.f32 %v4210_v60, %v7242_v43 }
0x43e0   :  { %v7540_v52 = vadd.f32 %v4216_v23, %v4212_v15 }
0x43e1   :  { %v4222_v44 = vpop.permute.xlu1 %4221 }
0x43e2   :  { %v4224_v20 = vmul.f32 %v4222_v44, %v7242_v43  ;;  %5551 = vmatmul.mubr.msk.f32.vlgmr.msra.gmra.mrb[30].mxu1 %vm278_vm4, %v7540_v52  ;;  %v4334_v46 = vmul.f32 %v7540_v52, %v7265_v38 }
0x43e4   :  { %v4230_v14 = vadd.f32 %v4228_v27, %v4224_v20 }
0x43e6   :  { %4313 = vrot.lane.b32.xlu0 %v4230_v14, %s6319_s29  ;;  %v4341_v0 = vmul.f32 %v4230_v14, %v7265_v38 }
0x4458   :  { %v4314_v56 = vpop.permute.xlu0 %4313 }
0x44b5   :  { %v4300_v29 = vpop.f32.mrb[30].mxu1 }
0x44b6   :  { %v4304_v10 = vadd.f32 %v4300_v29, %v3503_v6  ;;  %v5552_v12 = vpop.f32.mrb[31].mxu1 }
0x44b7   :  { %v4487_v12 = vld [vmem:[#allocation10 + $0x8] sm:$0xff] }
0x44b8   :  { %6036 = vtanh.f32 %v4304_v10  ;;  %v4980_v13 = vmul.f32 -1.442695, %v4304_v10  ;;  %v4486_v10 = vld [vmem:[#allocation10] sm:$0xff] }
0x44ba   :  { %6038 = vpow2.f32 %v4980_v13  ;;  %v5782_v13 = vpack.c.bf16 %v4487_v12, %v4486_v10  ;;  %v4610_v10 = vlaneseq }
0x44bc   :  { %5783 = vmatprep.subr.bf16.mxu1 %v5782_v13 }
0x44bd   :  { %5785 = vmatpush3.bf16.msra.mxu1 %v5782_v13  ;;  %v4611_v13 = vand.u32 127, %v4610_v10 }
0x44c2   :  { %v6037_v21 = vpop.eup %6036 }
0x44c3   :  { %4318 = vrot.lane.b32.xlu1 %v6037_v21, %s6318_s24 }
0x44c4   :  { %v6039_v43 = vpop.eup %6038 }
0x44c5   :  { %v4308_v30 = vadd.f32 1.0, %v6039_v43  ;;  %v4465_v43 = vrot.slane %v7450_v25, 4 }
0x44c7   :  { %6040 = vrcp.f32 %v4308_v30  ;;  %v4489_v30 = vld [vmem:[#allocation10 + $0x18] sm:$0xff] }
0x44d1   :  { %v6041_v24 = vpop.eup %6040 }
0x44d2   :  { %v4316_v5 = vmul.f32 %v6041_v24, %v4314_v56 }
0x4535   :  { %v4319_v55 = vpop.permute.xlu1 %4318 }
0x4536   :  { %v4321_v8 = vmul.f32 %v6041_v24, %v4319_v55 }
0x4538   :  { %4323 = vrot.lane.b32.xlu1 %v4321_v8, %s6319_s29 }
0x453c   :  { %4336 = vrot.lane.b32.xlu1 %v4334_v46, %s6320_s27 }
0x45aa   :  { %v4324_v57 = vpop.permute.xlu1 %4323 }
0x45ab   :  { %v4326_v59 = vadd.f32 %v4324_v57, %v4316_v5 }
0x45ad   :  { %6042 = vtanh.f32 %v4326_v59  ;;  %v4340_v58 = vmul.f32 %v4326_v59, %v7289_v45 }
0x45ae   :  { %v4337_v40 = vpop.permute.xlu1 %4336 }
0x45b7   :  { %v6043_v37 = vpop.eup %6042 }
0x45b8   :  { %4329 = vrot.lane.b32.xlu0 %v6043_v37, %s6318_s24 }
0x462a   :  { %v4330_v2 = vpop.permute.xlu0 %4329 }
0x462b   :  { %v4332_v22 = vmul.f32 %v6041_v24, %v4330_v2 }
0x462d   :  { %v4333_v53 = vmul.f32 %v4332_v22, %v7289_v45 }
0x462f   :  { %v7555_v7 = vadd.f32 %v4337_v40, %v4333_v53 }
0x4631   :  { %4348 = vrot.lane.b32.xlu0 %v7555_v7, %s6319_s29  ;;  %v4459_v14 = vmul.f32 %v7555_v7, %v7388_v61  ;;  %v4473_v61 = vrot.slane %v7540_v52, 4 }
0x4635   :  { %4343 = vrot.lane.b32.xlu0 %v4341_v0, %s6319_s29 }
0x46a3   :  { %v4349_v34 = vpop.permute.xlu0 %4348 }
0x46a4   :  { %5562 = vmatmul.mubr.msk.f32.vlgmr.msra.gmra.mrb[42].mxu0 %vm278_vm4, %v4349_v34 }
0x46a7   :  { %v4344_v54 = vpop.permute.xlu0 %4343 }
0x46a8   :  { %v4346_v23 = vadd.f32 %v4344_v54, %v4340_v58 }
0x46aa   :  { %v4434_v60 = vrot.slane %v4346_v23, 4 }
0x4777   :  { %v4418_v50 = vpop.f32.mrb[42].mxu0 }
0x4778   :  { %v4423_v28 = vrot.slane %v4418_v50, 4  ;;  %v5563_v19 = vpop.f32.mrb[43].mxu0 }
0x477a   :  { %v4425_v36 = vadd.f32 %v4423_v28, %v3503_v6  ;;  %v4469_v6 = vrot.slane %v7496_v9, 4  ;;  %v4488_v9 = vld [vmem:[#allocation10 + $0x10] sm:$0xff] }
0x477b   :  { %v5786_v24 = vpack.c.bf16 %v4489_v30, %v4488_v9 }
0x477c   :  { %6044 = vtanh.f32 %v4425_v36  ;;  %v4982_v26 = vmul.f32 -1.442695, %v4425_v36 }
0x477d   :  { %5787 = vmatprep.subr.bf16.mxu1 %v5786_v24 }
0x477e   :  { %6046 = vpow2.f32 %v4982_v26  ;;  %5789 = vmatpush3.bf16.msra.mxu1 %v5786_v24  ;;  %v7616_v26 = vld [vmem:[%s7860_s3 + $0x8] sm:$0xff] }
0x4786   :  { %v6045_v3 = vpop.eup %6044 }
0x4787   :  { %4438 = vrot.lane.b32.xlu1 %v6045_v3, %s6318_s24 }
0x4788   :  { %v6047_v42 = vpop.eup %6046 }
0x4789   :  { %v4429_v33 = vadd.f32 1.0, %v6047_v42  ;;  %v7622_v42 = vld [vmem:[%s7860_s3 + $0x10] sm:$0xff] }
0x478b   :  { %6048 = vrcp.f32 %v4429_v33  ;;  %v7627_v33 = vld [vmem:[%s7860_s3] sm:$0xff] }
0x4795   :  { %v6049_v63 = vpop.eup %6048 }
0x4796   :  { %v4436_v15 = vmul.f32 %v6049_v63, %v4434_v60 }
0x47f9   :  { %v4439_v38 = vpop.permute.xlu1 %4438 }
0x47fa   :  { %v4441_v39 = vmul.f32 %v6049_v63, %v4439_v38 }
0x47fc   :  { %4443 = vrot.lane.b32.xlu1 %v4441_v39, %s6319_s29 }
0x486e   :  { %v4444_v44 = vpop.permute.xlu1 %4443 }
0x486f   :  { %v4446_v20 = vadd.f32 %v4444_v44, %v4436_v15 }
0x4871   :  { %6050 = vtanh.f32 %v4446_v20 }
0x487b   :  { %v6051_v27 = vpop.eup %6050 }
0x487c   :  { %4449 = vrot.lane.b32.xlu0 %v6051_v27, %s6318_s24 }
0x4880   :  { %4461 = vrot.lane.b32.xlu0 %v4459_v14, %s6319_s29 }
0x4884   :  { %4470 = vrot.lane.b32.xlu0 %v4469_v6, %s6320_s27 }
0x48ee   :  { %v4450_v29 = vpop.permute.xlu0 %4449 }
0x48ef   :  { %v4452_v45 = vmul.f32 %v6049_v63, %v4450_v29  ;;  %v7634_v63 = vld [vmem:[%s7860_s3 + $0x18] sm:$0xff] }
0x48f1   :  { %v4454_v21 = vrot.slane %v4452_v45, 4 }
0x48f2   :  { %v4462_v8 = vpop.permute.xlu0 %4461 }
0x48f3   :  { %4455 = vrot.lane.b32.xlu1 %v4454_v21, %s6319_s29 }
0x48f6   :  { %v4471_v52 = vpop.permute.xlu0 %4470 }
0x48f7   :  { %4466 = vrot.lane.b32.xlu1 %v4465_v43, %s6320_s27  ;;  %v4483_v2 = vsel %vm176_vm1, %v7471_v32, %v4471_v52  ;;  %v4760_v52 = vcvt.s32.f32 %v4611_v13 }
0x48fb   :  { %4474 = vrot.lane.b32.xlu1 %v4473_v61, %s6320_s27 }
0x4965   :  { %v4456_v55 = vpop.permute.xlu1 %4455 }
0x4966   :  { %v4458_v46 = vmul.f32 %v4456_v55, %v7403_v31 }
0x4968   :  { %v4464_v56 = vadd.f32 %v4462_v8, %v4458_v46 }
0x4969   :  { %v4467_v5 = vpop.permute.xlu1 %4466 }
0x496a   :  { %v4478_v57 = vrot.slane %v4464_v56, 4  ;;  %v4482_v25 = vsel %vm176_vm1, %v7413_v18, %v4467_v5 }
0x496b   :  { %4501 = vrot.lane.b32.xlu1 %v4482_v25, %s6319_s29 }
0x496c   :  { %4479 = vrot.lane.b32.xlu0 %v4478_v57, %s6320_s27 }
0x496d   :  { %v4475_v59 = vpop.permute.xlu1 %4474 }
0x496e   :  { %v4484_v37 = vsel %vm176_vm1, %v7516_v35, %v4475_v59  ;;  %v4983_v35 = vld [vmem:[%s7836_s16] ss:$0 sm:$0xff] }
0x496f   :  { %4505 = vrot.lane.b32.xlu1 %v4484_v37, %s6319_s29 }
0x4970   :  { %4503 = vrot.lane.b32.xlu0 %v4483_v2, %s6319_s29 }
0x49dd   :  { %v4502_v31 = vpop.permute.xlu1 %4501 }
0x49de   :  { %5572 = vmatprep.mubr.msk.f32.mxu1 %vm278_vm4, %v4502_v31  ;;  %v4480_v18 = vpop.permute.xlu0 %4479 }
0x49df   :  { %v4485_v22 = vsel %vm176_vm1, %v7555_v7, %v4480_v18 }
0x49e0   :  { %4507 = vrot.lane.b32.xlu0 %v4485_v22, %s6319_s29 }
0x49e1   :  { %v4506_v40 = vpop.permute.xlu1 %4505 }
0x49e2   :  { %v4504_v53 = vpop.permute.xlu0 %4503 }
0x49e3   :  { %5573 = vmatmul.mubr.msk.f32.vlgmr.msra.gmra.mrb[32].mxu1 %vm278_vm4, %v4504_v53 }
0x49e4   :  { %5575 = vmatprep.mubr.msk.f32.mxu1 %vm278_vm4, %v4506_v40 }
0x4a52   :  { %v4508_v32 = vpop.permute.xlu0 %4507 }
0x4a53   :  { %5576 = vmatmul.mubr.msk.f32.gmra.mrb[34].mxu1 %vm278_vm4, %v4508_v32 }
0x4ab6   :  { %v5574_v0 = vpop.f32.mrb[32].mxu1 }
0x4ab7   :  { %v7597_v34 = vadd.f32 %v5574_v0, %v4983_v35  ;;  %v4583_v50 = vpop.f32.mrb[33].mxu1 }
0x4ab8   :  { %v7599_v7 = vadd.f32 %v4983_v35, %v4583_v50 }
0x4ab9   :  { %4603 = vst [vmem:[#allocation11 + $0x8] sm:$0xff] %v7597_v34  ;;  %4638 = vmax.xlane.f32.xlu0 %v7597_v34 }
0x4aba   :  { %4602 = vst [vmem:[#allocation11] sm:$0xff] %v7599_v7  ;;  %4636 = vmax.xlane.f32.xlu1 %v7599_v7 }
0x4b26   :  { %v5577_v28 = vpop.f32.mrb[34].mxu1 }
0x4b27   :  { %v7605_v19 = vadd.f32 %v5577_v28, %v4983_v35  ;;  %v4593_v36 = vpop.f32.mrb[35].mxu1 }
0x4b28   :  { %v7607_v3 = vadd.f32 %v4983_v35, %v4593_v36 }
0x4b29   :  { %4605 = vst [vmem:[#allocation11 + $0x18] sm:$0xff] %v7605_v19  ;;  %4642 = vmax.xlane.f32.xlu1 %v7605_v19 }
0x4b2a   :  { %4604 = vst [vmem:[#allocation11 + $0x10] sm:$0xff] %v7607_v3  ;;  %4640 = vmax.xlane.f32.xlu0 %v7607_v3 }
0x4b3a   :  { %4616 = vperm.xlu1 %5810, %v7616_v26  }
0x4b3e   :  { %4619 = vperm.xlu1 %5810, %v7622_v42  }
0x4b40   :  { %4613 = vperm.xlu0 %5811, %v7627_v33  }
0x4b44   :  { %4622 = vperm.xlu0 %5811, %v7634_v63  }
0x4b46   :  { %v7639_v39 = vpop.xlane.xlu0 %4638 }
0x4b47   :  { %v7637_v38 = vpop.xlane.xlu1 %4636  ;;  %v4645_v58 = vsub.f32 %v7597_v34, %v7639_v39  ;;  %vm4762_vm9 = vcmp.eq.f32.partialorder %v7597_v34, %v7639_v39 }
0x4b48   :  { %v4644_v54 = vsub.f32 %v7599_v7, %v7637_v38  ;;  %vm4761_vm10 = vcmp.eq.f32.partialorder %v7599_v7, %v7637_v38  ;;  %v4766_v59 = vsel %vm4762_vm9, %v4760_v52, 128.0 }
0x4b49   :  { %v4650_v60 = vmul.f32 1.442695, %v4645_v58  ;;  %v4765_v37 = vsel %vm4761_vm10, %v4760_v52, 128.0 }
0x4b4a   :  { %v4648_v23 = vmul.f32 1.442695, %v4644_v54 }
0x4b4c   :  { %6052 = vpow2.f32 %v4648_v23 }
0x4b4d   :  { %6054 = vpow2.f32 %v4650_v60 }
0x4b56   :  { %v6053_v15 = vpop.eup %6052 }
0x4b57   :  { %v6055_v44 = vpop.eup %6054 }
0x4b62   :  { %4656 = vadd.xlane.f32.xlu1 %v6053_v15 }
0x4b63   :  { %4658 = vadd.xlane.f32.xlu0 %v6055_v44 }
0x4bb6   :  { %v7645_v20 = vpop.xlane.xlu1 %4642 }
0x4bb7   :  { %v4647_v27 = vsub.f32 %v7605_v19, %v7645_v20  ;;  %v7649_v14 = vpop.xlane.xlu0 %4640  ;;  %vm4764_vm12 = vcmp.eq.f32.partialorder %v7605_v19, %v7645_v20 }
0x4bb8   :  { %v4646_v6 = vsub.f32 %v7607_v3, %v7649_v14  ;;  %vm4763_vm13 = vcmp.eq.f32.partialorder %v7607_v3, %v7649_v14  ;;  %v4768_v2 = vsel %vm4764_vm12, %v4760_v52, 128.0 }
0x4bb9   :  { %v4654_v29 = vmul.f32 1.442695, %v4647_v27  ;;  %v4767_v31 = vsel %vm4763_vm13, %v4760_v52, 128.0 }
0x4bba   :  { %v4652_v45 = vmul.f32 1.442695, %v4646_v6  ;;  %v4617_v12 = vpop.permute.xlu1 %4616 }
0x4bbb   :  { %6056 = vpow2.f32 %v4654_v29  ;;  %vm4625_vm0 = vcmp.eq.s32.totalorder %v4611_v13, %v4617_v12 }
0x4bbc   :  { %6058 = vpow2.f32 %v4652_v45  ;;  %v4989_v30 = vsel %vm4625_vm0, 1.0, %v6316_v1 }
0x4bbd   :  { %v4677_v8 = vmul.f32 %v4989_v30, %v7597_v34 }
0x4bbe   :  { %v4620_v61 = vpop.permute.xlu1 %4619 }
0x4bbf   :  { %v4614_v21 = vpop.permute.xlu0 %4613  ;;  %vm4626_vm8 = vcmp.eq.s32.totalorder %v4611_v13, %v4620_v61 }
0x4bc0   :  { %vm4624_vm4 = vcmp.eq.s32.totalorder %v4611_v13, %v4614_v21  ;;  %v4990_v5 = vsel %vm4626_vm8, 1.0, %v6316_v1 }
0x4bc1   :  { %v4988_v55 = vsel %vm4624_vm4, 1.0, %v6316_v1  ;;  %v4678_v25 = vmul.f32 %v4990_v5, %v7607_v3 }
0x4bc2   :  { %v4676_v46 = vmul.f32 %v4988_v55, %v7599_v7 }
0x4bc3   :  { %v4623_v43 = vpop.permute.xlu0 %4622 }
0x4bc4   :  { %vm4627_vm7 = vcmp.eq.s32.totalorder %v4611_v13, %v4623_v43 }
0x4bc5   :  { %v6057_v9 = vpop.eup %6056  ;;  %v4991_v56 = vsel %vm4627_vm7, 1.0, %v6316_v1 }
0x4bc6   :  { %v6059_v24 = vpop.eup %6058  ;;  %4662 = vadd.xlane.f32.xlu1 %v6057_v9  ;;  %v4679_v57 = vmul.f32 %v4991_v56, %v7605_v19 }
0x4bc7   :  { %4660 = vadd.xlane.f32.xlu0 %v6059_v24 }
0x4bca   :  { %4682 = vadd.xlane.f32.xlu1 %v4677_v8 }
0x4bcb   :  { %4680 = vadd.xlane.f32.xlu0 %v4676_v46 }
0x4bce   :  { %4686 = vadd.xlane.f32.xlu1 %v4679_v57 }
0x4bcf   :  { %4684 = vadd.xlane.f32.xlu0 %v4678_v25 }
0x4bd2   :  { %4771 = vmin.xlane.f32.xlu1 %v4766_v59 }
0x4bd3   :  { %4769 = vmin.xlane.f32.xlu0 %v4765_v37 }
0x4bd6   :  { %4775 = vmin.xlane.f32.xlu1 %v4768_v2 }
0x4bd7   :  { %4773 = vmin.xlane.f32.xlu0 %v4767_v31 }
0x4be7   :  { %2184 = vrot.lane.b32.xlu1 %v7396_v62, %s6320_s27 }
0x4bed   :  { %2179 = vrot.lane.b32.xlu0 %v7042_v51, %s6320_s27 }
0x4bee   :  { %6196 = shalt.err (!%p6193_p2)
}
0x4bef   :  { %s6197_s9 = scalar_lea.hbm %s7840_s20, 128 }
0x4bf0   :  { %p6198_p3 = scmp.ne.s32.totalorder %s7840_s20, %s6197_s9  ;;  %p6201_p4 = scmp.lt.u32.totalorder %s6197_s9, %s7840_s20 }
0x4bf2   :  { %p6203_p5 = pnand %p6201_p4, %p6198_p3 }
0x4bf4   :  { %6206 = shalt.err (!%p6203_p5)
}
0x4bf5   :  { %s6322_s8 = smov 4   ;;  %s6323_s14 = smov [#allocation11]  }
0x4bf6   :  { %4854 = dma.vmem_to_hbm [thread:$0]  %s4849_s15, 128, %s7840_s20, [#allocation16], %s6318_s24, %s6318_s24, %s6322_s8  }
0x4bf7   :  { %s4816_s2 = sshll.u32 %s6323_s14, 4  ;;  %s4817_s2 = int_to_ptr.vmem [resolvable:$true] %s4816_s2 }
0x4bf8   :  { %s6207_s16 = scalar_lea.vmem %s4817_s2, 512  ;;  %p6212_p7 = scmp.lt.s32.totalorder %s4817_s2, %s4817_s2 }
0x4bf9   :  { %p6208_p6 = scmp.ne.s32.totalorder %s4817_s2, %s6207_s16  ;;  %p6213_p8 = scmp.lt.s32.totalorder %s6207_s16, %s6207_s16 }
0x4bfb   :  { %p6214_p9 = por %p6213_p8, %p6212_p7 }
0x4bfd   :  { %p6215_p10 = pnand %p6214_p9, %p6208_p6 }
0x4bff   :  { %6218 = shalt.err (!%p6215_p10)
}
0x4c00   :  { %s6219_s10 = scalar_lea.hbm %s7837_s17, 512 }
0x4c01   :  { %p6220_p11 = scmp.ne.s32.totalorder %s7837_s17, %s6219_s10  ;;  %p6223_p12 = scmp.lt.u32.totalorder %s6219_s10, %s7837_s17 }
0x4c03   :  { %p6225_p13 = pnand %p6223_p12, %p6220_p11 }
0x4c05   :  { %6228 = shalt.err (!%p6225_p13)
}
0x4c06   :  { %4822 = dma.vmem_to_hbm [thread:$0]  %s4817_s2, 512, %s7837_s17, [#allocation4], %s6309_s23, %s6309_s23, %s6310_s1   ;;  %v4694_v51 = vrot.slane %v7150_v49, 4  ;;  %v4692_v62 = vrot.slane %v7091_v48, 4  ;;  %vm4705_vm14 = vcmp.ne.s32.totalorder %v7616_v26, 0  ;;  %vm4704_vm15 = vcmp.ne.s32.totalorder %v7627_v33, 0  ;;  %v4659_v7 = vpop.xlane.xlu0 %4658 }
0x4c07   :  { %v4993_v22 = vsel %vm4705_vm14, 1.0, %v6316_v1  ;;  %v4992_v40 = vsel %vm4704_vm15, 1.0, %v6316_v1  ;;  %v4696_v49 = vrot.slane %v7215_v4, 4  ;;  %vm4706_vm2 = vcmp.ne.s32.totalorder %v7622_v42, 0  ;;  %s6324_s17 = smov [#allocation17]  }
0x4c08   :  { %v7709_v18 = vsel %vm176_vm1, %v7121_v11, %v4694_v51  ;;  %v7714_v53 = vsel %vm176_vm1, %v7029_v41, %v4692_v62  ;;  %vm4728_vm3 = vcmask 7168   ;;  %v4698_v11 = vrot.slane %v7365_v47, 4  ;;  %s4860_s23 = sshll.u32 %s6324_s17, 4  ;;  %s4861_s23 = int_to_ptr.vmem [resolvable:$true] %s4860_s23 }
0x4c09   :  { %v4717_v48 = vmul.f32 %v4993_v22, %v7709_v18  ;;  %v4716_v32 = vmul.f32 %v4992_v40, %v7714_v53  ;;  %v7724_v35 = vsel %vm176_vm1, %v7187_v17, %v4696_v49  ;;  %v4994_v41 = vsel %vm4706_vm2, 1.0, %v6316_v1  ;;  %v4657_v17 = vpop.xlane.xlu1 %4656  ;;  %s6229_s1 = scalar_lea.vmem %s4861_s23, 128  ;;  %p6234_p1 = scmp.lt.s32.totalorder %s4861_s23, %s4861_s23 }
0x4c0a   :  { %vm4707_vm5 = vcmp.ne.s32.totalorder %v7634_v63, 0  ;;  %v7731_v34 = vmul.f32 %v4994_v41, %v7724_v35  ;;  %v7735_v50 = vsel %vm176_vm1, %v7252_v16, %v4698_v11  ;;  %6060 = vlog2.f32 %v4659_v7  ;;  %p6230_p0 = scmp.ne.s32.totalorder %s4861_s23, %s6229_s1  ;;  %p6235_p2 = scmp.lt.s32.totalorder %s6229_s1, %s6229_s1 }
0x4c0b   :  { %v4743_v0 = vsel %vm4728_vm3, %v4717_v48, 0.0  ;;  %v4742_v4 = vsel %vm4728_vm3, %v4716_v32, 0.0  ;;  %v4995_v47 = vsel %vm4707_vm5, 1.0, %v6316_v1  ;;  %6062 = vlog2.f32 %v4657_v17 }
0x4c0c   :  { %v4744_v28 = vadd.f32 %v4743_v0, %v4742_v4  ;;  %v7739_v19 = vmul.f32 %v4995_v47, %v7735_v50  ;;  %v4745_v36 = vsel %vm4728_vm3, %v7731_v34, 0.0  ;;  %v4778_v55 = vcvt.s32.f32 %v7616_v26  ;;  %p6236_p3 = por %p6235_p2, %p6234_p1 }
0x4c0d   :  { %v4777_v46 = vcvt.s32.f32 %v7627_v33  ;;  %v4780_v52 = vcvt.s32.f32 %v7634_v63  ;;  %v4779_v2 = vcvt.s32.f32 %v7622_v42 }
0x4c0e   :  { %v4746_v3 = vadd.f32 %v4745_v36, %v4744_v28  ;;  %v4747_v54 = vsel %vm4728_vm3, %v7739_v19, 0.0  ;;  %p6237_p4 = pnand %p6236_p3, %p6230_p0 }
0x4c10   :  { %v4748_v58 = vadd.f32 %v4747_v54, %v4746_v3 }
0x4c12   :  { %v4749_v23 = vrot.slane %v4748_v58, 4 }
0x4c14   :  { %v6061_v16 = vpop.eup %6060  ;;  %v4750_v29 = vadd.f32 %v4749_v23, %v4748_v58 }
0x4c15   :  { %v6063_v60 = vpop.eup %6062  ;;  %v4667_v15 = vmul.f32 0.6931472, %v6061_v16 }
0x4c16   :  { %v4665_v27 = vmul.f32 0.6931472, %v6063_v60  ;;  %v4751_v13 = vrot.slane %v4750_v29, 2 }
0x4c17   :  { %v4673_v45 = vadd.f32 %v4667_v15, %v7639_v39 }
0x4c18   :  { %v4672_v12 = vadd.f32 %v4665_v27, %v7637_v38  ;;  %v4752_v30 = vadd.f32 %v4751_v13, %v4750_v29 }
0x4c1a   :  { %v4753_v59 = vrot.slane %v4752_v30, 1 }
0x4c1c   :  { %v4754_v41 = vadd.f32 %v4753_v59, %v4752_v30 }
0x4c53   :  { %v4663_v44 = vpop.xlane.xlu1 %4662 }
0x4c54   :  { %6064 = vlog2.f32 %v4663_v44  ;;  %v4661_v6 = vpop.xlane.xlu0 %4660 }
0x4c55   :  { %6066 = vlog2.f32 %v4661_v6 }
0x4c57   :  { %v4683_v10 = vpop.xlane.xlu1 %4682 }
0x4c58   :  { %v4681_v21 = vpop.xlane.xlu0 %4680  ;;  %v4689_v43 = vsub.f32 %v4683_v10, %v4673_v45 }
0x4c59   :  { %v4688_v61 = vsub.f32 %v4681_v21, %v4672_v12 }
0x4c5a   :  { %v4721_v8 = vsub.f32 0.0, %v4689_v43 }
0x4c5b   :  { %v4687_v9 = vpop.xlane.xlu1 %4686  ;;  %v4720_v5 = vsub.f32 0.0, %v4688_v61 }
0x4c5c   :  { %v4685_v24 = vpop.xlane.xlu0 %4684  ;;  %v4725_v31 = vmul.f32 %v4721_v8, %v4717_v48 }
0x4c5d   :  { %v4724_v33 = vmul.f32 %v4720_v5, %v4716_v32 }
0x4c5e   :  { %v6065_v56 = vpop.eup %6064 }
0x4c5f   :  { %v6067_v57 = vpop.eup %6066  ;;  %v4671_v25 = vmul.f32 0.6931472, %v6065_v56  ;;  %v4772_v39 = vpop.xlane.xlu1 %4771  ;;  %v4729_v4 = vsel %vm4728_vm3, %v4724_v33, 0.0 }
0x4c60   :  { %v4669_v38 = vmul.f32 0.6931472, %v6067_v57  ;;  %vm4782_vm1 = vcmp.eq.f32.partialorder %v4772_v39, %v4778_v55  ;;  %v4770_v37 = vpop.xlane.xlu0 %4769 }
0x4c61   :  { %v4675_v51 = vadd.f32 %v4671_v25, %v7645_v20  ;;  %v4997_v26 = vsel %vm4782_vm1, 1.0, %v6316_v1  ;;  %vm4781_vm6 = vcmp.eq.f32.partialorder %v4770_v37, %v4777_v46 }
0x4c62   :  { %v4674_v62 = vadd.f32 %v4669_v38, %v7649_v14  ;;  %v4794_v22 = vmul.f32 %v4997_v26, %v7709_v18  ;;  %v4996_v40 = vsel %vm4781_vm6, 1.0, %v6316_v1  ;;  %v4730_v18 = vsel %vm4728_vm3, %v4725_v31, 0.0 }
0x4c63   :  { %v4691_v63 = vsub.f32 %v4687_v9, %v4675_v51  ;;  %v4793_v49 = vmul.f32 %v4996_v40, %v7714_v53  ;;  %v4776_v11 = vpop.xlane.xlu1 %4775  ;;  %v4731_v16 = vadd.f32 %v4730_v18, %v4729_v4 }
0x4c64   :  { %v4690_v0 = vsub.f32 %v4685_v24, %v4674_v62  ;;  %v4798_v42 = vsel %vm4728_vm3, %v4794_v22, 0.0  ;;  %vm4784_vm0 = vcmp.eq.f32.partialorder %v4776_v11, %v4780_v52  ;;  %v4774_v20 = vpop.xlane.xlu0 %4773 }
0x4c65   :  { %v4723_v48 = vsub.f32 0.0, %v4691_v63  ;;  %v4797_v32 = vsel %vm4728_vm3, %v4793_v49, 0.0  ;;  %v4999_v14 = vsel %vm4784_vm0, 1.0, %v6316_v1  ;;  %vm4783_vm4 = vcmp.eq.f32.partialorder %v4774_v20, %v4779_v2 }
0x4c66   :  { %v4722_v53 = vsub.f32 0.0, %v4690_v0  ;;  %v4998_v47 = vsel %vm4783_vm4, 1.0, %v6316_v1  ;;  %v4796_v7 = vmul.f32 %v4999_v14, %v7735_v50  ;;  %v4799_v54 = vadd.f32 %v4798_v42, %v4797_v32 }
0x4c67   :  { %v4795_v17 = vmul.f32 %v4998_v47, %v7724_v35  ;;  %v2185_v28 = vpop.permute.xlu1 %2184  ;;  %v4727_v36 = vmul.f32 %v4723_v48, %v7739_v19  ;;  %v4755_v1 = vmax.f32 %v4754_v41, 1.0 }
0x4c68   :  { %v4726_v3 = vmul.f32 %v4722_v53, %v7731_v34  ;;  %2188 = vst.msk [vmem:[#allocation17 + $0x4] sm:$0xf] %vm2170_vm11, %v2185_v28  ;;  %v2180_v58 = vpop.permute.xlu0 %2179 }
0x4c69   :  { %v4800_v23 = vsel %vm4728_vm3, %v4795_v17, 0.0  ;;  %2182 = vst.msk [vmem:[#allocation17] sm:$0xf] %vm2170_vm11, %v2180_v58 }
0x4c6a   :  { %v4732_v50 = vsel %vm4728_vm3, %v4726_v3, 0.0  ;;  %v4801_v60 = vadd.f32 %v4800_v23, %v4799_v54 }
0x4c6b   :  { %6240 = shalt.err (!%p6237_p4)
}
0x4c6c   :  { %s6241_s28 = scalar_lea.hbm %s7841_s21, 128 }
0x4c6d   :  { %p6242_p5 = scmp.ne.s32.totalorder %s7841_s21, %s6241_s28  ;;  %p6245_p6 = scmp.lt.u32.totalorder %s6241_s28, %s7841_s21 }
0x4c6f   :  { %p6247_p7 = pnand %p6245_p6, %p6242_p5 }
0x4c71   :  { %6250 = shalt.err (!%p6247_p7)
}
0x4c72   :  { %4866 = dma.vmem_to_hbm [thread:$0]  %s4861_s23, 128, %s7841_s21, [#allocation16], %s6318_s24, %s6318_s24, %s6322_s8   ;;  %v4733_v35 = vadd.f32 %v4732_v50, %v4731_v16  ;;  %v4802_v34 = vsel %vm4728_vm3, %v4796_v7, 0.0  ;;  %v4734_v19 = vsel %vm4728_vm3, %v4727_v36, 0.0  ;;  %6068 = vrcp.f32 %v4755_v1 }
0x4c73   :  { %v4803_v15 = vadd.f32 %v4802_v34, %v4801_v60  ;;  %vm4758_vm11 = vcmask 0   ;;  %s6325_s21 = smov [#allocation12]   ;;  %s6326_s27 = smov [#allocation14]  }
0x4c74   :  { %v4735_v44 = vadd.f32 %v4734_v19, %v4733_v35  ;;  %s4829_s24 = sshll.u32 %s6325_s21, 4  ;;  %s4839_s8 = sshll.u32 %s6326_s27, 4  ;;  %s4830_s24 = int_to_ptr.vmem [resolvable:$true] %s4829_s24  ;;  %s7788_s8 = int_to_ptr.vmem [resolvable:$true] %s4839_s8 }
0x4c75   :  { %v4804_v27 = vrot.slane %v4803_v15, 4  ;;  %s6251_s12 = scalar_lea.vmem %s4830_s24, 16  ;;  %s6255_s19 = scalar_lea.vmem %s4830_s24, 32 }
0x4c76   :  { %v4736_v6 = vrot.slane %v4735_v44, 4  ;;  %p6252_p8 = scmp.ne.s32.totalorder %s4830_s24, %s6251_s12  ;;  %p6256_p9 = scmp.lt.s32.totalorder %s4830_s24, %s4830_s24 }
0x4c77   :  { %v4805_v29 = vadd.f32 %v4804_v27, %v4803_v15  ;;  %p6257_p10 = scmp.lt.s32.totalorder %s6255_s19, %s6251_s12 }
0x4c78   :  { %v4737_v45 = vadd.f32 %v4736_v6, %v4735_v44 }
0x4c79   :  { %v4806_v10 = vrot.slane %v4805_v29, 2  ;;  %p6258_p11 = por %p6257_p10, %p6256_p9 }
0x4c7a   :  { %v4738_v12 = vrot.slane %v4737_v45, 2 }
0x4c7b   :  { %v4807_v21 = vadd.f32 %v4806_v10, %v4805_v29  ;;  %p6259_p12 = pnand %p6258_p11, %p6252_p8 }
0x4c7c   :  { %v4739_v13 = vadd.f32 %v4738_v12, %v4737_v45  ;;  %v6069_v9 = vpop.eup %6068 }
0x4c7d   :  { %v4808_v43 = vrot.slane %v4807_v21, 1 }
0x4c7e   :  { %v4740_v61 = vrot.slane %v4739_v13, 1 }
0x4c7f   :  { %v4809_v30 = vadd.f32 %v4808_v43, %v4807_v21 }
0x4c80   :  { %v4741_v24 = vadd.f32 %v4740_v61, %v4739_v13 }
0x4c81   :  { %4810 = vst.msk [vmem:[#allocation14] sm:$0x1] %vm4758_vm11, %v4809_v30 }
0x4c82   :  { %v4757_v55 = vmul.f32 %v6069_v9, %v4741_v24 }
0x4c84   :  { %4759 = vst.msk [vmem:[#allocation12] sm:$0x1] %vm4758_vm11, %v4757_v55 }
0x4c85   :  { %6262 = shalt.err (!%p6259_p12)
}
0x4c86   :  { %s6263_s16 = scalar_lea.hbm %s7838_s18, 16 }
0x4c87   :  { %p6264_p13 = scmp.ne.s32.totalorder %s7838_s18, %s6263_s16  ;;  %p6267_p0 = scmp.lt.u32.totalorder %s6263_s16, %s7838_s18 }
0x4c89   :  { %p6269_p1 = pnand %p6267_p0, %p6264_p13 }
0x4c8b   :  { %6272 = shalt.err (!%p6269_p1)
}
0x4c8c   :  { %4832 = dma.vmem_to_hbm [thread:$0]  %s4830_s24, 16, %s7838_s18, [#allocation13]  }
0x4c8d   :  { %s6273_s20 = scalar_lea.vmem %s7788_s8, 16  ;;  %s6277_s5 = scalar_lea.vmem %s7788_s8, 32 }
0x4c8e   :  { %p6274_p2 = scmp.ne.s32.totalorder %s7788_s8, %s6273_s20  ;;  %p6278_p3 = scmp.lt.s32.totalorder %s7788_s8, %s7788_s8 }
0x4c8f   :  { %p6279_p4 = scmp.lt.s32.totalorder %s6277_s5, %s6273_s20 }
0x4c91   :  { %p6280_p5 = por %p6279_p4, %p6278_p3 }
0x4c93   :  { %p6281_p6 = pnand %p6280_p5, %p6274_p2 }
0x4c95   :  { %6284 = shalt.err (!%p6281_p6)
}
0x4c96   :  { %s7861_s23 = sld [smem:[#allocation30_spill]] }
0x4c9c   :  { %s6285_s1 = scalar_lea.hbm %s7861_s23, 16 }
0x4c9d   :  { %p6286_p7 = scmp.ne.s32.totalorder %s7861_s23, %s6285_s1  ;;  %p6289_p8 = scmp.lt.u32.totalorder %s6285_s1, %s7861_s23 }
0x4c9f   :  { %p6291_p9 = pnand %p6289_p8, %p6286_p7 }
0x4ca1   :  { %6294 = shalt.err (!%p6291_p9)
}
0x4ca2   :  { %4842 = dma.vmem_to_hbm [thread:$0]  %s7788_s8, 16, %s7861_s23, [#allocation13]  }
0x4ca3   :  { %6301 = dma.done.wait [#allocation4], 512  }
0x4ca4   :  { %6302 = vsyncadd [#allocation4], 4294966784 }
0x4ca5   :  { %6303 = dma.done.wait [#allocation13], 32  }
0x4ca6   :  { %6304 = vsyncadd [#allocation13], 4294967264 }
0x4ca7   :  { %6305 = dma.done.wait [#allocation16], 256  }
0x4ca8   :  { %6306 = vsyncadd [#allocation16], 4294967040 }
0x4ca9   :  { %4882 = vsyncpa [#allocation3], 1 }
0x4caa   :  { %4883 = vsyncpa [#allocation6], 1 }
0x4cab   :  { %4884 = vsyncpa [#allocation9], 1 }
0x4cac   :  { %4885 = vsyncpa [#allocation4], 1 }
0x4cad   :  { %4886 = vsyncpa [#allocation13], 1 }
0x4cae   :  { %4887 = vsyncpa [#allocation16], 1 }

</bundles_post_ra>
